<compile_context>
chip_gen: v7x
topology: tpu7x:2x2x1
jax: 0.10.0
libtpu: 0.0.40
codegen_flags: <defaults>
</compile_context>

<pallas_src>
import jax
import jax.numpy as jnp
from jax.experimental import pallas as pl
from jax.experimental.pallas import tpu as pltpu  # noqa: F401  (kept for TPU-specific knobs)

# ---- model hyper-parameters (small, consistent with the module) -------------
D_MODEL = 32
NHEAD = 4
HEAD_DIM = D_MODEL // NHEAD
DIM_FF = 64
NUM_LAYERS = 2
LQ = 8      # tgt sequence length (object queries)
LKV = 16    # memory sequence length
B = 2       # batch
EPS = 1e-5  # nn.LayerNorm default


# ---- in-kernel helpers (traced inside the Pallas kernel body) ----------------
def _layer_norm(x, w, b):
    # x: (N, D); w, b: (1, D)
    mu = jnp.mean(x, axis=-1, keepdims=True)
    var = jnp.mean((x - mu) ** 2, axis=-1, keepdims=True)
    return (x - mu) * jax.lax.rsqrt(var + EPS) * w + b


def _mha(q_in, k_in, v_in, lq, lkv, in_w, in_b, out_w, out_b):
    """nn.MultiheadAttention semantics (eval, no mask, dropout=0).

    q_in: (B*lq, D), k_in/v_in: (B*lkv, D)
    in_w: (D, 3D)  -- pre-transposed in_proj_weight, Q columns pre-scaled
    in_b: (1, 3D)  -- in_proj_bias, Q part pre-scaled
    out_w: (D, D)  -- pre-transposed out_proj.weight
    out_b: (1, D)
    """
    if q_in is k_in:
        # self-attention: fuse Q and K projections into one matmul.
        qk = jnp.dot(q_in, in_w[:, :2 * D_MODEL],
                     preferred_element_type=jnp.float32) + in_b[:, :2 * D_MODEL]
        q = qk[:, :D_MODEL]
        k = qk[:, D_MODEL:2 * D_MODEL]
    else:
        q = jnp.dot(q_in, in_w[:, :D_MODEL],
                    preferred_element_type=jnp.float32) + in_b[:, :D_MODEL]
        k = jnp.dot(k_in, in_w[:, D_MODEL:2 * D_MODEL],
                    preferred_element_type=jnp.float32) + in_b[:, D_MODEL:2 * D_MODEL]
    v = jnp.dot(v_in, in_w[:, 2 * D_MODEL:],
                preferred_element_type=jnp.float32) + in_b[:, 2 * D_MODEL:]

    # leading-dim-only reshapes (layout preserving): (B*L, D) -> (B, L, D)
    q3 = q.reshape(B, lq, D_MODEL)
    k3 = k.reshape(B, lkv, D_MODEL)
    v3 = v.reshape(B, lkv, D_MODEL)

    head_outs = []
    for h in range(NHEAD):
        sl = slice(h * HEAD_DIM, (h + 1) * HEAD_DIM)
        # scale already folded into Q projection on the host
        s = jnp.einsum('bqd,bkd->bqk', q3[:, :, sl], k3[:, :, sl],
                       preferred_element_type=jnp.float32)      # (B, lq, lkv)
        s = s - jnp.max(s, axis=-1, keepdims=True)
        p = jnp.exp(s)
        p = p * pl.reciprocal(jnp.sum(p, axis=-1, keepdims=True), approx=True)
        head_outs.append(jnp.einsum('bqk,bkd->bqd', p, v3[:, :, sl],
                                    preferred_element_type=jnp.float32))

    heads = jnp.concatenate(head_outs, axis=-1).reshape(B * lq, D_MODEL)
    return jnp.dot(heads, out_w, preferred_element_type=jnp.float32) + out_b


# ---- fused decoder kernel ----------------------------------------------------
def decoder_kernel(tgt_ref, mem_ref, qpos_ref, pos_ref,
                   sa_w_ref, sa_b_ref, sa_ow_ref, sa_ob_ref,
                   ca_w_ref, ca_b_ref, ca_ow_ref, ca_ob_ref,
                   l1_w_ref, l1_b_ref, l2_w_ref, l2_b_ref,
                   n1_w_ref, n1_b_ref, n2_w_ref, n2_b_ref,
                   n3_w_ref, n3_b_ref, fn_w_ref, fn_b_ref,
                   out_ref):
    x = tgt_ref[...].astype(jnp.float32)        # (B*LQ, D)
    qpos = qpos_ref[...].astype(jnp.float32)    # (B*LQ, D)
    mem = mem_ref[...].astype(jnp.float32)      # (B*LKV, D)
    memk = mem + pos_ref[...].astype(jnp.float32)  # hoisted: constant across layers

    for l in range(NUM_LAYERS):                 # static unroll (NUM_LAYERS=2)
        # --- self attention: q = k = x + query_pos, value = x ---
        qk = x + qpos
        sa = _mha(qk, qk, x, LQ, LQ,
                  sa_w_ref[l], sa_b_ref[l], sa_ow_ref[l], sa_ob_ref[l])
        x = _layer_norm(x + sa, n1_w_ref[l], n1_b_ref[l])

        # --- cross attention: q = x + query_pos, k = memory + pos, v = memory ---
        ca = _mha(x + qpos, memk, mem, LQ, LKV,
                  ca_w_ref[l], ca_b_ref[l], ca_ow_ref[l], ca_ob_ref[l])
        x = _layer_norm(x + ca, n2_w_ref[l], n2_b_ref[l])

        # --- FFN: linear2(relu(linear1(x))) ---
        h = jnp.dot(x, l1_w_ref[l], preferred_element_type=jnp.float32) + l1_b_ref[l]
        h = jnp.maximum(h, 0.0)
        ff = jnp.dot(h, l2_w_ref[l], preferred_element_type=jnp.float32) + l2_b_ref[l]
        x = _layer_norm(x + ff, n3_w_ref[l], n3_b_ref[l])

    # final decoder LayerNorm (self.norm)
    x = _layer_norm(x, fn_w_ref[...], fn_b_ref[...])
    out_ref[...] = x.astype(out_ref.dtype)


# ---- wrapper -----------------------------------------------------------------
STACKED_PARAM_NAMES = [
    "sa_w", "sa_b", "sa_ow", "sa_ob",
    "ca_w", "ca_b", "ca_ow", "ca_ob",
    "l1_w", "l1_b", "l2_w", "l2_b",
    "n1_w", "n1_b", "n2_w", "n2_b", "n3_w", "n3_b",
]


def _full_spec(shape):
    nd = len(shape)
    return pl.BlockSpec(shape, lambda *_: (0,) * nd)


def transformer_decoder(tgt_lbd, memory_lbd, pos_lbd, query_pos_lbd,
                        stacked_params, norm_params):
    """TransformerDecoder.forward (masks None, dropout=0, return_intermediate=False).

    Inputs in PyTorch layout (L, B, D); returns (1, LQ, B, D) like output.unsqueeze(0).
    """
    # (L, B, D) -> (B, L, D) -> flat (B*L, D)
    tgt = jnp.transpose(tgt_lbd, (1, 0, 2)).reshape(B * LQ, D_MODEL)
    mem = jnp.transpose(memory_lbd, (1, 0, 2)).reshape(B * LKV, D_MODEL)
    qpos = jnp.transpose(query_pos_lbd, (1, 0, 2)).reshape(B * LQ, D_MODEL)
    pos = jnp.transpose(pos_lbd, (1, 0, 2)).reshape(B * LKV, D_MODEL)

    weights = [stacked_params[k] for k in STACKED_PARAM_NAMES]
    weights += [norm_params["w"], norm_params["b"]]
    inputs = [tgt, mem, qpos, pos] + weights

    out_flat = pl.pallas_call(
        decoder_kernel,
        out_shape=jax.ShapeDtypeStruct((B * LQ, D_MODEL), jnp.float32),
        in_specs=[_full_spec(x.shape) for x in inputs],
        out_specs=_full_spec((B * LQ, D_MODEL)),
    )(*inputs)

    out = out_flat.reshape(B, LQ, D_MODEL)
    out = jnp.transpose(out, (1, 0, 2))          # back to (LQ, B, D)
    return out[None]                              # unsqueeze(0) -> (1, LQ, B, D)


# ---- parameter construction / host-side prep ----------------------------------
def init_layer_params(key):
    """Parameters in PyTorch layout (in_proj (3D,D), linear weight (out,in))."""
    ks = jax.random.split(key, 8)
    s = 0.02
    return {
        "sa_w": jax.random.normal(ks[0], (3 * D_MODEL, D_MODEL), jnp.float32) * s,
        "sa_b": jnp.zeros((1, 3 * D_MODEL), jnp.float32),
        "sa_ow": jax.random.normal(ks[1], (D_MODEL, D_MODEL), jnp.float32) * s,
        "sa_ob": jnp.zeros((1, D_MODEL), jnp.float32),
        "ca_w": jax.random.normal(ks[2], (3 * D_MODEL, D_MODEL), jnp.float32) * s,
        "ca_b": jnp.zeros((1, 3 * D_MODEL), jnp.float32),
        "ca_ow": jax.random.normal(ks[3], (D_MODEL, D_MODEL), jnp.float32) * s,
        "ca_ob": jnp.zeros((1, D_MODEL), jnp.float32),
        "l1_w": jax.random.normal(ks[4], (DIM_FF, D_MODEL), jnp.float32) * s,
        "l1_b": jnp.zeros((1, DIM_FF), jnp.float32),
        "l2_w": jax.random.normal(ks[5], (D_MODEL, DIM_FF), jnp.float32) * s,
        "l2_b": jnp.zeros((1, D_MODEL), jnp.float32),
        "n1_w": jnp.ones((1, D_MODEL), jnp.float32),
        "n1_b": jnp.zeros((1, D_MODEL), jnp.float32),
        "n2_w": jnp.ones((1, D_MODEL), jnp.float32),
        "n2_b": jnp.zeros((1, D_MODEL), jnp.float32),
        "n3_w": jnp.ones((1, D_MODEL), jnp.float32),
        "n3_b": jnp.zeros((1, D_MODEL), jnp.float32),
    }


def prep_stacked_params(layer_params):
    """Pre-transpose weights, fold 1/sqrt(head_dim) into Q proj, stack over layers."""
    scale = 1.0 / float(HEAD_DIM) ** 0.5

    def fold_qscale(in_w_t, in_b):
        w = jnp.concatenate([in_w_t[:, :D_MODEL] * scale, in_w_t[:, D_MODEL:]], axis=1)
        b = jnp.concatenate([in_b[:, :D_MODEL] * scale, in_b[:, D_MODEL:]], axis=1)
        return w, b

    per_layer = []
    for p in layer_params:
        sa_w, sa_b = fold_qscale(p["sa_w"].T, p["sa_b"])
        ca_w, ca_b = fold_qscale(p["ca_w"].T, p["ca_b"])
        per_layer.append({
            "sa_w": sa_w, "sa_b": sa_b,
            "sa_ow": p["sa_ow"].T, "sa_ob": p["sa_ob"],
            "ca_w": ca_w, "ca_b": ca_b,
            "ca_ow": p["ca_ow"].T, "ca_ob": p["ca_ob"],
            "l1_w": p["l1_w"].T, "l1_b": p["l1_b"],
            "l2_w": p["l2_w"].T, "l2_b": p["l2_b"],
            "n1_w": p["n1_w"], "n1_b": p["n1_b"],
            "n2_w": p["n2_w"], "n2_b": p["n2_b"],
            "n3_w": p["n3_w"], "n3_b": p["n3_b"],
        })
    return {k: jnp.stack([lp[k] for lp in per_layer], axis=0)
            for k in STACKED_PARAM_NAMES}


if __name__ == "__main__":
    key = jax.random.PRNGKey(0)
    k_in, k_mem, k_qp, k_pos, k_params = jax.random.split(key, 5)

    # PyTorch layout: (L, B, D)
    tgt = jax.random.normal(k_in, (LQ, B, D_MODEL), jnp.float32)
    memory = jax.random.normal(k_mem, (LKV, B, D_MODEL), jnp.float32)
    query_pos = jax.random.normal(k_qp, (LQ, B, D_MODEL), jnp.float32)
    pos = jax.random.normal(k_pos, (LKV, B, D_MODEL), jnp.float32)

    layer_keys = jax.random.split(k_params, NUM_LAYERS)
    layer_params = [init_layer_params(lk) for lk in layer_keys]
    stacked_params = prep_stacked_params(layer_params)
    norm_params = {"w": jnp.ones((1, D_MODEL), jnp.float32),
                   "b": jnp.zeros((1, D_MODEL), jnp.float32)}

    out = transformer_decoder(tgt, memory, pos, query_pos, stacked_params, norm_params)
    out = jax.block_until_ready(out)

    assert out.shape == (1, LQ, B, D_MODEL), out.shape
    assert bool(jnp.all(jnp.isfinite(out)))
    print("KERNEL_OK")
</pallas_src>

<mosaic_0001>
module attributes {stable_mosaic.version = 11 : i64} {
  func.func @decoder_kernel(%arg0: memref<16x32xf32, #tpu.memory_space<vmem>>, %arg1: memref<32x32xf32, #tpu.memory_space<vmem>>, %arg2: memref<16x32xf32, #tpu.memory_space<vmem>>, %arg3: memref<32x32xf32, #tpu.memory_space<vmem>>, %arg4: memref<2x32x96xf32, #tpu.memory_space<vmem>>, %arg5: memref<2x1x96xf32, #tpu.memory_space<vmem>>, %arg6: memref<2x32x32xf32, #tpu.memory_space<vmem>>, %arg7: memref<2x1x32xf32, #tpu.memory_space<vmem>>, %arg8: memref<2x32x96xf32, #tpu.memory_space<vmem>>, %arg9: memref<2x1x96xf32, #tpu.memory_space<vmem>>, %arg10: memref<2x32x32xf32, #tpu.memory_space<vmem>>, %arg11: memref<2x1x32xf32, #tpu.memory_space<vmem>>, %arg12: memref<2x32x64xf32, #tpu.memory_space<vmem>>, %arg13: memref<2x1x64xf32, #tpu.memory_space<vmem>>, %arg14: memref<2x64x32xf32, #tpu.memory_space<vmem>>, %arg15: memref<2x1x32xf32, #tpu.memory_space<vmem>>, %arg16: memref<2x1x32xf32, #tpu.memory_space<vmem>>, %arg17: memref<2x1x32xf32, #tpu.memory_space<vmem>>, %arg18: memref<2x1x32xf32, #tpu.memory_space<vmem>>, %arg19: memref<2x1x32xf32, #tpu.memory_space<vmem>>, %arg20: memref<2x1x32xf32, #tpu.memory_space<vmem>>, %arg21: memref<2x1x32xf32, #tpu.memory_space<vmem>>, %arg22: memref<1x32xf32, #tpu.memory_space<vmem>>, %arg23: memref<1x32xf32, #tpu.memory_space<vmem>>, %arg24: memref<16x32xf32, #tpu.memory_space<vmem>>) attributes {dimension_semantics = [], scalar_prefetch = 0 : i64, scratch_operands = 0 : i64, tpu.core_type = #tpu.core_type<tc>} {
    %c0 = arith.constant 0 : index
    %c0_0 = arith.constant 0 : index
    %0 = vector.load %arg0[%c0, %c0_0] : memref<16x32xf32, #tpu.memory_space<vmem>>, vector<16x32xf32>
    %c0_1 = arith.constant 0 : index
    %c0_2 = arith.constant 0 : index
    %1 = vector.load %arg2[%c0_1, %c0_2] : memref<16x32xf32, #tpu.memory_space<vmem>>, vector<16x32xf32>
    %c0_3 = arith.constant 0 : index
    %c0_4 = arith.constant 0 : index
    %2 = vector.load %arg1[%c0_3, %c0_4] : memref<32x32xf32, #tpu.memory_space<vmem>>, vector<32x32xf32>
    %c0_5 = arith.constant 0 : index
    %c0_6 = arith.constant 0 : index
    %3 = vector.load %arg3[%c0_5, %c0_6] : memref<32x32xf32, #tpu.memory_space<vmem>>, vector<32x32xf32>
    %4 = arith.addf %2, %3 : vector<32x32xf32>
    %5 = arith.addf %0, %1 : vector<16x32xf32>
    %c0_7 = arith.constant 0 : index
    %c0_8 = arith.constant 0 : index
    %c0_9 = arith.constant 0 : index
    %6 = vector.load %arg4[%c0_7, %c0_8, %c0_9] : memref<2x32x96xf32, #tpu.memory_space<vmem>>, vector<1x32x96xf32>
    %7 = vector.shape_cast %6 : vector<1x32x96xf32> to vector<32x96xf32>
    %c0_10 = arith.constant 0 : index
    %c0_11 = arith.constant 0 : index
    %c0_12 = arith.constant 0 : index
    %8 = vector.load %arg5[%c0_10, %c0_11, %c0_12] : memref<2x1x96xf32, #tpu.memory_space<vmem>>, vector<1x1x96xf32>
    %9 = vector.shape_cast %8 : vector<1x1x96xf32> to vector<1x96xf32>
    %c0_13 = arith.constant 0 : index
    %c0_14 = arith.constant 0 : index
    %c0_15 = arith.constant 0 : index
    %10 = vector.load %arg6[%c0_13, %c0_14, %c0_15] : memref<2x32x32xf32, #tpu.memory_space<vmem>>, vector<1x32x32xf32>
    %11 = vector.shape_cast %10 : vector<1x32x32xf32> to vector<32x32xf32>
    %c0_16 = arith.constant 0 : index
    %c0_17 = arith.constant 0 : index
    %c0_18 = arith.constant 0 : index
    %12 = vector.load %arg7[%c0_16, %c0_17, %c0_18] : memref<2x1x32xf32, #tpu.memory_space<vmem>>, vector<1x1x32xf32>
    %13 = vector.shape_cast %12 : vector<1x1x32xf32> to vector<1x32xf32>
    %14 = vector.extract_strided_slice %7 {offsets = [0, 0], sizes = [32, 64], strides = [1, 1]} : vector<32x96xf32> to vector<32x64xf32>
    %cst = arith.constant dense<0.000000e+00> : vector<16x64xf32>
    %15 = tpu.matmul %5, %14, %cst {dimension_numbers = #tpu.dot_dimension_numbers<[1], [0], [0], [1], [0, 0, 1, 1], [], []>} : vector<16x32xf32>, vector<32x64xf32>, vector<16x64xf32> -> vector<16x64xf32>
    %16 = vector.extract_strided_slice %9 {offsets = [0, 0], sizes = [1, 64], strides = [1, 1]} : vector<1x96xf32> to vector<1x64xf32>
    %17 = vector.broadcast %16 : vector<1x64xf32> to vector<16x64xf32>
    %18 = arith.addf %15, %17 : vector<16x64xf32>
    %19 = vector.extract_strided_slice %18 {offsets = [0, 0], sizes = [16, 32], strides = [1, 1]} : vector<16x64xf32> to vector<16x32xf32>
    %20 = vector.extract_strided_slice %18 {offsets = [0, 32], sizes = [16, 32], strides = [1, 1]} : vector<16x64xf32> to vector<16x32xf32>
    %21 = vector.extract_strided_slice %7 {offsets = [0, 64], sizes = [32, 32], strides = [1, 1]} : vector<32x96xf32> to vector<32x32xf32>
    %cst_19 = arith.constant dense<0.000000e+00> : vector<16x32xf32>
    %22 = tpu.matmul %0, %21, %cst_19 {dimension_numbers = #tpu.dot_dimension_numbers<[1], [0], [0], [1], [0, 0, 1, 1], [], []>} : vector<16x32xf32>, vector<32x32xf32>, vector<16x32xf32> -> vector<16x32xf32>
    %23 = vector.extract_strided_slice %9 {offsets = [0, 64], sizes = [1, 32], strides = [1, 1]} : vector<1x96xf32> to vector<1x32xf32>
    %24 = vector.broadcast %23 : vector<1x32xf32> to vector<16x32xf32>
    %25 = arith.addf %22, %24 : vector<16x32xf32>
    %26 = vector.shape_cast %19 : vector<16x32xf32> to vector<2x8x32xf32>
    %27 = vector.shape_cast %20 : vector<16x32xf32> to vector<2x8x32xf32>
    %28 = vector.shape_cast %25 : vector<16x32xf32> to vector<2x8x32xf32>
    %29 = vector.extract_strided_slice %26 {offsets = [0, 0, 0], sizes = [2, 8, 8], strides = [1, 1, 1]} : vector<2x8x32xf32> to vector<2x8x8xf32>
    %30 = vector.extract_strided_slice %27 {offsets = [0, 0, 0], sizes = [2, 8, 8], strides = [1, 1, 1]} : vector<2x8x32xf32> to vector<2x8x8xf32>
    "tpu.trace_start"() <{level = 10 : i32, message = "bqd,bkd->bqk"}> : () -> ()
    %cst_20 = arith.constant dense<0.000000e+00> : vector<2x8x8xf32>
    %31 = tpu.matmul %29, %30, %cst_20 {dimension_numbers = #tpu.dot_dimension_numbers<[2], [2], [1], [1], [0, 0, 0, 1, 1, 1], [0], [0]>} : vector<2x8x8xf32>, vector<2x8x8xf32>, vector<2x8x8xf32> -> vector<2x8x8xf32>
    "tpu.trace_stop"() : () -> ()
    %cst_21 = arith.constant dense<0xFF800000> : vector<2x8xf32>
    %32 = vector.multi_reduction <maximumf>, %31, %cst_21 [2] : vector<2x8x8xf32> to vector<2x8xf32>
    %33 = vector.shape_cast %32 : vector<2x8xf32> to vector<2x8x1xf32>
    %34 = vector.broadcast %33 : vector<2x8x1xf32> to vector<2x8x8xf32>
    %35 = arith.subf %31, %34 : vector<2x8x8xf32>
    %36 = math.exp %35 : vector<2x8x8xf32>
    %cst_22 = arith.constant dense<0.000000e+00> : vector<2x8xf32>
    %37 = vector.multi_reduction <add>, %36, %cst_22 [2] : vector<2x8x8xf32> to vector<2x8xf32>
    %38 = vector.shape_cast %37 : vector<2x8xf32> to vector<2x8x1xf32>
    %39 = tpu.reciprocal %38 {approx = true} : vector<2x8x1xf32> -> vector<2x8x1xf32>
    %40 = vector.broadcast %39 : vector<2x8x1xf32> to vector<2x8x8xf32>
    %41 = arith.mulf %36, %40 : vector<2x8x8xf32>
    %42 = vector.extract_strided_slice %28 {offsets = [0, 0, 0], sizes = [2, 8, 8], strides = [1, 1, 1]} : vector<2x8x32xf32> to vector<2x8x8xf32>
    "tpu.trace_start"() <{level = 10 : i32, message = "bqk,bkd->bqd"}> : () -> ()
    %cst_23 = arith.constant dense<0.000000e+00> : vector<2x8x8xf32>
    %43 = tpu.matmul %41, %42, %cst_23 {dimension_numbers = #tpu.dot_dimension_numbers<[2], [1], [1], [2], [0, 0, 0, 1, 1, 2], [0], [0]>} : vector<2x8x8xf32>, vector<2x8x8xf32>, vector<2x8x8xf32> -> vector<2x8x8xf32>
    "tpu.trace_stop"() : () -> ()
    %44 = vector.extract_strided_slice %26 {offsets = [0, 0, 8], sizes = [2, 8, 8], strides = [1, 1, 1]} : vector<2x8x32xf32> to vector<2x8x8xf32>
    %45 = vector.extract_strided_slice %27 {offsets = [0, 0, 8], sizes = [2, 8, 8], strides = [1, 1, 1]} : vector<2x8x32xf32> to vector<2x8x8xf32>
    "tpu.trace_start"() <{level = 10 : i32, message = "bqd,bkd->bqk"}> : () -> ()
    %cst_24 = arith.constant dense<0.000000e+00> : vector<2x8x8xf32>
    %46 = tpu.matmul %44, %45, %cst_24 {dimension_numbers = #tpu.dot_dimension_numbers<[2], [2], [1], [1], [0, 0, 0, 1, 1, 1], [0], [0]>} : vector<2x8x8xf32>, vector<2x8x8xf32>, vector<2x8x8xf32> -> vector<2x8x8xf32>
    "tpu.trace_stop"() : () -> ()
    %cst_25 = arith.constant dense<0xFF800000> : vector<2x8xf32>
    %47 = vector.multi_reduction <maximumf>, %46, %cst_25 [2] : vector<2x8x8xf32> to vector<2x8xf32>
    %48 = vector.shape_cast %47 : vector<2x8xf32> to vector<2x8x1xf32>
    %49 = vector.broadcast %48 : vector<2x8x1xf32> to vector<2x8x8xf32>
    %50 = arith.subf %46, %49 : vector<2x8x8xf32>
    %51 = math.exp %50 : vector<2x8x8xf32>
    %cst_26 = arith.constant dense<0.000000e+00> : vector<2x8xf32>
    %52 = vector.multi_reduction <add>, %51, %cst_26 [2] : vector<2x8x8xf32> to vector<2x8xf32>
    %53 = vector.shape_cast %52 : vector<2x8xf32> to vector<2x8x1xf32>
    %54 = tpu.reciprocal %53 {approx = true} : vector<2x8x1xf32> -> vector<2x8x1xf32>
    %55 = vector.broadcast %54 : vector<2x8x1xf32> to vector<2x8x8xf32>
    %56 = arith.mulf %51, %55 : vector<2x8x8xf32>
    %57 = vector.extract_strided_slice %28 {offsets = [0, 0, 8], sizes = [2, 8, 8], strides = [1, 1, 1]} : vector<2x8x32xf32> to vector<2x8x8xf32>
    "tpu.trace_start"() <{level = 10 : i32, message = "bqk,bkd->bqd"}> : () -> ()
    %cst_27 = arith.constant dense<0.000000e+00> : vector<2x8x8xf32>
    %58 = tpu.matmul %56, %57, %cst_27 {dimension_numbers = #tpu.dot_dimension_numbers<[2], [1], [1], [2], [0, 0, 0, 1, 1, 2], [0], [0]>} : vector<2x8x8xf32>, vector<2x8x8xf32>, vector<2x8x8xf32> -> vector<2x8x8xf32>
    "tpu.trace_stop"() : () -> ()
    %59 = vector.extract_strided_slice %26 {offsets = [0, 0, 16], sizes = [2, 8, 8], strides = [1, 1, 1]} : vector<2x8x32xf32> to vector<2x8x8xf32>
    %60 = vector.extract_strided_slice %27 {offsets = [0, 0, 16], sizes = [2, 8, 8], strides = [1, 1, 1]} : vector<2x8x32xf32> to vector<2x8x8xf32>
    "tpu.trace_start"() <{level = 10 : i32, message = "bqd,bkd->bqk"}> : () -> ()
    %cst_28 = arith.constant dense<0.000000e+00> : vector<2x8x8xf32>
    %61 = tpu.matmul %59, %60, %cst_28 {dimension_numbers = #tpu.dot_dimension_numbers<[2], [2], [1], [1], [0, 0, 0, 1, 1, 1], [0], [0]>} : vector<2x8x8xf32>, vector<2x8x8xf32>, vector<2x8x8xf32> -> vector<2x8x8xf32>
    "tpu.trace_stop"() : () -> ()
    %cst_29 = arith.constant dense<0xFF800000> : vector<2x8xf32>
    %62 = vector.multi_reduction <maximumf>, %61, %cst_29 [2] : vector<2x8x8xf32> to vector<2x8xf32>
    %63 = vector.shape_cast %62 : vector<2x8xf32> to vector<2x8x1xf32>
    %64 = vector.broadcast %63 : vector<2x8x1xf32> to vector<2x8x8xf32>
    %65 = arith.subf %61, %64 : vector<2x8x8xf32>
    %66 = math.exp %65 : vector<2x8x8xf32>
    %cst_30 = arith.constant dense<0.000000e+00> : vector<2x8xf32>
    %67 = vector.multi_reduction <add>, %66, %cst_30 [2] : vector<2x8x8xf32> to vector<2x8xf32>
    %68 = vector.shape_cast %67 : vector<2x8xf32> to vector<2x8x1xf32>
    %69 = tpu.reciprocal %68 {approx = true} : vector<2x8x1xf32> -> vector<2x8x1xf32>
    %70 = vector.broadcast %69 : vector<2x8x1xf32> to vector<2x8x8xf32>
    %71 = arith.mulf %66, %70 : vector<2x8x8xf32>
    %72 = vector.extract_strided_slice %28 {offsets = [0, 0, 16], sizes = [2, 8, 8], strides = [1, 1, 1]} : vector<2x8x32xf32> to vector<2x8x8xf32>
    "tpu.trace_start"() <{level = 10 : i32, message = "bqk,bkd->bqd"}> : () -> ()
    %cst_31 = arith.constant dense<0.000000e+00> : vector<2x8x8xf32>
    %73 = tpu.matmul %71, %72, %cst_31 {dimension_numbers = #tpu.dot_dimension_numbers<[2], [1], [1], [2], [0, 0, 0, 1, 1, 2], [0], [0]>} : vector<2x8x8xf32>, vector<2x8x8xf32>, vector<2x8x8xf32> -> vector<2x8x8xf32>
    "tpu.trace_stop"() : () -> ()
    %74 = vector.extract_strided_slice %26 {offsets = [0, 0, 24], sizes = [2, 8, 8], strides = [1, 1, 1]} : vector<2x8x32xf32> to vector<2x8x8xf32>
    %75 = vector.extract_strided_slice %27 {offsets = [0, 0, 24], sizes = [2, 8, 8], strides = [1, 1, 1]} : vector<2x8x32xf32> to vector<2x8x8xf32>
    "tpu.trace_start"() <{level = 10 : i32, message = "bqd,bkd->bqk"}> : () -> ()
    %cst_32 = arith.constant dense<0.000000e+00> : vector<2x8x8xf32>
    %76 = tpu.matmul %74, %75, %cst_32 {dimension_numbers = #tpu.dot_dimension_numbers<[2], [2], [1], [1], [0, 0, 0, 1, 1, 1], [0], [0]>} : vector<2x8x8xf32>, vector<2x8x8xf32>, vector<2x8x8xf32> -> vector<2x8x8xf32>
    "tpu.trace_stop"() : () -> ()
    %cst_33 = arith.constant dense<0xFF800000> : vector<2x8xf32>
    %77 = vector.multi_reduction <maximumf>, %76, %cst_33 [2] : vector<2x8x8xf32> to vector<2x8xf32>
    %78 = vector.shape_cast %77 : vector<2x8xf32> to vector<2x8x1xf32>
    %79 = vector.broadcast %78 : vector<2x8x1xf32> to vector<2x8x8xf32>
    %80 = arith.subf %76, %79 : vector<2x8x8xf32>
    %81 = math.exp %80 : vector<2x8x8xf32>
    %cst_34 = arith.constant dense<0.000000e+00> : vector<2x8xf32>
    %82 = vector.multi_reduction <add>, %81, %cst_34 [2] : vector<2x8x8xf32> to vector<2x8xf32>
    %83 = vector.shape_cast %82 : vector<2x8xf32> to vector<2x8x1xf32>
    %84 = tpu.reciprocal %83 {approx = true} : vector<2x8x1xf32> -> vector<2x8x1xf32>
    %85 = vector.broadcast %84 : vector<2x8x1xf32> to vector<2x8x8xf32>
    %86 = arith.mulf %81, %85 : vector<2x8x8xf32>
    %87 = vector.extract_strided_slice %28 {offsets = [0, 0, 24], sizes = [2, 8, 8], strides = [1, 1, 1]} : vector<2x8x32xf32> to vector<2x8x8xf32>
    "tpu.trace_start"() <{level = 10 : i32, message = "bqk,bkd->bqd"}> : () -> ()
    %cst_35 = arith.constant dense<0.000000e+00> : vector<2x8x8xf32>
    %88 = tpu.matmul %86, %87, %cst_35 {dimension_numbers = #tpu.dot_dimension_numbers<[2], [1], [1], [2], [0, 0, 0, 1, 1, 2], [0], [0]>} : vector<2x8x8xf32>, vector<2x8x8xf32>, vector<2x8x8xf32> -> vector<2x8x8xf32>
    "tpu.trace_stop"() : () -> ()
    %89 = tpu.concatenate %43, %58, %73, %88 in 2 : vector<2x8x8xf32>, vector<2x8x8xf32>, vector<2x8x8xf32>, vector<2x8x8xf32> -> vector<2x8x32xf32>
    %90 = vector.shape_cast %89 : vector<2x8x32xf32> to vector<16x32xf32>
    %cst_36 = arith.constant dense<0.000000e+00> : vector<16x32xf32>
    %91 = tpu.matmul %90, %11, %cst_36 {dimension_numbers = #tpu.dot_dimension_numbers<[1], [0], [0], [1], [0, 0, 1, 1], [], []>} : vector<16x32xf32>, vector<32x32xf32>, vector<16x32xf32> -> vector<16x32xf32>
    %92 = vector.broadcast %13 : vector<1x32xf32> to vector<16x32xf32>
    %93 = arith.addf %91, %92 : vector<16x32xf32>
    %94 = arith.addf %0, %93 : vector<16x32xf32>
    %c0_37 = arith.constant 0 : index
    %c0_38 = arith.constant 0 : index
    %c0_39 = arith.constant 0 : index
    %95 = vector.load %arg16[%c0_37, %c0_38, %c0_39] : memref<2x1x32xf32, #tpu.memory_space<vmem>>, vector<1x1x32xf32>
    %96 = vector.shape_cast %95 : vector<1x1x32xf32> to vector<1x32xf32>
    %c0_40 = arith.constant 0 : index
    %c0_41 = arith.constant 0 : index
    %c0_42 = arith.constant 0 : index
    %97 = vector.load %arg17[%c0_40, %c0_41, %c0_42] : memref<2x1x32xf32, #tpu.memory_space<vmem>>, vector<1x1x32xf32>
    %98 = vector.shape_cast %97 : vector<1x1x32xf32> to vector<1x32xf32>
    %cst_43 = arith.constant dense<0.000000e+00> : vector<16xf32>
    %99 = vector.multi_reduction <add>, %94, %cst_43 [1] : vector<16x32xf32> to vector<16xf32>
    %100 = vector.shape_cast %99 : vector<16xf32> to vector<16x1xf32>
    %cst_44 = arith.constant 3.200000e+01 : f32
    %101 = vector.broadcast %cst_44 : f32 to vector<16x1xf32>
    %102 = arith.divf %100, %101 : vector<16x1xf32>
    %103 = vector.broadcast %102 : vector<16x1xf32> to vector<16x32xf32>
    %104 = arith.subf %94, %103 : vector<16x32xf32>
    %105 = arith.mulf %104, %104 : vector<16x32xf32>
    %cst_45 = arith.constant dense<0.000000e+00> : vector<16xf32>
    %106 = vector.multi_reduction <add>, %105, %cst_45 [1] : vector<16x32xf32> to vector<16xf32>
    %107 = vector.shape_cast %106 : vector<16xf32> to vector<16x1xf32>
    %cst_46 = arith.constant 3.200000e+01 : f32
    %108 = vector.broadcast %cst_46 : f32 to vector<16x1xf32>
    %109 = arith.divf %107, %108 : vector<16x1xf32>
    %110 = vector.broadcast %102 : vector<16x1xf32> to vector<16x32xf32>
    %111 = arith.subf %94, %110 : vector<16x32xf32>
    %cst_47 = arith.constant 9.99999974E-6 : f32
    %112 = vector.broadcast %cst_47 : f32 to vector<16x1xf32>
    %113 = arith.addf %109, %112 : vector<16x1xf32>
    %114 = math.rsqrt %113 : vector<16x1xf32>
    %115 = vector.broadcast %114 : vector<16x1xf32> to vector<16x32xf32>
    %116 = arith.mulf %111, %115 : vector<16x32xf32>
    %117 = vector.broadcast %96 : vector<1x32xf32> to vector<16x32xf32>
    %118 = arith.mulf %116, %117 : vector<16x32xf32>
    %119 = vector.broadcast %98 : vector<1x32xf32> to vector<16x32xf32>
    %120 = arith.addf %118, %119 : vector<16x32xf32>
    %121 = arith.addf %120, %1 : vector<16x32xf32>
    %c0_48 = arith.constant 0 : index
    %c0_49 = arith.constant 0 : index
    %c0_50 = arith.constant 0 : index
    %122 = vector.load %arg8[%c0_48, %c0_49, %c0_50] : memref<2x32x96xf32, #tpu.memory_space<vmem>>, vector<1x32x96xf32>
    %123 = vector.shape_cast %122 : vector<1x32x96xf32> to vector<32x96xf32>
    %c0_51 = arith.constant 0 : index
    %c0_52 = arith.constant 0 : index
    %c0_53 = arith.constant 0 : index
    %124 = vector.load %arg9[%c0_51, %c0_52, %c0_53] : memref<2x1x96xf32, #tpu.memory_space<vmem>>, vector<1x1x96xf32>
    %125 = vector.shape_cast %124 : vector<1x1x96xf32> to vector<1x96xf32>
    %c0_54 = arith.constant 0 : index
    %c0_55 = arith.constant 0 : index
    %c0_56 = arith.constant 0 : index
    %126 = vector.load %arg10[%c0_54, %c0_55, %c0_56] : memref<2x32x32xf32, #tpu.memory_space<vmem>>, vector<1x32x32xf32>
    %127 = vector.shape_cast %126 : vector<1x32x32xf32> to vector<32x32xf32>
    %c0_57 = arith.constant 0 : index
    %c0_58 = arith.constant 0 : index
    %c0_59 = arith.constant 0 : index
    %128 = vector.load %arg11[%c0_57, %c0_58, %c0_59] : memref<2x1x32xf32, #tpu.memory_space<vmem>>, vector<1x1x32xf32>
    %129 = vector.shape_cast %128 : vector<1x1x32xf32> to vector<1x32xf32>
    %130 = vector.extract_strided_slice %123 {offsets = [0, 0], sizes = [32, 32], strides = [1, 1]} : vector<32x96xf32> to vector<32x32xf32>
    %cst_60 = arith.constant dense<0.000000e+00> : vector<16x32xf32>
    %131 = tpu.matmul %121, %130, %cst_60 {dimension_numbers = #tpu.dot_dimension_numbers<[1], [0], [0], [1], [0, 0, 1, 1], [], []>} : vector<16x32xf32>, vector<32x32xf32>, vector<16x32xf32> -> vector<16x32xf32>
    %132 = vector.extract_strided_slice %125 {offsets = [0, 0], sizes = [1, 32], strides = [1, 1]} : vector<1x96xf32> to vector<1x32xf32>
    %133 = vector.broadcast %132 : vector<1x32xf32> to vector<16x32xf32>
    %134 = arith.addf %131, %133 : vector<16x32xf32>
    %135 = vector.extract_strided_slice %123 {offsets = [0, 32], sizes = [32, 32], strides = [1, 1]} : vector<32x96xf32> to vector<32x32xf32>
    %cst_61 = arith.constant dense<0.000000e+00> : vector<32x32xf32>
    %136 = tpu.matmul %4, %135, %cst_61 {dimension_numbers = #tpu.dot_dimension_numbers<[1], [0], [0], [1], [0, 0, 1, 1], [], []>} : vector<32x32xf32>, vector<32x32xf32>, vector<32x32xf32> -> vector<32x32xf32>
    %137 = vector.extract_strided_slice %125 {offsets = [0, 32], sizes = [1, 32], strides = [1, 1]} : vector<1x96xf32> to vector<1x32xf32>
    %138 = vector.broadcast %137 : vector<1x32xf32> to vector<32x32xf32>
    %139 = arith.addf %136, %138 : vector<32x32xf32>
    %140 = vector.extract_strided_slice %123 {offsets = [0, 64], sizes = [32, 32], strides = [1, 1]} : vector<32x96xf32> to vector<32x32xf32>
    %cst_62 = arith.constant dense<0.000000e+00> : vector<32x32xf32>
    %141 = tpu.matmul %2, %140, %cst_62 {dimension_numbers = #tpu.dot_dimension_numbers<[1], [0], [0], [1], [0, 0, 1, 1], [], []>} : vector<32x32xf32>, vector<32x32xf32>, vector<32x32xf32> -> vector<32x32xf32>
    %142 = vector.extract_strided_slice %125 {offsets = [0, 64], sizes = [1, 32], strides = [1, 1]} : vector<1x96xf32> to vector<1x32xf32>
    %143 = vector.broadcast %142 : vector<1x32xf32> to vector<32x32xf32>
    %144 = arith.addf %141, %143 : vector<32x32xf32>
    %145 = vector.shape_cast %134 : vector<16x32xf32> to vector<2x8x32xf32>
    %146 = vector.shape_cast %139 : vector<32x32xf32> to vector<2x16x32xf32>
    %147 = vector.shape_cast %144 : vector<32x32xf32> to vector<2x16x32xf32>
    %148 = vector.extract_strided_slice %145 {offsets = [0, 0, 0], sizes = [2, 8, 8], strides = [1, 1, 1]} : vector<2x8x32xf32> to vector<2x8x8xf32>
    %149 = vector.extract_strided_slice %146 {offsets = [0, 0, 0], sizes = [2, 16, 8], strides = [1, 1, 1]} : vector<2x16x32xf32> to vector<2x16x8xf32>
    "tpu.trace_start"() <{level = 10 : i32, message = "bqd,bkd->bqk"}> : () -> ()
    %cst_63 = arith.constant dense<0.000000e+00> : vector<2x8x16xf32>
    %150 = tpu.matmul %148, %149, %cst_63 {dimension_numbers = #tpu.dot_dimension_numbers<[2], [2], [1], [1], [0, 0, 0, 1, 1, 1], [0], [0]>} : vector<2x8x8xf32>, vector<2x16x8xf32>, vector<2x8x16xf32> -> vector<2x8x16xf32>
    "tpu.trace_stop"() : () -> ()
    %cst_64 = arith.constant dense<0xFF800000> : vector<2x8xf32>
    %151 = vector.multi_reduction <maximumf>, %150, %cst_64 [2] : vector<2x8x16xf32> to vector<2x8xf32>
    %152 = vector.shape_cast %151 : vector<2x8xf32> to vector<2x8x1xf32>
    %153 = vector.broadcast %152 : vector<2x8x1xf32> to vector<2x8x16xf32>
    %154 = arith.subf %150, %153 : vector<2x8x16xf32>
    %155 = math.exp %154 : vector<2x8x16xf32>
    %cst_65 = arith.constant dense<0.000000e+00> : vector<2x8xf32>
    %156 = vector.multi_reduction <add>, %155, %cst_65 [2] : vector<2x8x16xf32> to vector<2x8xf32>
    %157 = vector.shape_cast %156 : vector<2x8xf32> to vector<2x8x1xf32>
    %158 = tpu.reciprocal %157 {approx = true} : vector<2x8x1xf32> -> vector<2x8x1xf32>
    %159 = vector.broadcast %158 : vector<2x8x1xf32> to vector<2x8x16xf32>
    %160 = arith.mulf %155, %159 : vector<2x8x16xf32>
    %161 = vector.extract_strided_slice %147 {offsets = [0, 0, 0], sizes = [2, 16, 8], strides = [1, 1, 1]} : vector<2x16x32xf32> to vector<2x16x8xf32>
    "tpu.trace_start"() <{level = 10 : i32, message = "bqk,bkd->bqd"}> : () -> ()
    %cst_66 = arith.constant dense<0.000000e+00> : vector<2x8x8xf32>
    %162 = tpu.matmul %160, %161, %cst_66 {dimension_numbers = #tpu.dot_dimension_numbers<[2], [1], [1], [2], [0, 0, 0, 1, 1, 2], [0], [0]>} : vector<2x8x16xf32>, vector<2x16x8xf32>, vector<2x8x8xf32> -> vector<2x8x8xf32>
    "tpu.trace_stop"() : () -> ()
    %163 = vector.extract_strided_slice %145 {offsets = [0, 0, 8], sizes = [2, 8, 8], strides = [1, 1, 1]} : vector<2x8x32xf32> to vector<2x8x8xf32>
    %164 = vector.extract_strided_slice %146 {offsets = [0, 0, 8], sizes = [2, 16, 8], strides = [1, 1, 1]} : vector<2x16x32xf32> to vector<2x16x8xf32>
    "tpu.trace_start"() <{level = 10 : i32, message = "bqd,bkd->bqk"}> : () -> ()
    %cst_67 = arith.constant dense<0.000000e+00> : vector<2x8x16xf32>
    %165 = tpu.matmul %163, %164, %cst_67 {dimension_numbers = #tpu.dot_dimension_numbers<[2], [2], [1], [1], [0, 0, 0, 1, 1, 1], [0], [0]>} : vector<2x8x8xf32>, vector<2x16x8xf32>, vector<2x8x16xf32> -> vector<2x8x16xf32>
    "tpu.trace_stop"() : () -> ()
    %cst_68 = arith.constant dense<0xFF800000> : vector<2x8xf32>
    %166 = vector.multi_reduction <maximumf>, %165, %cst_68 [2] : vector<2x8x16xf32> to vector<2x8xf32>
    %167 = vector.shape_cast %166 : vector<2x8xf32> to vector<2x8x1xf32>
    %168 = vector.broadcast %167 : vector<2x8x1xf32> to vector<2x8x16xf32>
    %169 = arith.subf %165, %168 : vector<2x8x16xf32>
    %170 = math.exp %169 : vector<2x8x16xf32>
    %cst_69 = arith.constant dense<0.000000e+00> : vector<2x8xf32>
    %171 = vector.multi_reduction <add>, %170, %cst_69 [2] : vector<2x8x16xf32> to vector<2x8xf32>
    %172 = vector.shape_cast %171 : vector<2x8xf32> to vector<2x8x1xf32>
    %173 = tpu.reciprocal %172 {approx = true} : vector<2x8x1xf32> -> vector<2x8x1xf32>
    %174 = vector.broadcast %173 : vector<2x8x1xf32> to vector<2x8x16xf32>
    %175 = arith.mulf %170, %174 : vector<2x8x16xf32>
    %176 = vector.extract_strided_slice %147 {offsets = [0, 0, 8], sizes = [2, 16, 8], strides = [1, 1, 1]} : vector<2x16x32xf32> to vector<2x16x8xf32>
    "tpu.trace_start"() <{level = 10 : i32, message = "bqk,bkd->bqd"}> : () -> ()
    %cst_70 = arith.constant dense<0.000000e+00> : vector<2x8x8xf32>
    %177 = tpu.matmul %175, %176, %cst_70 {dimension_numbers = #tpu.dot_dimension_numbers<[2], [1], [1], [2], [0, 0, 0, 1, 1, 2], [0], [0]>} : vector<2x8x16xf32>, vector<2x16x8xf32>, vector<2x8x8xf32> -> vector<2x8x8xf32>
    "tpu.trace_stop"() : () -> ()
    %178 = vector.extract_strided_slice %145 {offsets = [0, 0, 16], sizes = [2, 8, 8], strides = [1, 1, 1]} : vector<2x8x32xf32> to vector<2x8x8xf32>
    %179 = vector.extract_strided_slice %146 {offsets = [0, 0, 16], sizes = [2, 16, 8], strides = [1, 1, 1]} : vector<2x16x32xf32> to vector<2x16x8xf32>
    "tpu.trace_start"() <{level = 10 : i32, message = "bqd,bkd->bqk"}> : () -> ()
    %cst_71 = arith.constant dense<0.000000e+00> : vector<2x8x16xf32>
    %180 = tpu.matmul %178, %179, %cst_71 {dimension_numbers = #tpu.dot_dimension_numbers<[2], [2], [1], [1], [0, 0, 0, 1, 1, 1], [0], [0]>} : vector<2x8x8xf32>, vector<2x16x8xf32>, vector<2x8x16xf32> -> vector<2x8x16xf32>
    "tpu.trace_stop"() : () -> ()
    %cst_72 = arith.constant dense<0xFF800000> : vector<2x8xf32>
    %181 = vector.multi_reduction <maximumf>, %180, %cst_72 [2] : vector<2x8x16xf32> to vector<2x8xf32>
    %182 = vector.shape_cast %181 : vector<2x8xf32> to vector<2x8x1xf32>
    %183 = vector.broadcast %182 : vector<2x8x1xf32> to vector<2x8x16xf32>
    %184 = arith.subf %180, %183 : vector<2x8x16xf32>
    %185 = math.exp %184 : vector<2x8x16xf32>
    %cst_73 = arith.constant dense<0.000000e+00> : vector<2x8xf32>
    %186 = vector.multi_reduction <add>, %185, %cst_73 [2] : vector<2x8x16xf32> to vector<2x8xf32>
    %187 = vector.shape_cast %186 : vector<2x8xf32> to vector<2x8x1xf32>
    %188 = tpu.reciprocal %187 {approx = true} : vector<2x8x1xf32> -> vector<2x8x1xf32>
    %189 = vector.broadcast %188 : vector<2x8x1xf32> to vector<2x8x16xf32>
    %190 = arith.mulf %185, %189 : vector<2x8x16xf32>
    %191 = vector.extract_strided_slice %147 {offsets = [0, 0, 16], sizes = [2, 16, 8], strides = [1, 1, 1]} : vector<2x16x32xf32> to vector<2x16x8xf32>
    "tpu.trace_start"() <{level = 10 : i32, message = "bqk,bkd->bqd"}> : () -> ()
    %cst_74 = arith.constant dense<0.000000e+00> : vector<2x8x8xf32>
    %192 = tpu.matmul %190, %191, %cst_74 {dimension_numbers = #tpu.dot_dimension_numbers<[2], [1], [1], [2], [0, 0, 0, 1, 1, 2], [0], [0]>} : vector<2x8x16xf32>, vector<2x16x8xf32>, vector<2x8x8xf32> -> vector<2x8x8xf32>
    "tpu.trace_stop"() : () -> ()
    %193 = vector.extract_strided_slice %145 {offsets = [0, 0, 24], sizes = [2, 8, 8], strides = [1, 1, 1]} : vector<2x8x32xf32> to vector<2x8x8xf32>
    %194 = vector.extract_strided_slice %146 {offsets = [0, 0, 24], sizes = [2, 16, 8], strides = [1, 1, 1]} : vector<2x16x32xf32> to vector<2x16x8xf32>
    "tpu.trace_start"() <{level = 10 : i32, message = "bqd,bkd->bqk"}> : () -> ()
    %cst_75 = arith.constant dense<0.000000e+00> : vector<2x8x16xf32>
    %195 = tpu.matmul %193, %194, %cst_75 {dimension_numbers = #tpu.dot_dimension_numbers<[2], [2], [1], [1], [0, 0, 0, 1, 1, 1], [0], [0]>} : vector<2x8x8xf32>, vector<2x16x8xf32>, vector<2x8x16xf32> -> vector<2x8x16xf32>
    "tpu.trace_stop"() : () -> ()
    %cst_76 = arith.constant dense<0xFF800000> : vector<2x8xf32>
    %196 = vector.multi_reduction <maximumf>, %195, %cst_76 [2] : vector<2x8x16xf32> to vector<2x8xf32>
    %197 = vector.shape_cast %196 : vector<2x8xf32> to vector<2x8x1xf32>
    %198 = vector.broadcast %197 : vector<2x8x1xf32> to vector<2x8x16xf32>
    %199 = arith.subf %195, %198 : vector<2x8x16xf32>
    %200 = math.exp %199 : vector<2x8x16xf32>
    %cst_77 = arith.constant dense<0.000000e+00> : vector<2x8xf32>
    %201 = vector.multi_reduction <add>, %200, %cst_77 [2] : vector<2x8x16xf32> to vector<2x8xf32>
    %202 = vector.shape_cast %201 : vector<2x8xf32> to vector<2x8x1xf32>
    %203 = tpu.reciprocal %202 {approx = true} : vector<2x8x1xf32> -> vector<2x8x1xf32>
    %204 = vector.broadcast %203 : vector<2x8x1xf32> to vector<2x8x16xf32>
    %205 = arith.mulf %200, %204 : vector<2x8x16xf32>
    %206 = vector.extract_strided_slice %147 {offsets = [0, 0, 24], sizes = [2, 16, 8], strides = [1, 1, 1]} : vector<2x16x32xf32> to vector<2x16x8xf32>
    "tpu.trace_start"() <{level = 10 : i32, message = "bqk,bkd->bqd"}> : () -> ()
    %cst_78 = arith.constant dense<0.000000e+00> : vector<2x8x8xf32>
    %207 = tpu.matmul %205, %206, %cst_78 {dimension_numbers = #tpu.dot_dimension_numbers<[2], [1], [1], [2], [0, 0, 0, 1, 1, 2], [0], [0]>} : vector<2x8x16xf32>, vector<2x16x8xf32>, vector<2x8x8xf32> -> vector<2x8x8xf32>
    "tpu.trace_stop"() : () -> ()
    %208 = tpu.concatenate %162, %177, %192, %207 in 2 : vector<2x8x8xf32>, vector<2x8x8xf32>, vector<2x8x8xf32>, vector<2x8x8xf32> -> vector<2x8x32xf32>
    %209 = vector.shape_cast %208 : vector<2x8x32xf32> to vector<16x32xf32>
    %cst_79 = arith.constant dense<0.000000e+00> : vector<16x32xf32>
    %210 = tpu.matmul %209, %127, %cst_79 {dimension_numbers = #tpu.dot_dimension_numbers<[1], [0], [0], [1], [0, 0, 1, 1], [], []>} : vector<16x32xf32>, vector<32x32xf32>, vector<16x32xf32> -> vector<16x32xf32>
    %211 = vector.broadcast %129 : vector<1x32xf32> to vector<16x32xf32>
    %212 = arith.addf %210, %211 : vector<16x32xf32>
    %213 = arith.addf %120, %212 : vector<16x32xf32>
    %c0_80 = arith.constant 0 : index
    %c0_81 = arith.constant 0 : index
    %c0_82 = arith.constant 0 : index
    %214 = vector.load %arg18[%c0_80, %c0_81, %c0_82] : memref<2x1x32xf32, #tpu.memory_space<vmem>>, vector<1x1x32xf32>
    %215 = vector.shape_cast %214 : vector<1x1x32xf32> to vector<1x32xf32>
    %c0_83 = arith.constant 0 : index
    %c0_84 = arith.constant 0 : index
    %c0_85 = arith.constant 0 : index
    %216 = vector.load %arg19[%c0_83, %c0_84, %c0_85] : memref<2x1x32xf32, #tpu.memory_space<vmem>>, vector<1x1x32xf32>
    %217 = vector.shape_cast %216 : vector<1x1x32xf32> to vector<1x32xf32>
    %cst_86 = arith.constant dense<0.000000e+00> : vector<16xf32>
    %218 = vector.multi_reduction <add>, %213, %cst_86 [1] : vector<16x32xf32> to vector<16xf32>
    %219 = vector.shape_cast %218 : vector<16xf32> to vector<16x1xf32>
    %cst_87 = arith.constant 3.200000e+01 : f32
    %220 = vector.broadcast %cst_87 : f32 to vector<16x1xf32>
    %221 = arith.divf %219, %220 : vector<16x1xf32>
    %222 = vector.broadcast %221 : vector<16x1xf32> to vector<16x32xf32>
    %223 = arith.subf %213, %222 : vector<16x32xf32>
    %224 = arith.mulf %223, %223 : vector<16x32xf32>
    %cst_88 = arith.constant dense<0.000000e+00> : vector<16xf32>
    %225 = vector.multi_reduction <add>, %224, %cst_88 [1] : vector<16x32xf32> to vector<16xf32>
    %226 = vector.shape_cast %225 : vector<16xf32> to vector<16x1xf32>
    %cst_89 = arith.constant 3.200000e+01 : f32
    %227 = vector.broadcast %cst_89 : f32 to vector<16x1xf32>
    %228 = arith.divf %226, %227 : vector<16x1xf32>
    %229 = vector.broadcast %221 : vector<16x1xf32> to vector<16x32xf32>
    %230 = arith.subf %213, %229 : vector<16x32xf32>
    %cst_90 = arith.constant 9.99999974E-6 : f32
    %231 = vector.broadcast %cst_90 : f32 to vector<16x1xf32>
    %232 = arith.addf %228, %231 : vector<16x1xf32>
    %233 = math.rsqrt %232 : vector<16x1xf32>
    %234 = vector.broadcast %233 : vector<16x1xf32> to vector<16x32xf32>
    %235 = arith.mulf %230, %234 : vector<16x32xf32>
    %236 = vector.broadcast %215 : vector<1x32xf32> to vector<16x32xf32>
    %237 = arith.mulf %235, %236 : vector<16x32xf32>
    %238 = vector.broadcast %217 : vector<1x32xf32> to vector<16x32xf32>
    %239 = arith.addf %237, %238 : vector<16x32xf32>
    %c0_91 = arith.constant 0 : index
    %c0_92 = arith.constant 0 : index
    %c0_93 = arith.constant 0 : index
    %240 = vector.load %arg12[%c0_91, %c0_92, %c0_93] : memref<2x32x64xf32, #tpu.memory_space<vmem>>, vector<1x32x64xf32>
    %241 = vector.shape_cast %240 : vector<1x32x64xf32> to vector<32x64xf32>
    %cst_94 = arith.constant dense<0.000000e+00> : vector<16x64xf32>
    %242 = tpu.matmul %239, %241, %cst_94 {dimension_numbers = #tpu.dot_dimension_numbers<[1], [0], [0], [1], [0, 0, 1, 1], [], []>} : vector<16x32xf32>, vector<32x64xf32>, vector<16x64xf32> -> vector<16x64xf32>
    %c0_95 = arith.constant 0 : index
    %c0_96 = arith.constant 0 : index
    %c0_97 = arith.constant 0 : index
    %243 = vector.load %arg13[%c0_95, %c0_96, %c0_97] : memref<2x1x64xf32, #tpu.memory_space<vmem>>, vector<1x1x64xf32>
    %244 = vector.shape_cast %243 : vector<1x1x64xf32> to vector<1x64xf32>
    %245 = vector.broadcast %244 : vector<1x64xf32> to vector<16x64xf32>
    %246 = arith.addf %242, %245 : vector<16x64xf32>
    %cst_98 = arith.constant 0.000000e+00 : f32
    %247 = vector.broadcast %cst_98 : f32 to vector<16x64xf32>
    %248 = arith.maximumf %246, %247 : vector<16x64xf32>
    %c0_99 = arith.constant 0 : index
    %c0_100 = arith.constant 0 : index
    %c0_101 = arith.constant 0 : index
    %249 = vector.load %arg14[%c0_99, %c0_100, %c0_101] : memref<2x64x32xf32, #tpu.memory_space<vmem>>, vector<1x64x32xf32>
    %250 = vector.shape_cast %249 : vector<1x64x32xf32> to vector<64x32xf32>
    %cst_102 = arith.constant dense<0.000000e+00> : vector<16x32xf32>
    %251 = tpu.matmul %248, %250, %cst_102 {dimension_numbers = #tpu.dot_dimension_numbers<[1], [0], [0], [1], [0, 0, 1, 1], [], []>} : vector<16x64xf32>, vector<64x32xf32>, vector<16x32xf32> -> vector<16x32xf32>
    %c0_103 = arith.constant 0 : index
    %c0_104 = arith.constant 0 : index
    %c0_105 = arith.constant 0 : index
    %252 = vector.load %arg15[%c0_103, %c0_104, %c0_105] : memref<2x1x32xf32, #tpu.memory_space<vmem>>, vector<1x1x32xf32>
    %253 = vector.shape_cast %252 : vector<1x1x32xf32> to vector<1x32xf32>
    %254 = vector.broadcast %253 : vector<1x32xf32> to vector<16x32xf32>
    %255 = arith.addf %251, %254 : vector<16x32xf32>
    %256 = arith.addf %239, %255 : vector<16x32xf32>
    %c0_106 = arith.constant 0 : index
    %c0_107 = arith.constant 0 : index
    %c0_108 = arith.constant 0 : index
    %257 = vector.load %arg20[%c0_106, %c0_107, %c0_108] : memref<2x1x32xf32, #tpu.memory_space<vmem>>, vector<1x1x32xf32>
    %258 = vector.shape_cast %257 : vector<1x1x32xf32> to vector<1x32xf32>
    %c0_109 = arith.constant 0 : index
    %c0_110 = arith.constant 0 : index
    %c0_111 = arith.constant 0 : index
    %259 = vector.load %arg21[%c0_109, %c0_110, %c0_111] : memref<2x1x32xf32, #tpu.memory_space<vmem>>, vector<1x1x32xf32>
    %260 = vector.shape_cast %259 : vector<1x1x32xf32> to vector<1x32xf32>
    %cst_112 = arith.constant dense<0.000000e+00> : vector<16xf32>
    %261 = vector.multi_reduction <add>, %256, %cst_112 [1] : vector<16x32xf32> to vector<16xf32>
    %262 = vector.shape_cast %261 : vector<16xf32> to vector<16x1xf32>
    %cst_113 = arith.constant 3.200000e+01 : f32
    %263 = vector.broadcast %cst_113 : f32 to vector<16x1xf32>
    %264 = arith.divf %262, %263 : vector<16x1xf32>
    %265 = vector.broadcast %264 : vector<16x1xf32> to vector<16x32xf32>
    %266 = arith.subf %256, %265 : vector<16x32xf32>
    %267 = arith.mulf %266, %266 : vector<16x32xf32>
    %cst_114 = arith.constant dense<0.000000e+00> : vector<16xf32>
    %268 = vector.multi_reduction <add>, %267, %cst_114 [1] : vector<16x32xf32> to vector<16xf32>
    %269 = vector.shape_cast %268 : vector<16xf32> to vector<16x1xf32>
    %cst_115 = arith.constant 3.200000e+01 : f32
    %270 = vector.broadcast %cst_115 : f32 to vector<16x1xf32>
    %271 = arith.divf %269, %270 : vector<16x1xf32>
    %272 = vector.broadcast %264 : vector<16x1xf32> to vector<16x32xf32>
    %273 = arith.subf %256, %272 : vector<16x32xf32>
    %cst_116 = arith.constant 9.99999974E-6 : f32
    %274 = vector.broadcast %cst_116 : f32 to vector<16x1xf32>
    %275 = arith.addf %271, %274 : vector<16x1xf32>
    %276 = math.rsqrt %275 : vector<16x1xf32>
    %277 = vector.broadcast %276 : vector<16x1xf32> to vector<16x32xf32>
    %278 = arith.mulf %273, %277 : vector<16x32xf32>
    %279 = vector.broadcast %258 : vector<1x32xf32> to vector<16x32xf32>
    %280 = arith.mulf %278, %279 : vector<16x32xf32>
    %281 = vector.broadcast %260 : vector<1x32xf32> to vector<16x32xf32>
    %282 = arith.addf %280, %281 : vector<16x32xf32>
    %283 = arith.addf %282, %1 : vector<16x32xf32>
    %c1 = arith.constant 1 : index
    %c0_117 = arith.constant 0 : index
    %c0_118 = arith.constant 0 : index
    %284 = vector.load %arg4[%c1, %c0_117, %c0_118] : memref<2x32x96xf32, #tpu.memory_space<vmem>>, vector<1x32x96xf32>
    %285 = vector.shape_cast %284 : vector<1x32x96xf32> to vector<32x96xf32>
    %c1_119 = arith.constant 1 : index
    %c0_120 = arith.constant 0 : index
    %c0_121 = arith.constant 0 : index
    %286 = vector.load %arg5[%c1_119, %c0_120, %c0_121] : memref<2x1x96xf32, #tpu.memory_space<vmem>>, vector<1x1x96xf32>
    %287 = vector.shape_cast %286 : vector<1x1x96xf32> to vector<1x96xf32>
    %c1_122 = arith.constant 1 : index
    %c0_123 = arith.constant 0 : index
    %c0_124 = arith.constant 0 : index
    %288 = vector.load %arg6[%c1_122, %c0_123, %c0_124] : memref<2x32x32xf32, #tpu.memory_space<vmem>>, vector<1x32x32xf32>
    %289 = vector.shape_cast %288 : vector<1x32x32xf32> to vector<32x32xf32>
    %c1_125 = arith.constant 1 : index
    %c0_126 = arith.constant 0 : index
    %c0_127 = arith.constant 0 : index
    %290 = vector.load %arg7[%c1_125, %c0_126, %c0_127] : memref<2x1x32xf32, #tpu.memory_space<vmem>>, vector<1x1x32xf32>
    %291 = vector.shape_cast %290 : vector<1x1x32xf32> to vector<1x32xf32>
    %292 = vector.extract_strided_slice %285 {offsets = [0, 0], sizes = [32, 64], strides = [1, 1]} : vector<32x96xf32> to vector<32x64xf32>
    %cst_128 = arith.constant dense<0.000000e+00> : vector<16x64xf32>
    %293 = tpu.matmul %283, %292, %cst_128 {dimension_numbers = #tpu.dot_dimension_numbers<[1], [0], [0], [1], [0, 0, 1, 1], [], []>} : vector<16x32xf32>, vector<32x64xf32>, vector<16x64xf32> -> vector<16x64xf32>
    %294 = vector.extract_strided_slice %287 {offsets = [0, 0], sizes = [1, 64], strides = [1, 1]} : vector<1x96xf32> to vector<1x64xf32>
    %295 = vector.broadcast %294 : vector<1x64xf32> to vector<16x64xf32>
    %296 = arith.addf %293, %295 : vector<16x64xf32>
    %297 = vector.extract_strided_slice %296 {offsets = [0, 0], sizes = [16, 32], strides = [1, 1]} : vector<16x64xf32> to vector<16x32xf32>
    %298 = vector.extract_strided_slice %296 {offsets = [0, 32], sizes = [16, 32], strides = [1, 1]} : vector<16x64xf32> to vector<16x32xf32>
    %299 = vector.extract_strided_slice %285 {offsets = [0, 64], sizes = [32, 32], strides = [1, 1]} : vector<32x96xf32> to vector<32x32xf32>
    %cst_129 = arith.constant dense<0.000000e+00> : vector<16x32xf32>
    %300 = tpu.matmul %282, %299, %cst_129 {dimension_numbers = #tpu.dot_dimension_numbers<[1], [0], [0], [1], [0, 0, 1, 1], [], []>} : vector<16x32xf32>, vector<32x32xf32>, vector<16x32xf32> -> vector<16x32xf32>
    %301 = vector.extract_strided_slice %287 {offsets = [0, 64], sizes = [1, 32], strides = [1, 1]} : vector<1x96xf32> to vector<1x32xf32>
    %302 = vector.broadcast %301 : vector<1x32xf32> to vector<16x32xf32>
    %303 = arith.addf %300, %302 : vector<16x32xf32>
    %304 = vector.shape_cast %297 : vector<16x32xf32> to vector<2x8x32xf32>
    %305 = vector.shape_cast %298 : vector<16x32xf32> to vector<2x8x32xf32>
    %306 = vector.shape_cast %303 : vector<16x32xf32> to vector<2x8x32xf32>
    %307 = vector.extract_strided_slice %304 {offsets = [0, 0, 0], sizes = [2, 8, 8], strides = [1, 1, 1]} : vector<2x8x32xf32> to vector<2x8x8xf32>
    %308 = vector.extract_strided_slice %305 {offsets = [0, 0, 0], sizes = [2, 8, 8], strides = [1, 1, 1]} : vector<2x8x32xf32> to vector<2x8x8xf32>
    "tpu.trace_start"() <{level = 10 : i32, message = "bqd,bkd->bqk"}> : () -> ()
    %cst_130 = arith.constant dense<0.000000e+00> : vector<2x8x8xf32>
    %309 = tpu.matmul %307, %308, %cst_130 {dimension_numbers = #tpu.dot_dimension_numbers<[2], [2], [1], [1], [0, 0, 0, 1, 1, 1], [0], [0]>} : vector<2x8x8xf32>, vector<2x8x8xf32>, vector<2x8x8xf32> -> vector<2x8x8xf32>
    "tpu.trace_stop"() : () -> ()
    %cst_131 = arith.constant dense<0xFF800000> : vector<2x8xf32>
    %310 = vector.multi_reduction <maximumf>, %309, %cst_131 [2] : vector<2x8x8xf32> to vector<2x8xf32>
    %311 = vector.shape_cast %310 : vector<2x8xf32> to vector<2x8x1xf32>
    %312 = vector.broadcast %311 : vector<2x8x1xf32> to vector<2x8x8xf32>
    %313 = arith.subf %309, %312 : vector<2x8x8xf32>
    %314 = math.exp %313 : vector<2x8x8xf32>
    %cst_132 = arith.constant dense<0.000000e+00> : vector<2x8xf32>
    %315 = vector.multi_reduction <add>, %314, %cst_132 [2] : vector<2x8x8xf32> to vector<2x8xf32>
    %316 = vector.shape_cast %315 : vector<2x8xf32> to vector<2x8x1xf32>
    %317 = tpu.reciprocal %316 {approx = true} : vector<2x8x1xf32> -> vector<2x8x1xf32>
    %318 = vector.broadcast %317 : vector<2x8x1xf32> to vector<2x8x8xf32>
    %319 = arith.mulf %314, %318 : vector<2x8x8xf32>
    %320 = vector.extract_strided_slice %306 {offsets = [0, 0, 0], sizes = [2, 8, 8], strides = [1, 1, 1]} : vector<2x8x32xf32> to vector<2x8x8xf32>
    "tpu.trace_start"() <{level = 10 : i32, message = "bqk,bkd->bqd"}> : () -> ()
    %cst_133 = arith.constant dense<0.000000e+00> : vector<2x8x8xf32>
    %321 = tpu.matmul %319, %320, %cst_133 {dimension_numbers = #tpu.dot_dimension_numbers<[2], [1], [1], [2], [0, 0, 0, 1, 1, 2], [0], [0]>} : vector<2x8x8xf32>, vector<2x8x8xf32>, vector<2x8x8xf32> -> vector<2x8x8xf32>
    "tpu.trace_stop"() : () -> ()
    %322 = vector.extract_strided_slice %304 {offsets = [0, 0, 8], sizes = [2, 8, 8], strides = [1, 1, 1]} : vector<2x8x32xf32> to vector<2x8x8xf32>
    %323 = vector.extract_strided_slice %305 {offsets = [0, 0, 8], sizes = [2, 8, 8], strides = [1, 1, 1]} : vector<2x8x32xf32> to vector<2x8x8xf32>
    "tpu.trace_start"() <{level = 10 : i32, message = "bqd,bkd->bqk"}> : () -> ()
    %cst_134 = arith.constant dense<0.000000e+00> : vector<2x8x8xf32>
    %324 = tpu.matmul %322, %323, %cst_134 {dimension_numbers = #tpu.dot_dimension_numbers<[2], [2], [1], [1], [0, 0, 0, 1, 1, 1], [0], [0]>} : vector<2x8x8xf32>, vector<2x8x8xf32>, vector<2x8x8xf32> -> vector<2x8x8xf32>
    "tpu.trace_stop"() : () -> ()
    %cst_135 = arith.constant dense<0xFF800000> : vector<2x8xf32>
    %325 = vector.multi_reduction <maximumf>, %324, %cst_135 [2] : vector<2x8x8xf32> to vector<2x8xf32>
    %326 = vector.shape_cast %325 : vector<2x8xf32> to vector<2x8x1xf32>
    %327 = vector.broadcast %326 : vector<2x8x1xf32> to vector<2x8x8xf32>
    %328 = arith.subf %324, %327 : vector<2x8x8xf32>
    %329 = math.exp %328 : vector<2x8x8xf32>
    %cst_136 = arith.constant dense<0.000000e+00> : vector<2x8xf32>
    %330 = vector.multi_reduction <add>, %329, %cst_136 [2] : vector<2x8x8xf32> to vector<2x8xf32>
    %331 = vector.shape_cast %330 : vector<2x8xf32> to vector<2x8x1xf32>
    %332 = tpu.reciprocal %331 {approx = true} : vector<2x8x1xf32> -> vector<2x8x1xf32>
    %333 = vector.broadcast %332 : vector<2x8x1xf32> to vector<2x8x8xf32>
    %334 = arith.mulf %329, %333 : vector<2x8x8xf32>
    %335 = vector.extract_strided_slice %306 {offsets = [0, 0, 8], sizes = [2, 8, 8], strides = [1, 1, 1]} : vector<2x8x32xf32> to vector<2x8x8xf32>
    "tpu.trace_start"() <{level = 10 : i32, message = "bqk,bkd->bqd"}> : () -> ()
    %cst_137 = arith.constant dense<0.000000e+00> : vector<2x8x8xf32>
    %336 = tpu.matmul %334, %335, %cst_137 {dimension_numbers = #tpu.dot_dimension_numbers<[2], [1], [1], [2], [0, 0, 0, 1, 1, 2], [0], [0]>} : vector<2x8x8xf32>, vector<2x8x8xf32>, vector<2x8x8xf32> -> vector<2x8x8xf32>
    "tpu.trace_stop"() : () -> ()
    %337 = vector.extract_strided_slice %304 {offsets = [0, 0, 16], sizes = [2, 8, 8], strides = [1, 1, 1]} : vector<2x8x32xf32> to vector<2x8x8xf32>
    %338 = vector.extract_strided_slice %305 {offsets = [0, 0, 16], sizes = [2, 8, 8], strides = [1, 1, 1]} : vector<2x8x32xf32> to vector<2x8x8xf32>
    "tpu.trace_start"() <{level = 10 : i32, message = "bqd,bkd->bqk"}> : () -> ()
    %cst_138 = arith.constant dense<0.000000e+00> : vector<2x8x8xf32>
    %339 = tpu.matmul %337, %338, %cst_138 {dimension_numbers = #tpu.dot_dimension_numbers<[2], [2], [1], [1], [0, 0, 0, 1, 1, 1], [0], [0]>} : vector<2x8x8xf32>, vector<2x8x8xf32>, vector<2x8x8xf32> -> vector<2x8x8xf32>
    "tpu.trace_stop"() : () -> ()
    %cst_139 = arith.constant dense<0xFF800000> : vector<2x8xf32>
    %340 = vector.multi_reduction <maximumf>, %339, %cst_139 [2] : vector<2x8x8xf32> to vector<2x8xf32>
    %341 = vector.shape_cast %340 : vector<2x8xf32> to vector<2x8x1xf32>
    %342 = vector.broadcast %341 : vector<2x8x1xf32> to vector<2x8x8xf32>
    %343 = arith.subf %339, %342 : vector<2x8x8xf32>
    %344 = math.exp %343 : vector<2x8x8xf32>
    %cst_140 = arith.constant dense<0.000000e+00> : vector<2x8xf32>
    %345 = vector.multi_reduction <add>, %344, %cst_140 [2] : vector<2x8x8xf32> to vector<2x8xf32>
    %346 = vector.shape_cast %345 : vector<2x8xf32> to vector<2x8x1xf32>
    %347 = tpu.reciprocal %346 {approx = true} : vector<2x8x1xf32> -> vector<2x8x1xf32>
    %348 = vector.broadcast %347 : vector<2x8x1xf32> to vector<2x8x8xf32>
    %349 = arith.mulf %344, %348 : vector<2x8x8xf32>
    %350 = vector.extract_strided_slice %306 {offsets = [0, 0, 16], sizes = [2, 8, 8], strides = [1, 1, 1]} : vector<2x8x32xf32> to vector<2x8x8xf32>
    "tpu.trace_start"() <{level = 10 : i32, message = "bqk,bkd->bqd"}> : () -> ()
    %cst_141 = arith.constant dense<0.000000e+00> : vector<2x8x8xf32>
    %351 = tpu.matmul %349, %350, %cst_141 {dimension_numbers = #tpu.dot_dimension_numbers<[2], [1], [1], [2], [0, 0, 0, 1, 1, 2], [0], [0]>} : vector<2x8x8xf32>, vector<2x8x8xf32>, vector<2x8x8xf32> -> vector<2x8x8xf32>
    "tpu.trace_stop"() : () -> ()
    %352 = vector.extract_strided_slice %304 {offsets = [0, 0, 24], sizes = [2, 8, 8], strides = [1, 1, 1]} : vector<2x8x32xf32> to vector<2x8x8xf32>
    %353 = vector.extract_strided_slice %305 {offsets = [0, 0, 24], sizes = [2, 8, 8], strides = [1, 1, 1]} : vector<2x8x32xf32> to vector<2x8x8xf32>
    "tpu.trace_start"() <{level = 10 : i32, message = "bqd,bkd->bqk"}> : () -> ()
    %cst_142 = arith.constant dense<0.000000e+00> : vector<2x8x8xf32>
    %354 = tpu.matmul %352, %353, %cst_142 {dimension_numbers = #tpu.dot_dimension_numbers<[2], [2], [1], [1], [0, 0, 0, 1, 1, 1], [0], [0]>} : vector<2x8x8xf32>, vector<2x8x8xf32>, vector<2x8x8xf32> -> vector<2x8x8xf32>
    "tpu.trace_stop"() : () -> ()
    %cst_143 = arith.constant dense<0xFF800000> : vector<2x8xf32>
    %355 = vector.multi_reduction <maximumf>, %354, %cst_143 [2] : vector<2x8x8xf32> to vector<2x8xf32>
    %356 = vector.shape_cast %355 : vector<2x8xf32> to vector<2x8x1xf32>
    %357 = vector.broadcast %356 : vector<2x8x1xf32> to vector<2x8x8xf32>
    %358 = arith.subf %354, %357 : vector<2x8x8xf32>
    %359 = math.exp %358 : vector<2x8x8xf32>
    %cst_144 = arith.constant dense<0.000000e+00> : vector<2x8xf32>
    %360 = vector.multi_reduction <add>, %359, %cst_144 [2] : vector<2x8x8xf32> to vector<2x8xf32>
    %361 = vector.shape_cast %360 : vector<2x8xf32> to vector<2x8x1xf32>
    %362 = tpu.reciprocal %361 {approx = true} : vector<2x8x1xf32> -> vector<2x8x1xf32>
    %363 = vector.broadcast %362 : vector<2x8x1xf32> to vector<2x8x8xf32>
    %364 = arith.mulf %359, %363 : vector<2x8x8xf32>
    %365 = vector.extract_strided_slice %306 {offsets = [0, 0, 24], sizes = [2, 8, 8], strides = [1, 1, 1]} : vector<2x8x32xf32> to vector<2x8x8xf32>
    "tpu.trace_start"() <{level = 10 : i32, message = "bqk,bkd->bqd"}> : () -> ()
    %cst_145 = arith.constant dense<0.000000e+00> : vector<2x8x8xf32>
    %366 = tpu.matmul %364, %365, %cst_145 {dimension_numbers = #tpu.dot_dimension_numbers<[2], [1], [1], [2], [0, 0, 0, 1, 1, 2], [0], [0]>} : vector<2x8x8xf32>, vector<2x8x8xf32>, vector<2x8x8xf32> -> vector<2x8x8xf32>
    "tpu.trace_stop"() : () -> ()
    %367 = tpu.concatenate %321, %336, %351, %366 in 2 : vector<2x8x8xf32>, vector<2x8x8xf32>, vector<2x8x8xf32>, vector<2x8x8xf32> -> vector<2x8x32xf32>
    %368 = vector.shape_cast %367 : vector<2x8x32xf32> to vector<16x32xf32>
    %cst_146 = arith.constant dense<0.000000e+00> : vector<16x32xf32>
    %369 = tpu.matmul %368, %289, %cst_146 {dimension_numbers = #tpu.dot_dimension_numbers<[1], [0], [0], [1], [0, 0, 1, 1], [], []>} : vector<16x32xf32>, vector<32x32xf32>, vector<16x32xf32> -> vector<16x32xf32>
    %370 = vector.broadcast %291 : vector<1x32xf32> to vector<16x32xf32>
    %371 = arith.addf %369, %370 : vector<16x32xf32>
    %372 = arith.addf %282, %371 : vector<16x32xf32>
    %c1_147 = arith.constant 1 : index
    %c0_148 = arith.constant 0 : index
    %c0_149 = arith.constant 0 : index
    %373 = vector.load %arg16[%c1_147, %c0_148, %c0_149] : memref<2x1x32xf32, #tpu.memory_space<vmem>>, vector<1x1x32xf32>
    %374 = vector.shape_cast %373 : vector<1x1x32xf32> to vector<1x32xf32>
    %c1_150 = arith.constant 1 : index
    %c0_151 = arith.constant 0 : index
    %c0_152 = arith.constant 0 : index
    %375 = vector.load %arg17[%c1_150, %c0_151, %c0_152] : memref<2x1x32xf32, #tpu.memory_space<vmem>>, vector<1x1x32xf32>
    %376 = vector.shape_cast %375 : vector<1x1x32xf32> to vector<1x32xf32>
    %cst_153 = arith.constant dense<0.000000e+00> : vector<16xf32>
    %377 = vector.multi_reduction <add>, %372, %cst_153 [1] : vector<16x32xf32> to vector<16xf32>
    %378 = vector.shape_cast %377 : vector<16xf32> to vector<16x1xf32>
    %cst_154 = arith.constant 3.200000e+01 : f32
    %379 = vector.broadcast %cst_154 : f32 to vector<16x1xf32>
    %380 = arith.divf %378, %379 : vector<16x1xf32>
    %381 = vector.broadcast %380 : vector<16x1xf32> to vector<16x32xf32>
    %382 = arith.subf %372, %381 : vector<16x32xf32>
    %383 = arith.mulf %382, %382 : vector<16x32xf32>
    %cst_155 = arith.constant dense<0.000000e+00> : vector<16xf32>
    %384 = vector.multi_reduction <add>, %383, %cst_155 [1] : vector<16x32xf32> to vector<16xf32>
    %385 = vector.shape_cast %384 : vector<16xf32> to vector<16x1xf32>
    %cst_156 = arith.constant 3.200000e+01 : f32
    %386 = vector.broadcast %cst_156 : f32 to vector<16x1xf32>
    %387 = arith.divf %385, %386 : vector<16x1xf32>
    %388 = vector.broadcast %380 : vector<16x1xf32> to vector<16x32xf32>
    %389 = arith.subf %372, %388 : vector<16x32xf32>
    %cst_157 = arith.constant 9.99999974E-6 : f32
    %390 = vector.broadcast %cst_157 : f32 to vector<16x1xf32>
    %391 = arith.addf %387, %390 : vector<16x1xf32>
    %392 = math.rsqrt %391 : vector<16x1xf32>
    %393 = vector.broadcast %392 : vector<16x1xf32> to vector<16x32xf32>
    %394 = arith.mulf %389, %393 : vector<16x32xf32>
    %395 = vector.broadcast %374 : vector<1x32xf32> to vector<16x32xf32>
    %396 = arith.mulf %394, %395 : vector<16x32xf32>
    %397 = vector.broadcast %376 : vector<1x32xf32> to vector<16x32xf32>
    %398 = arith.addf %396, %397 : vector<16x32xf32>
    %399 = arith.addf %398, %1 : vector<16x32xf32>
    %c1_158 = arith.constant 1 : index
    %c0_159 = arith.constant 0 : index
    %c0_160 = arith.constant 0 : index
    %400 = vector.load %arg8[%c1_158, %c0_159, %c0_160] : memref<2x32x96xf32, #tpu.memory_space<vmem>>, vector<1x32x96xf32>
    %401 = vector.shape_cast %400 : vector<1x32x96xf32> to vector<32x96xf32>
    %c1_161 = arith.constant 1 : index
    %c0_162 = arith.constant 0 : index
    %c0_163 = arith.constant 0 : index
    %402 = vector.load %arg9[%c1_161, %c0_162, %c0_163] : memref<2x1x96xf32, #tpu.memory_space<vmem>>, vector<1x1x96xf32>
    %403 = vector.shape_cast %402 : vector<1x1x96xf32> to vector<1x96xf32>
    %c1_164 = arith.constant 1 : index
    %c0_165 = arith.constant 0 : index
    %c0_166 = arith.constant 0 : index
    %404 = vector.load %arg10[%c1_164, %c0_165, %c0_166] : memref<2x32x32xf32, #tpu.memory_space<vmem>>, vector<1x32x32xf32>
    %405 = vector.shape_cast %404 : vector<1x32x32xf32> to vector<32x32xf32>
    %c1_167 = arith.constant 1 : index
    %c0_168 = arith.constant 0 : index
    %c0_169 = arith.constant 0 : index
    %406 = vector.load %arg11[%c1_167, %c0_168, %c0_169] : memref<2x1x32xf32, #tpu.memory_space<vmem>>, vector<1x1x32xf32>
    %407 = vector.shape_cast %406 : vector<1x1x32xf32> to vector<1x32xf32>
    %408 = vector.extract_strided_slice %401 {offsets = [0, 0], sizes = [32, 32], strides = [1, 1]} : vector<32x96xf32> to vector<32x32xf32>
    %cst_170 = arith.constant dense<0.000000e+00> : vector<16x32xf32>
    %409 = tpu.matmul %399, %408, %cst_170 {dimension_numbers = #tpu.dot_dimension_numbers<[1], [0], [0], [1], [0, 0, 1, 1], [], []>} : vector<16x32xf32>, vector<32x32xf32>, vector<16x32xf32> -> vector<16x32xf32>
    %410 = vector.extract_strided_slice %403 {offsets = [0, 0], sizes = [1, 32], strides = [1, 1]} : vector<1x96xf32> to vector<1x32xf32>
    %411 = vector.broadcast %410 : vector<1x32xf32> to vector<16x32xf32>
    %412 = arith.addf %409, %411 : vector<16x32xf32>
    %413 = vector.extract_strided_slice %401 {offsets = [0, 32], sizes = [32, 32], strides = [1, 1]} : vector<32x96xf32> to vector<32x32xf32>
    %cst_171 = arith.constant dense<0.000000e+00> : vector<32x32xf32>
    %414 = tpu.matmul %4, %413, %cst_171 {dimension_numbers = #tpu.dot_dimension_numbers<[1], [0], [0], [1], [0, 0, 1, 1], [], []>} : vector<32x32xf32>, vector<32x32xf32>, vector<32x32xf32> -> vector<32x32xf32>
    %415 = vector.extract_strided_slice %403 {offsets = [0, 32], sizes = [1, 32], strides = [1, 1]} : vector<1x96xf32> to vector<1x32xf32>
    %416 = vector.broadcast %415 : vector<1x32xf32> to vector<32x32xf32>
    %417 = arith.addf %414, %416 : vector<32x32xf32>
    %418 = vector.extract_strided_slice %401 {offsets = [0, 64], sizes = [32, 32], strides = [1, 1]} : vector<32x96xf32> to vector<32x32xf32>
    %cst_172 = arith.constant dense<0.000000e+00> : vector<32x32xf32>
    %419 = tpu.matmul %2, %418, %cst_172 {dimension_numbers = #tpu.dot_dimension_numbers<[1], [0], [0], [1], [0, 0, 1, 1], [], []>} : vector<32x32xf32>, vector<32x32xf32>, vector<32x32xf32> -> vector<32x32xf32>
    %420 = vector.extract_strided_slice %403 {offsets = [0, 64], sizes = [1, 32], strides = [1, 1]} : vector<1x96xf32> to vector<1x32xf32>
    %421 = vector.broadcast %420 : vector<1x32xf32> to vector<32x32xf32>
    %422 = arith.addf %419, %421 : vector<32x32xf32>
    %423 = vector.shape_cast %412 : vector<16x32xf32> to vector<2x8x32xf32>
    %424 = vector.shape_cast %417 : vector<32x32xf32> to vector<2x16x32xf32>
    %425 = vector.shape_cast %422 : vector<32x32xf32> to vector<2x16x32xf32>
    %426 = vector.extract_strided_slice %423 {offsets = [0, 0, 0], sizes = [2, 8, 8], strides = [1, 1, 1]} : vector<2x8x32xf32> to vector<2x8x8xf32>
    %427 = vector.extract_strided_slice %424 {offsets = [0, 0, 0], sizes = [2, 16, 8], strides = [1, 1, 1]} : vector<2x16x32xf32> to vector<2x16x8xf32>
    "tpu.trace_start"() <{level = 10 : i32, message = "bqd,bkd->bqk"}> : () -> ()
    %cst_173 = arith.constant dense<0.000000e+00> : vector<2x8x16xf32>
    %428 = tpu.matmul %426, %427, %cst_173 {dimension_numbers = #tpu.dot_dimension_numbers<[2], [2], [1], [1], [0, 0, 0, 1, 1, 1], [0], [0]>} : vector<2x8x8xf32>, vector<2x16x8xf32>, vector<2x8x16xf32> -> vector<2x8x16xf32>
    "tpu.trace_stop"() : () -> ()
    %cst_174 = arith.constant dense<0xFF800000> : vector<2x8xf32>
    %429 = vector.multi_reduction <maximumf>, %428, %cst_174 [2] : vector<2x8x16xf32> to vector<2x8xf32>
    %430 = vector.shape_cast %429 : vector<2x8xf32> to vector<2x8x1xf32>
    %431 = vector.broadcast %430 : vector<2x8x1xf32> to vector<2x8x16xf32>
    %432 = arith.subf %428, %431 : vector<2x8x16xf32>
    %433 = math.exp %432 : vector<2x8x16xf32>
    %cst_175 = arith.constant dense<0.000000e+00> : vector<2x8xf32>
    %434 = vector.multi_reduction <add>, %433, %cst_175 [2] : vector<2x8x16xf32> to vector<2x8xf32>
    %435 = vector.shape_cast %434 : vector<2x8xf32> to vector<2x8x1xf32>
    %436 = tpu.reciprocal %435 {approx = true} : vector<2x8x1xf32> -> vector<2x8x1xf32>
    %437 = vector.broadcast %436 : vector<2x8x1xf32> to vector<2x8x16xf32>
    %438 = arith.mulf %433, %437 : vector<2x8x16xf32>
    %439 = vector.extract_strided_slice %425 {offsets = [0, 0, 0], sizes = [2, 16, 8], strides = [1, 1, 1]} : vector<2x16x32xf32> to vector<2x16x8xf32>
    "tpu.trace_start"() <{level = 10 : i32, message = "bqk,bkd->bqd"}> : () -> ()
    %cst_176 = arith.constant dense<0.000000e+00> : vector<2x8x8xf32>
    %440 = tpu.matmul %438, %439, %cst_176 {dimension_numbers = #tpu.dot_dimension_numbers<[2], [1], [1], [2], [0, 0, 0, 1, 1, 2], [0], [0]>} : vector<2x8x16xf32>, vector<2x16x8xf32>, vector<2x8x8xf32> -> vector<2x8x8xf32>
    "tpu.trace_stop"() : () -> ()
    %441 = vector.extract_strided_slice %423 {offsets = [0, 0, 8], sizes = [2, 8, 8], strides = [1, 1, 1]} : vector<2x8x32xf32> to vector<2x8x8xf32>
    %442 = vector.extract_strided_slice %424 {offsets = [0, 0, 8], sizes = [2, 16, 8], strides = [1, 1, 1]} : vector<2x16x32xf32> to vector<2x16x8xf32>
    "tpu.trace_start"() <{level = 10 : i32, message = "bqd,bkd->bqk"}> : () -> ()
    %cst_177 = arith.constant dense<0.000000e+00> : vector<2x8x16xf32>
    %443 = tpu.matmul %441, %442, %cst_177 {dimension_numbers = #tpu.dot_dimension_numbers<[2], [2], [1], [1], [0, 0, 0, 1, 1, 1], [0], [0]>} : vector<2x8x8xf32>, vector<2x16x8xf32>, vector<2x8x16xf32> -> vector<2x8x16xf32>
    "tpu.trace_stop"() : () -> ()
    %cst_178 = arith.constant dense<0xFF800000> : vector<2x8xf32>
    %444 = vector.multi_reduction <maximumf>, %443, %cst_178 [2] : vector<2x8x16xf32> to vector<2x8xf32>
    %445 = vector.shape_cast %444 : vector<2x8xf32> to vector<2x8x1xf32>
    %446 = vector.broadcast %445 : vector<2x8x1xf32> to vector<2x8x16xf32>
    %447 = arith.subf %443, %446 : vector<2x8x16xf32>
    %448 = math.exp %447 : vector<2x8x16xf32>
    %cst_179 = arith.constant dense<0.000000e+00> : vector<2x8xf32>
    %449 = vector.multi_reduction <add>, %448, %cst_179 [2] : vector<2x8x16xf32> to vector<2x8xf32>
    %450 = vector.shape_cast %449 : vector<2x8xf32> to vector<2x8x1xf32>
    %451 = tpu.reciprocal %450 {approx = true} : vector<2x8x1xf32> -> vector<2x8x1xf32>
    %452 = vector.broadcast %451 : vector<2x8x1xf32> to vector<2x8x16xf32>
    %453 = arith.mulf %448, %452 : vector<2x8x16xf32>
    %454 = vector.extract_strided_slice %425 {offsets = [0, 0, 8], sizes = [2, 16, 8], strides = [1, 1, 1]} : vector<2x16x32xf32> to vector<2x16x8xf32>
    "tpu.trace_start"() <{level = 10 : i32, message = "bqk,bkd->bqd"}> : () -> ()
    %cst_180 = arith.constant dense<0.000000e+00> : vector<2x8x8xf32>
    %455 = tpu.matmul %453, %454, %cst_180 {dimension_numbers = #tpu.dot_dimension_numbers<[2], [1], [1], [2], [0, 0, 0, 1, 1, 2], [0], [0]>} : vector<2x8x16xf32>, vector<2x16x8xf32>, vector<2x8x8xf32> -> vector<2x8x8xf32>
    "tpu.trace_stop"() : () -> ()
    %456 = vector.extract_strided_slice %423 {offsets = [0, 0, 16], sizes = [2, 8, 8], strides = [1, 1, 1]} : vector<2x8x32xf32> to vector<2x8x8xf32>
    %457 = vector.extract_strided_slice %424 {offsets = [0, 0, 16], sizes = [2, 16, 8], strides = [1, 1, 1]} : vector<2x16x32xf32> to vector<2x16x8xf32>
    "tpu.trace_start"() <{level = 10 : i32, message = "bqd,bkd->bqk"}> : () -> ()
    %cst_181 = arith.constant dense<0.000000e+00> : vector<2x8x16xf32>
    %458 = tpu.matmul %456, %457, %cst_181 {dimension_numbers = #tpu.dot_dimension_numbers<[2], [2], [1], [1], [0, 0, 0, 1, 1, 1], [0], [0]>} : vector<2x8x8xf32>, vector<2x16x8xf32>, vector<2x8x16xf32> -> vector<2x8x16xf32>
    "tpu.trace_stop"() : () -> ()
    %cst_182 = arith.constant dense<0xFF800000> : vector<2x8xf32>
    %459 = vector.multi_reduction <maximumf>, %458, %cst_182 [2] : vector<2x8x16xf32> to vector<2x8xf32>
    %460 = vector.shape_cast %459 : vector<2x8xf32> to vector<2x8x1xf32>
    %461 = vector.broadcast %460 : vector<2x8x1xf32> to vector<2x8x16xf32>
    %462 = arith.subf %458, %461 : vector<2x8x16xf32>
    %463 = math.exp %462 : vector<2x8x16xf32>
    %cst_183 = arith.constant dense<0.000000e+00> : vector<2x8xf32>
    %464 = vector.multi_reduction <add>, %463, %cst_183 [2] : vector<2x8x16xf32> to vector<2x8xf32>
    %465 = vector.shape_cast %464 : vector<2x8xf32> to vector<2x8x1xf32>
    %466 = tpu.reciprocal %465 {approx = true} : vector<2x8x1xf32> -> vector<2x8x1xf32>
    %467 = vector.broadcast %466 : vector<2x8x1xf32> to vector<2x8x16xf32>
    %468 = arith.mulf %463, %467 : vector<2x8x16xf32>
    %469 = vector.extract_strided_slice %425 {offsets = [0, 0, 16], sizes = [2, 16, 8], strides = [1, 1, 1]} : vector<2x16x32xf32> to vector<2x16x8xf32>
    "tpu.trace_start"() <{level = 10 : i32, message = "bqk,bkd->bqd"}> : () -> ()
    %cst_184 = arith.constant dense<0.000000e+00> : vector<2x8x8xf32>
    %470 = tpu.matmul %468, %469, %cst_184 {dimension_numbers = #tpu.dot_dimension_numbers<[2], [1], [1], [2], [0, 0, 0, 1, 1, 2], [0], [0]>} : vector<2x8x16xf32>, vector<2x16x8xf32>, vector<2x8x8xf32> -> vector<2x8x8xf32>
    "tpu.trace_stop"() : () -> ()
    %471 = vector.extract_strided_slice %423 {offsets = [0, 0, 24], sizes = [2, 8, 8], strides = [1, 1, 1]} : vector<2x8x32xf32> to vector<2x8x8xf32>
    %472 = vector.extract_strided_slice %424 {offsets = [0, 0, 24], sizes = [2, 16, 8], strides = [1, 1, 1]} : vector<2x16x32xf32> to vector<2x16x8xf32>
    "tpu.trace_start"() <{level = 10 : i32, message = "bqd,bkd->bqk"}> : () -> ()
    %cst_185 = arith.constant dense<0.000000e+00> : vector<2x8x16xf32>
    %473 = tpu.matmul %471, %472, %cst_185 {dimension_numbers = #tpu.dot_dimension_numbers<[2], [2], [1], [1], [0, 0, 0, 1, 1, 1], [0], [0]>} : vector<2x8x8xf32>, vector<2x16x8xf32>, vector<2x8x16xf32> -> vector<2x8x16xf32>
    "tpu.trace_stop"() : () -> ()
    %cst_186 = arith.constant dense<0xFF800000> : vector<2x8xf32>
    %474 = vector.multi_reduction <maximumf>, %473, %cst_186 [2] : vector<2x8x16xf32> to vector<2x8xf32>
    %475 = vector.shape_cast %474 : vector<2x8xf32> to vector<2x8x1xf32>
    %476 = vector.broadcast %475 : vector<2x8x1xf32> to vector<2x8x16xf32>
    %477 = arith.subf %473, %476 : vector<2x8x16xf32>
    %478 = math.exp %477 : vector<2x8x16xf32>
    %cst_187 = arith.constant dense<0.000000e+00> : vector<2x8xf32>
    %479 = vector.multi_reduction <add>, %478, %cst_187 [2] : vector<2x8x16xf32> to vector<2x8xf32>
    %480 = vector.shape_cast %479 : vector<2x8xf32> to vector<2x8x1xf32>
    %481 = tpu.reciprocal %480 {approx = true} : vector<2x8x1xf32> -> vector<2x8x1xf32>
    %482 = vector.broadcast %481 : vector<2x8x1xf32> to vector<2x8x16xf32>
    %483 = arith.mulf %478, %482 : vector<2x8x16xf32>
    %484 = vector.extract_strided_slice %425 {offsets = [0, 0, 24], sizes = [2, 16, 8], strides = [1, 1, 1]} : vector<2x16x32xf32> to vector<2x16x8xf32>
    "tpu.trace_start"() <{level = 10 : i32, message = "bqk,bkd->bqd"}> : () -> ()
    %cst_188 = arith.constant dense<0.000000e+00> : vector<2x8x8xf32>
    %485 = tpu.matmul %483, %484, %cst_188 {dimension_numbers = #tpu.dot_dimension_numbers<[2], [1], [1], [2], [0, 0, 0, 1, 1, 2], [0], [0]>} : vector<2x8x16xf32>, vector<2x16x8xf32>, vector<2x8x8xf32> -> vector<2x8x8xf32>
    "tpu.trace_stop"() : () -> ()
    %486 = tpu.concatenate %440, %455, %470, %485 in 2 : vector<2x8x8xf32>, vector<2x8x8xf32>, vector<2x8x8xf32>, vector<2x8x8xf32> -> vector<2x8x32xf32>
    %487 = vector.shape_cast %486 : vector<2x8x32xf32> to vector<16x32xf32>
    %cst_189 = arith.constant dense<0.000000e+00> : vector<16x32xf32>
    %488 = tpu.matmul %487, %405, %cst_189 {dimension_numbers = #tpu.dot_dimension_numbers<[1], [0], [0], [1], [0, 0, 1, 1], [], []>} : vector<16x32xf32>, vector<32x32xf32>, vector<16x32xf32> -> vector<16x32xf32>
    %489 = vector.broadcast %407 : vector<1x32xf32> to vector<16x32xf32>
    %490 = arith.addf %488, %489 : vector<16x32xf32>
    %491 = arith.addf %398, %490 : vector<16x32xf32>
    %c1_190 = arith.constant 1 : index
    %c0_191 = arith.constant 0 : index
    %c0_192 = arith.constant 0 : index
    %492 = vector.load %arg18[%c1_190, %c0_191, %c0_192] : memref<2x1x32xf32, #tpu.memory_space<vmem>>, vector<1x1x32xf32>
    %493 = vector.shape_cast %492 : vector<1x1x32xf32> to vector<1x32xf32>
    %c1_193 = arith.constant 1 : index
    %c0_194 = arith.constant 0 : index
    %c0_195 = arith.constant 0 : index
    %494 = vector.load %arg19[%c1_193, %c0_194, %c0_195] : memref<2x1x32xf32, #tpu.memory_space<vmem>>, vector<1x1x32xf32>
    %495 = vector.shape_cast %494 : vector<1x1x32xf32> to vector<1x32xf32>
    %cst_196 = arith.constant dense<0.000000e+00> : vector<16xf32>
    %496 = vector.multi_reduction <add>, %491, %cst_196 [1] : vector<16x32xf32> to vector<16xf32>
    %497 = vector.shape_cast %496 : vector<16xf32> to vector<16x1xf32>
    %cst_197 = arith.constant 3.200000e+01 : f32
    %498 = vector.broadcast %cst_197 : f32 to vector<16x1xf32>
    %499 = arith.divf %497, %498 : vector<16x1xf32>
    %500 = vector.broadcast %499 : vector<16x1xf32> to vector<16x32xf32>
    %501 = arith.subf %491, %500 : vector<16x32xf32>
    %502 = arith.mulf %501, %501 : vector<16x32xf32>
    %cst_198 = arith.constant dense<0.000000e+00> : vector<16xf32>
    %503 = vector.multi_reduction <add>, %502, %cst_198 [1] : vector<16x32xf32> to vector<16xf32>
    %504 = vector.shape_cast %503 : vector<16xf32> to vector<16x1xf32>
    %cst_199 = arith.constant 3.200000e+01 : f32
    %505 = vector.broadcast %cst_199 : f32 to vector<16x1xf32>
    %506 = arith.divf %504, %505 : vector<16x1xf32>
    %507 = vector.broadcast %499 : vector<16x1xf32> to vector<16x32xf32>
    %508 = arith.subf %491, %507 : vector<16x32xf32>
    %cst_200 = arith.constant 9.99999974E-6 : f32
    %509 = vector.broadcast %cst_200 : f32 to vector<16x1xf32>
    %510 = arith.addf %506, %509 : vector<16x1xf32>
    %511 = math.rsqrt %510 : vector<16x1xf32>
    %512 = vector.broadcast %511 : vector<16x1xf32> to vector<16x32xf32>
    %513 = arith.mulf %508, %512 : vector<16x32xf32>
    %514 = vector.broadcast %493 : vector<1x32xf32> to vector<16x32xf32>
    %515 = arith.mulf %513, %514 : vector<16x32xf32>
    %516 = vector.broadcast %495 : vector<1x32xf32> to vector<16x32xf32>
    %517 = arith.addf %515, %516 : vector<16x32xf32>
    %c1_201 = arith.constant 1 : index
    %c0_202 = arith.constant 0 : index
    %c0_203 = arith.constant 0 : index
    %518 = vector.load %arg12[%c1_201, %c0_202, %c0_203] : memref<2x32x64xf32, #tpu.memory_space<vmem>>, vector<1x32x64xf32>
    %519 = vector.shape_cast %518 : vector<1x32x64xf32> to vector<32x64xf32>
    %cst_204 = arith.constant dense<0.000000e+00> : vector<16x64xf32>
    %520 = tpu.matmul %517, %519, %cst_204 {dimension_numbers = #tpu.dot_dimension_numbers<[1], [0], [0], [1], [0, 0, 1, 1], [], []>} : vector<16x32xf32>, vector<32x64xf32>, vector<16x64xf32> -> vector<16x64xf32>
    %c1_205 = arith.constant 1 : index
    %c0_206 = arith.constant 0 : index
    %c0_207 = arith.constant 0 : index
    %521 = vector.load %arg13[%c1_205, %c0_206, %c0_207] : memref<2x1x64xf32, #tpu.memory_space<vmem>>, vector<1x1x64xf32>
    %522 = vector.shape_cast %521 : vector<1x1x64xf32> to vector<1x64xf32>
    %523 = vector.broadcast %522 : vector<1x64xf32> to vector<16x64xf32>
    %524 = arith.addf %520, %523 : vector<16x64xf32>
    %cst_208 = arith.constant 0.000000e+00 : f32
    %525 = vector.broadcast %cst_208 : f32 to vector<16x64xf32>
    %526 = arith.maximumf %524, %525 : vector<16x64xf32>
    %c1_209 = arith.constant 1 : index
    %c0_210 = arith.constant 0 : index
    %c0_211 = arith.constant 0 : index
    %527 = vector.load %arg14[%c1_209, %c0_210, %c0_211] : memref<2x64x32xf32, #tpu.memory_space<vmem>>, vector<1x64x32xf32>
    %528 = vector.shape_cast %527 : vector<1x64x32xf32> to vector<64x32xf32>
    %cst_212 = arith.constant dense<0.000000e+00> : vector<16x32xf32>
    %529 = tpu.matmul %526, %528, %cst_212 {dimension_numbers = #tpu.dot_dimension_numbers<[1], [0], [0], [1], [0, 0, 1, 1], [], []>} : vector<16x64xf32>, vector<64x32xf32>, vector<16x32xf32> -> vector<16x32xf32>
    %c1_213 = arith.constant 1 : index
    %c0_214 = arith.constant 0 : index
    %c0_215 = arith.constant 0 : index
    %530 = vector.load %arg15[%c1_213, %c0_214, %c0_215] : memref<2x1x32xf32, #tpu.memory_space<vmem>>, vector<1x1x32xf32>
    %531 = vector.shape_cast %530 : vector<1x1x32xf32> to vector<1x32xf32>
    %532 = vector.broadcast %531 : vector<1x32xf32> to vector<16x32xf32>
    %533 = arith.addf %529, %532 : vector<16x32xf32>
    %534 = arith.addf %517, %533 : vector<16x32xf32>
    %c1_216 = arith.constant 1 : index
    %c0_217 = arith.constant 0 : index
    %c0_218 = arith.constant 0 : index
    %535 = vector.load %arg20[%c1_216, %c0_217, %c0_218] : memref<2x1x32xf32, #tpu.memory_space<vmem>>, vector<1x1x32xf32>
    %536 = vector.shape_cast %535 : vector<1x1x32xf32> to vector<1x32xf32>
    %c1_219 = arith.constant 1 : index
    %c0_220 = arith.constant 0 : index
    %c0_221 = arith.constant 0 : index
    %537 = vector.load %arg21[%c1_219, %c0_220, %c0_221] : memref<2x1x32xf32, #tpu.memory_space<vmem>>, vector<1x1x32xf32>
    %538 = vector.shape_cast %537 : vector<1x1x32xf32> to vector<1x32xf32>
    %cst_222 = arith.constant dense<0.000000e+00> : vector<16xf32>
    %539 = vector.multi_reduction <add>, %534, %cst_222 [1] : vector<16x32xf32> to vector<16xf32>
    %540 = vector.shape_cast %539 : vector<16xf32> to vector<16x1xf32>
    %cst_223 = arith.constant 3.200000e+01 : f32
    %541 = vector.broadcast %cst_223 : f32 to vector<16x1xf32>
    %542 = arith.divf %540, %541 : vector<16x1xf32>
    %543 = vector.broadcast %542 : vector<16x1xf32> to vector<16x32xf32>
    %544 = arith.subf %534, %543 : vector<16x32xf32>
    %545 = arith.mulf %544, %544 : vector<16x32xf32>
    %cst_224 = arith.constant dense<0.000000e+00> : vector<16xf32>
    %546 = vector.multi_reduction <add>, %545, %cst_224 [1] : vector<16x32xf32> to vector<16xf32>
    %547 = vector.shape_cast %546 : vector<16xf32> to vector<16x1xf32>
    %cst_225 = arith.constant 3.200000e+01 : f32
    %548 = vector.broadcast %cst_225 : f32 to vector<16x1xf32>
    %549 = arith.divf %547, %548 : vector<16x1xf32>
    %550 = vector.broadcast %542 : vector<16x1xf32> to vector<16x32xf32>
    %551 = arith.subf %534, %550 : vector<16x32xf32>
    %cst_226 = arith.constant 9.99999974E-6 : f32
    %552 = vector.broadcast %cst_226 : f32 to vector<16x1xf32>
    %553 = arith.addf %549, %552 : vector<16x1xf32>
    %554 = math.rsqrt %553 : vector<16x1xf32>
    %555 = vector.broadcast %554 : vector<16x1xf32> to vector<16x32xf32>
    %556 = arith.mulf %551, %555 : vector<16x32xf32>
    %557 = vector.broadcast %536 : vector<1x32xf32> to vector<16x32xf32>
    %558 = arith.mulf %556, %557 : vector<16x32xf32>
    %559 = vector.broadcast %538 : vector<1x32xf32> to vector<16x32xf32>
    %560 = arith.addf %558, %559 : vector<16x32xf32>
    %c0_227 = arith.constant 0 : index
    %c0_228 = arith.constant 0 : index
    %561 = vector.load %arg22[%c0_227, %c0_228] : memref<1x32xf32, #tpu.memory_space<vmem>>, vector<1x32xf32>
    %c0_229 = arith.constant 0 : index
    %c0_230 = arith.constant 0 : index
    %562 = vector.load %arg23[%c0_229, %c0_230] : memref<1x32xf32, #tpu.memory_space<vmem>>, vector<1x32xf32>
    %cst_231 = arith.constant dense<0.000000e+00> : vector<16xf32>
    %563 = vector.multi_reduction <add>, %560, %cst_231 [1] : vector<16x32xf32> to vector<16xf32>
    %564 = vector.shape_cast %563 : vector<16xf32> to vector<16x1xf32>
    %cst_232 = arith.constant 3.200000e+01 : f32
    %565 = vector.broadcast %cst_232 : f32 to vector<16x1xf32>
    %566 = arith.divf %564, %565 : vector<16x1xf32>
    %567 = vector.broadcast %566 : vector<16x1xf32> to vector<16x32xf32>
    %568 = arith.subf %560, %567 : vector<16x32xf32>
    %569 = arith.mulf %568, %568 : vector<16x32xf32>
    %cst_233 = arith.constant dense<0.000000e+00> : vector<16xf32>
    %570 = vector.multi_reduction <add>, %569, %cst_233 [1] : vector<16x32xf32> to vector<16xf32>
    %571 = vector.shape_cast %570 : vector<16xf32> to vector<16x1xf32>
    %cst_234 = arith.constant 3.200000e+01 : f32
    %572 = vector.broadcast %cst_234 : f32 to vector<16x1xf32>
    %573 = arith.divf %571, %572 : vector<16x1xf32>
    %574 = vector.broadcast %566 : vector<16x1xf32> to vector<16x32xf32>
    %575 = arith.subf %560, %574 : vector<16x32xf32>
    %cst_235 = arith.constant 9.99999974E-6 : f32
    %576 = vector.broadcast %cst_235 : f32 to vector<16x1xf32>
    %577 = arith.addf %573, %576 : vector<16x1xf32>
    %578 = math.rsqrt %577 : vector<16x1xf32>
    %579 = vector.broadcast %578 : vector<16x1xf32> to vector<16x32xf32>
    %580 = arith.mulf %575, %579 : vector<16x32xf32>
    %581 = vector.broadcast %561 : vector<1x32xf32> to vector<16x32xf32>
    %582 = arith.mulf %580, %581 : vector<16x32xf32>
    %583 = vector.broadcast %562 : vector<1x32xf32> to vector<16x32xf32>
    %584 = arith.addf %582, %583 : vector<16x32xf32>
    %c0_236 = arith.constant 0 : index
    %c0_237 = arith.constant 0 : index
    %585 = vector.load %arg24[%c0_236, %c0_237] : memref<16x32xf32, #tpu.memory_space<vmem>>, vector<16x32xf32>
    tpu.vector_store %arg24[%c0_236, %c0_237], %584 {strides = array<i32>} : memref<16x32xf32, #tpu.memory_space<vmem>>, vector<16x32xf32>,
    return
  }
}

</mosaic_0001>

<bundles_post_ra>
// kernel: tpu_custom_call.1
= control target key start
LH: loop header
LB: loop body
LE: loop exit
PB: predicated region body
PF: predicated region fallthrough
CT: control target
= control target key end

     0   :  { %s11009_s0 = inlined_call_operand.hbm [shape: f32[16,32], index: 0, kind: input, shape index: {}]   ;;  %s11010_s1 = inlined_call_operand.hbm [shape: f32[32,32], index: 1, kind: input, shape index: {}]   ;;  %s11011_s2 = inlined_call_operand.hbm [shape: f32[16,32], index: 2, kind: input, shape index: {}]   ;;  %s11012_s3 = inlined_call_operand.hbm [shape: f32[32,32], index: 3, kind: input, shape index: {}]   ;;  %s11013_s4 = inlined_call_operand.vmem [shape: f32[2,32,96], index: 4, kind: input, shape index: {}]   ;;  %s11014_s5 = inlined_call_operand.vmem [shape: f32[2,1,96], index: 5, kind: input, shape index: {}]   ;;  %s11015_s6 = inlined_call_operand.vmem [shape: f32[2,32,32], index: 6, kind: input, shape index: {}]   ;;  %s11016_s7 = inlined_call_operand.vmem [shape: f32[2,1,32], index: 7, kind: input, shape index: {}]   ;;  %s11017_s8 = inlined_call_operand.vmem [shape: f32[2,32,96], index: 8, kind: input, shape index: {}]   ;;  %s11018_s9 = inlined_call_operand.vmem [shape: f32[2,1,96], index: 9, kind: input, shape index: {}]   ;;  %s11019_s10 = inlined_call_operand.hbm [shape: f32[2,32,32], index: 10, kind: input, shape index: {}]   ;;  %s11020_s11 = inlined_call_operand.vmem [shape: f32[2,1,32], index: 11, kind: input, shape index: {}]   ;;  %s11021_s12 = inlined_call_operand.hbm [shape: f32[2,32,64], index: 12, kind: input, shape index: {}]   ;;  %s11022_s13 = inlined_call_operand.vmem [shape: f32[2,1,64], index: 13, kind: input, shape index: {}]   ;;  %s11023_s14 = inlined_call_operand.vmem [shape: f32[2,64,32], index: 14, kind: input, shape index: {}]   ;;  %s11024_s15 = inlined_call_operand.vmem [shape: f32[2,1,32], index: 15, kind: input, shape index: {}]   ;;  %s11025_s16 = inlined_call_operand.vmem [shape: f32[2,1,32], index: 16, kind: input, shape index: {}]   ;;  %s11026_s17 = inlined_call_operand.vmem [shape: f32[2,1,32], index: 17, kind: input, shape index: {}]   ;;  %s11027_s18 = inlined_call_operand.vmem [shape: f32[2,1,32], index: 18, kind: input, shape index: {}]   ;;  %s11028_s19 = inlined_call_operand.vmem [shape: f32[2,1,32], index: 19, kind: input, shape index: {}]   ;;  %s11029_s20 = inlined_call_operand.vmem [shape: f32[2,1,32], index: 20, kind: input, shape index: {}]   ;;  %s11030_s21 = inlined_call_operand.vmem [shape: f32[2,1,32], index: 21, kind: input, shape index: {}]   ;;  %s11031_s22 = inlined_call_operand.vmem [shape: f32[1,32], index: 22, kind: input, shape index: {}]   ;;  %s11032_s23 = inlined_call_operand.vmem [shape: f32[1,32], index: 23, kind: input, shape index: {}]   ;;  %s11033_s24 = inlined_call_operand.hbm [shape: f32[16,32], index: 24, kind: output, shape index: {}]  }
   0x1   :  { %11059 = sst [smem:[#allocation19_spill]] %s11009_s0 }
   0x2   :  { %11060 = sst [smem:[#allocation20_spill]] %s11010_s1 }
   0x3   :  { %11061 = sst [smem:[#allocation21_spill]] %s11011_s2 }
   0x4   :  { %11062 = sst [smem:[#allocation22_spill]] %s11012_s3 }
   0x5   :  { %11063 = sst [smem:[#allocation23_spill]] %s11013_s4 }
   0x6   :  { %11064 = sst [smem:[#allocation24_spill]] %s11014_s5 }
   0x7   :  { %11065 = sst [smem:[#allocation25_spill]] %s11015_s6 }
   0x8   :  { %11066 = sst [smem:[#allocation26_spill]] %s11016_s7 }
   0x9   :  { %11067 = sst [smem:[#allocation27_spill]] %s11017_s8 }
   0xa   :  { %11068 = sst [smem:[#allocation28_spill]] %s11031_s22 }
   0xb   :  { %11069 = sst [smem:[#allocation29_spill]] %s11032_s23 }
   0xc   :  { %11070 = sst [smem:[#allocation30_spill]] %s11033_s24 }
   0xd   :  { %29 = vsyncpa [#allocation3], 0 }
   0xe   :  { %30 = vsyncpa [#allocation6], 0 }
   0xf   :  { %31 = vsyncpa [#allocation9], 0 }
  0x10   :  { %32 = vsyncpa [#allocation12], 0 }
  0x11   :  { %33 = vsyncpa [#allocation4], 0  ;;  %s9678_s5 = smov [#allocation5]   ;;  %s9679_s27 = smov [#allocation8]  }
  0x12   :  { %s51_s26 = sshll.u32 %s9678_s5, 4  ;;  %s75_s28 = sshll.u32 %s9679_s27, 4  ;;  %s52_s26 = int_to_ptr.vmem [resolvable:$true] %s51_s26  ;;  %s9825_s28 = int_to_ptr.vmem [resolvable:$true] %s75_s28 }
  0x13   :  { %s11071_s29 = sld [smem:[#allocation20_spill]] }
  0x19   :  { %s9514_s0 = scalar_lea.hbm %s11071_s29, 512 }
  0x1a   :  { %p9515_p0 = scmp.ne.s32.totalorder %s11071_s29, %s9514_s0  ;;  %p9518_p1 = scmp.lt.u32.totalorder %s9514_s0, %s11071_s29 }
  0x1c   :  { %p9520_p2 = pnand %p9518_p1, %p9515_p0 }
  0x1e   :  { %9523 = shalt.err (!%p9520_p2)
}
  0x1f   :  { %s9524_s8 = scalar_lea.vmem %s52_s26, 512  ;;  %p9529_p4 = scmp.lt.s32.totalorder %s52_s26, %s52_s26 }
  0x20   :  { %p9525_p3 = scmp.ne.s32.totalorder %s52_s26, %s9524_s8  ;;  %p9530_p5 = scmp.lt.s32.totalorder %s9524_s8, %s9524_s8 }
  0x22   :  { %p9531_p6 = por %p9530_p5, %p9529_p4 }
  0x24   :  { %p9532_p7 = pnand %p9531_p6, %p9525_p3 }
  0x26   :  { %9535 = shalt.err (!%p9532_p7)
}
  0x27   :  { %s11044_s4 = smov 128   ;;  %s11055_s1 = smov 8  }
  0x28   :  { %57 = dma.hbm_to_vmem [thread:$0]  %s11071_s29, 512, %s52_s26, [#allocation6], %s11044_s4, %s11044_s4, %s11055_s1  }
  0x29   :  { %s11072_s0 = sld [smem:[#allocation22_spill]] }
  0x2f   :  { %s9536_s7 = scalar_lea.hbm %s11072_s0, 512 }
  0x30   :  { %p9537_p8 = scmp.ne.s32.totalorder %s11072_s0, %s9536_s7  ;;  %p9540_p9 = scmp.lt.u32.totalorder %s9536_s7, %s11072_s0 }
  0x32   :  { %p9542_p10 = pnand %p9540_p9, %p9537_p8 }
  0x34   :  { %9545 = shalt.err (!%p9542_p10)
}
  0x35   :  { %s9546_s24 = scalar_lea.vmem %s9825_s28, 512  ;;  %p9551_p12 = scmp.lt.s32.totalorder %s9825_s28, %s9825_s28 }
  0x36   :  { %p9547_p11 = scmp.ne.s32.totalorder %s9825_s28, %s9546_s24  ;;  %p9552_p13 = scmp.lt.s32.totalorder %s9546_s24, %s9546_s24 }
  0x38   :  { %p9553_p0 = por %p9552_p13, %p9551_p12 }
  0x3a   :  { %p9554_p1 = pnand %p9553_p0, %p9547_p11 }
  0x3c   :  { %9557 = shalt.err (!%p9554_p1)
}
  0x3d   :  { %81 = dma.hbm_to_vmem [thread:$0]  %s11072_s0, 512, %s9825_s28, [#allocation9], %s11044_s4, %s11044_s4, %s11055_s1  }
  0x3e   :  { %s9682_s5 = smov [#allocation2]   ;;  %s9683_s6 = smov [#allocation7]  }
  0x3f   :  { %s39_s27 = sshll.u32 %s9682_s5, 4  ;;  %s63_s2 = sshll.u32 %s9683_s6, 4  ;;  %s40_s27 = int_to_ptr.vmem [resolvable:$true] %s39_s27  ;;  %s9862_s2 = int_to_ptr.vmem [resolvable:$true] %s63_s2 }
  0x40   :  { %s11073_s30 = sld [smem:[#allocation19_spill]] }
  0x46   :  { %s9558_s3 = scalar_lea.hbm %s11073_s30, 256 }
  0x47   :  { %p9559_p2 = scmp.ne.s32.totalorder %s11073_s30, %s9558_s3  ;;  %p9562_p3 = scmp.lt.u32.totalorder %s9558_s3, %s11073_s30 }
  0x49   :  { %p9564_p4 = pnand %p9562_p3, %p9559_p2 }
  0x4b   :  { %9567 = shalt.err (!%p9564_p4)
}
  0x4c   :  { %s9568_s28 = scalar_lea.vmem %s40_s27, 256  ;;  %p9573_p6 = scmp.lt.s32.totalorder %s40_s27, %s40_s27 }
  0x4d   :  { %p9569_p5 = scmp.ne.s32.totalorder %s40_s27, %s9568_s28  ;;  %p9574_p7 = scmp.lt.s32.totalorder %s9568_s28, %s9568_s28 }
  0x4f   :  { %p9575_p8 = por %p9574_p7, %p9573_p6 }
  0x51   :  { %p9576_p9 = pnand %p9575_p8, %p9569_p5 }
  0x53   :  { %9579 = shalt.err (!%p9576_p9)
}
  0x54   :  { %45 = dma.hbm_to_vmem [thread:$0]  %s11073_s30, 256, %s40_s27, [#allocation3], %s11044_s4, %s11044_s4, %s11055_s1  }
  0x55   :  { %s11074_s22 = sld [smem:[#allocation21_spill]] }
  0x5b   :  { %s9580_s23 = scalar_lea.hbm %s11074_s22, 256 }
  0x5c   :  { %p9581_p10 = scmp.ne.s32.totalorder %s11074_s22, %s9580_s23  ;;  %p9584_p11 = scmp.lt.u32.totalorder %s9580_s23, %s11074_s22 }
  0x5e   :  { %p9586_p12 = pnand %p9584_p11, %p9581_p10 }
  0x60   :  { %9589 = shalt.err (!%p9586_p12)
}
  0x61   :  { %s9590_s25 = scalar_lea.vmem %s9862_s2, 256  ;;  %p9595_p0 = scmp.lt.s32.totalorder %s9862_s2, %s9862_s2 }
  0x62   :  { %p9591_p13 = scmp.ne.s32.totalorder %s9862_s2, %s9590_s25  ;;  %p9596_p1 = scmp.lt.s32.totalorder %s9590_s25, %s9590_s25 }
  0x64   :  { %p9597_p2 = por %p9596_p1, %p9595_p0 }
  0x66   :  { %p9598_p3 = pnand %p9597_p2, %p9591_p13 }
  0x68   :  { %9601 = shalt.err (!%p9598_p3)
}
  0x69   :  { %69 = dma.hbm_to_vmem [thread:$0]  %s11074_s22, 256, %s9862_s2, [#allocation6], %s11044_s4, %s11044_s4, %s11055_s1  }
  0x6a   :  { %s9684_s8 = smov [#allocation10]   ;;  %s9685_s0 = smov [#allocation11]  }
  0x6b   :  { %s99_s28 = sshll.u32 %s9684_s8, 4  ;;  %s113_s26 = sshll.u32 %s9685_s0, 4  ;;  %s100_s28 = int_to_ptr.vmem [resolvable:$true] %s99_s28  ;;  %s9899_s26 = int_to_ptr.vmem [resolvable:$true] %s113_s26 }
  0x6c   :  { %s9602_s23 = scalar_lea.hbm %s11019_s10, 1024 }
  0x6d   :  { %p9603_p4 = scmp.ne.s32.totalorder %s11019_s10, %s9602_s23  ;;  %p9606_p5 = scmp.lt.u32.totalorder %s9602_s23, %s11019_s10 }
  0x6f   :  { %p9608_p6 = pnand %p9606_p5, %p9603_p4 }
  0x71   :  { %9611 = shalt.err (!%p9608_p6)
}
  0x72   :  { %s9612_s2 = scalar_lea.vmem %s100_s28, 1024  ;;  %p9617_p8 = scmp.lt.s32.totalorder %s100_s28, %s100_s28 }
  0x73   :  { %p9613_p7 = scmp.ne.s32.totalorder %s100_s28, %s9612_s2  ;;  %p9618_p9 = scmp.lt.s32.totalorder %s9612_s2, %s9612_s2 }
  0x75   :  { %p9619_p10 = por %p9618_p9, %p9617_p8 }
  0x77   :  { %p9620_p11 = pnand %p9619_p10, %p9613_p7 }
  0x79   :  { %9623 = shalt.err (!%p9620_p11)
}
  0x7a   :  { %105 = dma.hbm_to_vmem [thread:$0]  %s11019_s10, 1024, %s100_s28, [#allocation9], %s11044_s4, %s11044_s4, %s11055_s1  }
  0x7b   :  { %s9624_s8 = scalar_lea.hbm %s11021_s12, 1024 }
  0x7c   :  { %p9625_p12 = scmp.ne.s32.totalorder %s11021_s12, %s9624_s8  ;;  %p9628_p13 = scmp.lt.u32.totalorder %s9624_s8, %s11021_s12 }
  0x7e   :  { %p9630_p0 = pnand %p9628_p13, %p9625_p12 }
  0x80   :  { %9633 = shalt.err (!%p9630_p0)
}
  0x81   :  { %s9634_s6 = scalar_lea.vmem %s9899_s26, 1024  ;;  %p9639_p2 = scmp.lt.s32.totalorder %s9899_s26, %s9899_s26 }
  0x82   :  { %p9635_p1 = scmp.ne.s32.totalorder %s9899_s26, %s9634_s6  ;;  %p9640_p3 = scmp.lt.s32.totalorder %s9634_s6, %s9634_s6 }
  0x84   :  { %p9641_p4 = por %p9640_p3, %p9639_p2 }
  0x86   :  { %p9642_p5 = pnand %p9641_p4, %p9635_p1 }
  0x88   :  { %9645 = shalt.err (!%p9642_p5)
}
  0x89   :  { %119 = dma.hbm_to_vmem [thread:$0]  %s11021_s12, 1024, %s9899_s26, [#allocation12], %s11044_s4, %s11044_s4, %s11055_s1  }
  0x8a   :  { %9668 = dma.done.wait [#allocation3], 256  }
  0x8b   :  { %9669 = vsyncadd [#allocation3], 4294967040 }
  0x8c   :  { %9670 = dma.done.wait [#allocation6], 768  }
  0x8d   :  { %9671 = vsyncadd [#allocation6], 4294966528 }
  0x8e   :  { %9672 = dma.done.wait [#allocation9], 1536  }
  0x8f   :  { %9673 = vsyncadd [#allocation9], 4294965760 }
  0x90   :  { %9674 = dma.done.wait [#allocation12], 1024  }
  0x91   :  { %9675 = vsyncadd [#allocation12], 4294966272  ;;  %s11075_s3 = sld [smem:[#allocation23_spill]]  ;;  %v9948_v5 = vld [vmem:[#allocation2] sm:$0xff]  ;;  %v9950_v6 = vld [vmem:[#allocation7] sm:$0xff]  ;;  %vm194_vm0 = vcmask 261120  }
  0x92   :  { %v176_v9 = vadd.f32 %v9950_v6, %v9948_v5  ;;  %s9686_s30 = smov 64   ;;  %v9956_v11 = vld [vmem:[#allocation2 + $0x8] sm:$0xff]  ;;  %v9958_v12 = vld [vmem:[#allocation7 + $0x8] sm:$0xff]  ;;  %v9687_v14 = vmov 0.0   ;;  %vm9688_vm1 = vmmov 0   ;;  %s11076_s29 = sld [smem:[#allocation24_spill]] }
  0x93   :  { %v177_v13 = vadd.f32 %v9958_v12, %v9956_v11  ;;  %8290 = vmatprep.subr.mxu0 %v9687_v14  ;;  %8292 = vmatprep.mubr.msk.f32.mxu0 %vm9688_vm1, %v9687_v14  ;;  %s9689_s5 = smov 96   ;;  %vm379_vm2 = vcmask 64512   ;;  %s11049_s23 = smov 88   ;;  %vm1717_vm3 = vcmask 130048   ;;  %vm1720_vm4 = vcmask 195584  }
  0x94   :  { %8276 = vmatprep.mubr.msk.f32.mxu1 %vm194_vm0, %v176_v9  ;;  %s9691_s6 = smov 120   ;;  %s11047_s10 = smov 80   ;;  %vm10240_vm5 = vmpackc.low %vm379_vm2, %vm379_vm2  ;;  %vm3818_vm6 = vcmask 523264  }
  0x95   :  { %s9693_s28 = smov 112   ;;  %s11045_s7 = smov 72  }
  0x96   :  { %s11057_s24 = smov 104   ;;  %s11053_s2 = smov 16  }
  0x97   :  { %v178_v0 = vld [vmem:[%s11075_s3] sm:$0xff]  ;;  %v179_v1 = vld [vmem:[%s11075_s3 + $0x8] sm:$0xff]  ;;  %v180_v2 = vld [vmem:[%s11075_s3 + $0x10] sm:$0xff]  ;;  %s11077_s27 = sld [smem:[#allocation25_spill]]  ;;  %s11051_s22 = smov 24  }
  0x98   :  { %v8878_v3 = vpack.c.bf16 %v179_v1, %v178_v0  ;;  %v181_v4 = vld [vmem:[%s11075_s3 + $0x18] sm:$0xff]  ;;  %v9172_v7 = vpack.i.bf16 %v179_v1, %v178_v0  ;;  %v7770_v23 = vld [vmem:[%s11076_s29] ss:$0 sm:$0xff]  ;;  %s11078_s25 = sld [smem:[#allocation26_spill]]  ;;  %s11079_s8 = sld [smem:[#allocation27_spill]] }
  0x99   :  { %v8882_v8 = vpack.c.bf16 %v181_v4, %v180_v2  ;;  %v9177_v10 = vpack.i.bf16 %v181_v4, %v180_v2  ;;  %s11082_s4 = smov 24   ;;  %s11084_s0 = smov 80  }
  0x9a   :  { %8879 = vmatprep.subr.bf16.mxu1 %v8878_v3  ;;  %9173 = vrot.lane.b32.xlu0 %v9172_v7, %s9686_s30 }
  0x9b   :  { %8881 = vmatpush3.bf16.msra.mxu1 %v8878_v3 }
  0x9c   :  { %8883 = vmatprep.subr.bf16.mxu1 %v8882_v8 }
  0x9e   :  { %9178 = vrot.lane.b32.xlu0 %v9177_v10, %s9686_s30 }
  0x9f   :  { %8885 = vmatpush3.bf16.msra.mxu1 %v8882_v8 }
  0xa2   :  { %8277 = vmatmul.mubr.msk.f32.vlgmr.msra.gmra.mrb[0].mxu1 %vm194_vm0, %v177_v13 }
  0xa3   :  { %8287 = vmatprep.mubr.msk.f32.mxu1 %vm194_vm0, %v9948_v5 }
 0x10c   :  { %v9174_v15 = vpop.permute.xlu0 %9173 }
 0x10d   :  { %v9176_v16 = vunpack.i.h.bf16 %v9174_v15  ;;  %v9175_v17 = vunpack.i.l.bf16 %v9174_v15 }
 0x10f   :  { %v8886_v18 = vpack.c.bf16 %v9176_v16, %v9175_v17 }
 0x110   :  { %v9179_v19 = vpop.permute.xlu0 %9178 }
 0x111   :  { %v9181_v20 = vunpack.i.h.bf16 %v9179_v19  ;;  %v9180_v21 = vunpack.i.l.bf16 %v9179_v19  ;;  %8887 = vmatprep.subr.bf16.mxu1 %v8886_v18 }
 0x112   :  { %8889 = vmatpush3.bf16.msra.mxu1 %v8886_v18 }
 0x113   :  { %v8890_v22 = vpack.c.bf16 %v9181_v20, %v9180_v21 }
 0x115   :  { %8891 = vmatprep.subr.bf16.mxu1 %v8890_v22 }
 0x116   :  { %8893 = vmatpush3.bf16.msra.mxu1 %v8890_v22 }
 0x117   :  { %8295 = vmatprep.subr.mxu1 %v9687_v14 }
 0x119   :  { %8288 = vmatmul.mubr.msk.f32.vlgmr.msra.gmra.mrb[2].mxu1 %vm194_vm0, %v9956_v11 }
 0x11a   :  { %8297 = vmatprep.mubr.msk.f32.mxu1 %vm9688_vm1, %v9687_v14 }
 0x175   :  { %v8278_v24 = vpop.f32.mrb[0].mxu1 }
 0x176   :  { %v267_v25 = vpop.f32.mrb[1].mxu1  ;;  %v9981_v27 = vadd.f32 %v8278_v24, %v7770_v23 }
 0x177   :  { %v9977_v26 = vadd.f32 %v7770_v23, %v267_v25 }
 0x179   :  { %377 = vrot.lane.b32.xlu1 %v9977_v26, %s9689_s5 }
 0x17d   :  { %455 = vrot.lane.b32.xlu1 %v9981_v27, %s9689_s5 }
 0x1eb   :  { %v378_v28 = vpop.permute.xlu1 %377 }
 0x1ec   :  { %8291 = vmatpush3.xpose.msk.msra.mxu0 %vm379_vm2, %v378_v28  ;;  %v8289_v29 = vpop.f32.mrb[2].mxu1 }
 0x1ed   :  { %v367_v30 = vpop.f32.mrb[3].mxu1  ;;  %8300 = vmatprep.subr.mxu0 %v9687_v14 }
 0x1ef   :  { %8293 = vmatmul.mubr.msk.f32.vlgmr.msra.gmra.mrb[0].mxu0 %vm379_vm2, %v9977_v26  ;;  %v456_v31 = vpop.permute.xlu1 %455 }
 0x1f0   :  { %8296 = vmatpush3.xpose.msk.msra.mxu1 %vm379_vm2, %v456_v31  ;;  %8302 = vmatprep.mubr.msk.f32.mxu0 %vm9688_vm1, %v9687_v14 }
 0x1f1   :  { %8305 = vmatprep.subr.mxu1 %v9687_v14 }
 0x1f3   :  { %8298 = vmatmul.mubr.msk.f32.vlgmr.msra.gmra.mrb[4].mxu1 %vm379_vm2, %v9981_v27 }
 0x1f4   :  { %8307 = vmatprep.mubr.msk.f32.mxu1 %vm9688_vm1, %v9687_v14 }
 0x2c2   :  { %v450_v32 = vpop.f32.mrb[0].mxu0 }
 0x2c3   :  { %v8294_v33 = vpop.f32.mrb[1].mxu0  ;;  %v531_v34 = vsel %vm379_vm2, %v450_v32, -inf }
 0x2c4   :  { %532 = vmax.xlane.f32.xlu0 %v531_v34 }
 0x2c6   :  { %v527_v35 = vpop.f32.mrb[4].mxu1 }
 0x2c7   :  { %v8299_v36 = vpop.f32.mrb[5].mxu1  ;;  %v534_v37 = vsel %vm379_vm2, %v527_v35, -inf }
 0x2c8   :  { %535 = vmax.xlane.f32.xlu1 %v534_v37 }
 0x2d9   :  { %292 = vrot.lane.b32.xlu1 %v7770_v23, %s9686_s30 }
 0x2dd   :  { %779 = vrot.lane.b32.xlu1 %v9981_v27, %s11049_s23 }
 0x2e1   :  { %699 = vrot.lane.b32.xlu1 %v9977_v26, %s9691_s6 }
 0x351   :  { %v533_v38 = vpop.xlane.xlu0 %532 }
 0x352   :  { %v537_v39 = vsub.f32 %v450_v32, %v533_v38 }
 0x354   :  { %v539_v42 = vmul.f32 1.442695, %v537_v39 }
 0x355   :  { %v536_v40 = vpop.xlane.xlu1 %535 }
 0x356   :  { %v538_v41 = vsub.f32 %v527_v35, %v536_v40 }
 0x358   :  { %v541_v43 = vmul.f32 1.442695, %v538_v41 }
 0x359   :  { %v293_v44 = vpop.permute.xlu1 %292 }
 0x35a   :  { %9352 = vpow2.f32 %v541_v43  ;;  %v10004_v45 = vadd.f32 %v367_v30, %v293_v44  ;;  %v10006_v46 = vadd.f32 %v8289_v29, %v293_v44 }
 0x35b   :  { %9354 = vpow2.f32 %v539_v42 }
 0x35c   :  { %8301 = vmatpush3.msra.mxu0 %v10004_v45  ;;  %8306 = vmatpush3.msra.mxu1 %v10006_v46 }
 0x35d   :  { %8315 = vmatprep.subr.mxu1 %v9687_v14  ;;  %8310 = vmatprep.subr.mxu0 %v9687_v14  ;;  %v780_v56 = vpop.permute.xlu1 %779 }
 0x361   :  { %v700_v60 = vpop.permute.xlu1 %699 }
 0x364   :  { %v9353_v47 = vpop.eup %9352 }
 0x365   :  { %v546_v48 = vsel %vm379_vm2, %v9353_v47, 0.0  ;;  %v9355_v49 = vpop.eup %9354 }
 0x366   :  { %547 = vadd.xlane.f32.xlu0 %v546_v48  ;;  %v543_v50 = vsel %vm379_vm2, %v9355_v49, 0.0 }
 0x36a   :  { %544 = vadd.xlane.f32.xlu0 %v543_v50 }
 0x380   :  { %701 = vrot.lane.b32.xlu0 %v9977_v26, %s11049_s23  ;;  %s11086_s23 = smov 104  }
 0x384   :  { %777 = vrot.lane.b32.xlu0 %v9981_v27, %s9691_s6 }
 0x3f3   :  { %v548_v51 = vpop.xlane.xlu0 %547 }
 0x3f4   :  { %9356 = vrcp.f32 %v548_v51 }
 0x3f7   :  { %v545_v52 = vpop.xlane.xlu0 %544 }
 0x3f8   :  { %9358 = vrcp.f32 %v545_v52 }
 0x3fb   :  { %v702_v54 = vpop.permute.xlu0 %701 }
 0x3fe   :  { %v9357_v53 = vpop.eup %9356 }
 0x3ff   :  { %v552_v55 = vmul.f32 %v9357_v53, %v9353_v47  ;;  %v778_v59 = vpop.permute.xlu0 %777 }
 0x401   :  { %8308 = vmatmul.mubr.msk.f32.vlgmr.msra.gmra.mrb[6].mxu1 %vm379_vm2, %v552_v55 }
 0x402   :  { %v9359_v57 = vpop.eup %9358  ;;  %8316 = vmatpush3.xpose.msk.msra.mxu1 %vm379_vm2, %v780_v56  ;;  %8317 = vmatprep.mubr.msk.f32.mxu1 %vm9688_vm1, %v9687_v14 }
 0x403   :  { %v551_v58 = vmul.f32 %v9359_v57, %v9355_v49  ;;  %8325 = vmatprep.subr.mxu1 %v9687_v14 }
 0x405   :  { %8303 = vmatmul.mubr.msk.f32.vlgmr.msra.gmra.mrb[2].mxu0 %vm379_vm2, %v551_v58  ;;  %8318 = vmatmul.mubr.msk.f32.vlgmr.msra.gmra.mrb[8].mxu1 %vm379_vm2, %v778_v59 }
 0x406   :  { %8311 = vmatpush3.xpose.msk.msra.mxu0 %vm379_vm2, %v702_v54  ;;  %8312 = vmatprep.mubr.msk.f32.mxu0 %vm9688_vm1, %v9687_v14 }
 0x407   :  { %8320 = vmatprep.subr.mxu0 %v9687_v14  ;;  %8327 = vmatprep.mubr.msk.f32.mxu1 %vm9688_vm1, %v9687_v14 }
 0x409   :  { %8313 = vmatmul.mubr.msk.f32.vlgmr.msra.gmra.mrb[4].mxu0 %vm379_vm2, %v700_v60 }
 0x40a   :  { %8322 = vmatprep.mubr.msk.f32.mxu0 %vm9688_vm1, %v9687_v14 }
 0x4d4   :  { %v10034_v61 = vpop.f32.mrb[6].mxu1 }
 0x4d5   :  { %v8309_v62 = vpop.f32.mrb[7].mxu1 }
 0x4d8   :  { %v10036_v63 = vpop.f32.mrb[2].mxu0  ;;  %v851_v0 = vpop.f32.mrb[8].mxu1 }
 0x4d9   :  { %v8304_v1 = vpop.f32.mrb[3].mxu0  ;;  %v8319_v2 = vpop.f32.mrb[9].mxu1  ;;  %v858_v3 = vsel %vm379_vm2, %v851_v0, -inf }
 0x4da   :  { %859 = vmax.xlane.f32.xlu0 %v858_v3 }
 0x4dc   :  { %v773_v4 = vpop.f32.mrb[4].mxu0 }
 0x4dd   :  { %v8314_v7 = vpop.f32.mrb[5].mxu0  ;;  %v855_v8 = vsel %vm379_vm2, %v773_v4, -inf }
 0x4de   :  { %856 = vmax.xlane.f32.xlu1 %v855_v8 }
 0x4ef   :  { %955 = vrot.lane.b32.xlu1 %v10006_v46, %s9691_s6 }
 0x4f0   :  { %878 = vrot.lane.b32.xlu0 %v10004_v45, %s9691_s6 }
 0x4f3   :  { %1033 = vrot.lane.b32.xlu1 %v9977_v26, %s11047_s10 }
 0x567   :  { %v860_v9 = vpop.xlane.xlu0 %859 }
 0x568   :  { %v862_v10 = vsub.f32 %v851_v0, %v860_v9 }
 0x56a   :  { %v865_v13 = vmul.f32 1.442695, %v862_v10 }
 0x56b   :  { %v857_v15 = vpop.xlane.xlu1 %856  ;;  %v879_v16 = vpop.permute.xlu0 %878 }
 0x56c   :  { %9360 = vpow2.f32 %v865_v13  ;;  %v861_v17 = vsub.f32 %v773_v4, %v857_v15  ;;  %8321 = vmatpush3.msra.mxu0 %v879_v16 }
 0x56d   :  { %8330 = vmatprep.subr.mxu0 %v9687_v14 }
 0x56e   :  { %v863_v18 = vmul.f32 1.442695, %v861_v17 }
 0x56f   :  { %v956_v19 = vpop.permute.xlu1 %955 }
 0x570   :  { %9362 = vpow2.f32 %v863_v18  ;;  %8326 = vmatpush3.msra.mxu1 %v956_v19 }
 0x571   :  { %8335 = vmatprep.subr.mxu1 %v9687_v14 }
 0x573   :  { %v1034_v24 = vpop.permute.xlu1 %1033 }
 0x576   :  { %v9361_v20 = vpop.eup %9360 }
 0x577   :  { %v870_v21 = vsel %vm379_vm2, %v9361_v20, 0.0 }
 0x578   :  { %871 = vadd.xlane.f32.xlu1 %v870_v21 }
 0x57a   :  { %v9363_v22 = vpop.eup %9362 }
 0x57b   :  { %v867_v23 = vsel %vm379_vm2, %v9363_v22, 0.0 }
 0x57c   :  { %868 = vadd.xlane.f32.xlu0 %v867_v23 }
 0x589   :  { %1031 = vrot.lane.b32.xlu1 %v9977_v26, %s9693_s28 }
 0x592   :  { %1111 = vrot.lane.b32.xlu0 %v9981_v27, %s11047_s10  ;;  %s11087_s10 = smov 8  }
 0x596   :  { %1109 = vrot.lane.b32.xlu0 %v9981_v27, %s9693_s28 }
 0x605   :  { %v872_v25 = vpop.xlane.xlu1 %871 }
 0x606   :  { %9364 = vrcp.f32 %v872_v25 }
 0x609   :  { %v869_v28 = vpop.xlane.xlu0 %868  ;;  %v1032_v35 = vpop.permute.xlu1 %1031 }
 0x60a   :  { %9366 = vrcp.f32 %v869_v28 }
 0x60d   :  { %v1112_v30 = vpop.permute.xlu0 %1111 }
 0x610   :  { %v9365_v29 = vpop.eup %9364 }
 0x611   :  { %v876_v31 = vmul.f32 %v9365_v29, %v9361_v20  ;;  %v1110_v34 = vpop.permute.xlu0 %1109 }
 0x613   :  { %8328 = vmatmul.mubr.msk.f32.vlgmr.msra.gmra.mrb[10].mxu1 %vm379_vm2, %v876_v31 }
 0x614   :  { %v9367_v32 = vpop.eup %9366  ;;  %8336 = vmatpush3.xpose.msk.msra.mxu1 %vm379_vm2, %v1112_v30  ;;  %8337 = vmatprep.mubr.msk.f32.mxu1 %vm9688_vm1, %v9687_v14 }
 0x615   :  { %v875_v33 = vmul.f32 %v9367_v32, %v9363_v22  ;;  %8345 = vmatprep.subr.mxu1 %v9687_v14 }
 0x617   :  { %8323 = vmatmul.mubr.msk.f32.vlgmr.msra.gmra.mrb[6].mxu0 %vm379_vm2, %v875_v33  ;;  %8338 = vmatmul.mubr.msk.f32.vlgmr.msra.gmra.mrb[12].mxu1 %vm379_vm2, %v1110_v34 }
 0x618   :  { %8331 = vmatpush3.xpose.msk.msra.mxu0 %vm379_vm2, %v1034_v24  ;;  %8332 = vmatprep.mubr.msk.f32.mxu0 %vm9688_vm1, %v9687_v14 }
 0x619   :  { %8340 = vmatprep.subr.mxu0 %v9687_v14  ;;  %8347 = vmatprep.mubr.msk.f32.mxu1 %vm9688_vm1, %v9687_v14 }
 0x61b   :  { %8333 = vmatmul.mubr.msk.f32.vlgmr.msra.gmra.mrb[8].mxu0 %vm379_vm2, %v1032_v35 }
 0x61c   :  { %8342 = vmatprep.mubr.msk.f32.mxu0 %vm9688_vm1, %v9687_v14 }
 0x6e6   :  { %v10072_v36 = vpop.f32.mrb[10].mxu1 }
 0x6e7   :  { %v8329_v37 = vpop.f32.mrb[11].mxu1 }
 0x6ea   :  { %v10074_v38 = vpop.f32.mrb[6].mxu0  ;;  %v1183_v39 = vpop.f32.mrb[12].mxu1 }
 0x6eb   :  { %v8324_v40 = vpop.f32.mrb[7].mxu0  ;;  %v8339_v41 = vpop.f32.mrb[13].mxu1  ;;  %v1190_v42 = vsel %vm379_vm2, %v1183_v39, -inf }
 0x6ec   :  { %1191 = vmax.xlane.f32.xlu0 %v1190_v42  ;;  %v185_v42 = vld [vmem:[%s11077_s27 + $0x10] sm:$0xff] }
 0x6ee   :  { %v1105_v43 = vpop.f32.mrb[8].mxu0 }
 0x6ef   :  { %v8334_v44 = vpop.f32.mrb[9].mxu0  ;;  %v1187_v47 = vsel %vm379_vm2, %v1105_v43, -inf }
 0x6f0   :  { %1188 = vmax.xlane.f32.xlu1 %v1187_v47 }
 0x701   :  { %1285 = vrot.lane.b32.xlu1 %v10006_v46, %s9693_s28 }
 0x702   :  { %1209 = vrot.lane.b32.xlu0 %v10004_v45, %s9693_s28 }
 0x705   :  { %1363 = vrot.lane.b32.xlu1 %v9977_v26, %s11045_s7 }
 0x779   :  { %v1192_v48 = vpop.xlane.xlu0 %1191 }
 0x77a   :  { %v1194_v49 = vsub.f32 %v1183_v39, %v1192_v48 }
 0x77c   :  { %v1197_v50 = vmul.f32 1.442695, %v1194_v49 }
 0x77d   :  { %v1189_v51 = vpop.xlane.xlu1 %1188  ;;  %v1210_v52 = vpop.permute.xlu0 %1209 }
 0x77e   :  { %9368 = vpow2.f32 %v1197_v50  ;;  %v1193_v53 = vsub.f32 %v1105_v43, %v1189_v51  ;;  %8341 = vmatpush3.msra.mxu0 %v1210_v52  ;;  %v186_v43 = vld [vmem:[%s11077_s27 + $0x18] sm:$0xff] }
 0x77f   :  { %8350 = vmatprep.subr.mxu0 %v9687_v14  ;;  %v8898_v44 = vpack.c.bf16 %v186_v43, %v185_v42 }
 0x780   :  { %v1195_v54 = vmul.f32 1.442695, %v1193_v53 }
 0x781   :  { %v1286_v55 = vpop.permute.xlu1 %1285 }
 0x782   :  { %9370 = vpow2.f32 %v1195_v54  ;;  %8346 = vmatpush3.msra.mxu1 %v1286_v55 }
 0x783   :  { %8355 = vmatprep.subr.mxu1 %v9687_v14 }
 0x785   :  { %v1364_v60 = vpop.permute.xlu1 %1363 }
 0x788   :  { %v9369_v56 = vpop.eup %9368 }
 0x789   :  { %v1202_v57 = vsel %vm379_vm2, %v9369_v56, 0.0 }
 0x78a   :  { %1203 = vadd.xlane.f32.xlu1 %v1202_v57 }
 0x78c   :  { %v9371_v58 = vpop.eup %9370 }
 0x78d   :  { %v1199_v59 = vsel %vm379_vm2, %v9371_v58, 0.0 }
 0x78e   :  { %1200 = vadd.xlane.f32.xlu0 %v1199_v59 }
 0x79b   :  { %1361 = vrot.lane.b32.xlu1 %v9977_v26, %s11057_s24 }
 0x7a4   :  { %1441 = vrot.lane.b32.xlu0 %v9981_v27, %s11045_s7  ;;  %s11085_s7 = smov 72  }
 0x7a8   :  { %1439 = vrot.lane.b32.xlu0 %v9981_v27, %s11057_s24 }
 0x817   :  { %v1204_v62 = vpop.xlane.xlu1 %1203 }
 0x818   :  { %9372 = vrcp.f32 %v1204_v62 }
 0x81b   :  { %v1201_v0 = vpop.xlane.xlu0 %1200  ;;  %v1362_v7 = vpop.permute.xlu1 %1361 }
 0x81c   :  { %9374 = vrcp.f32 %v1201_v0 }
 0x81f   :  { %v1442_v2 = vpop.permute.xlu0 %1441 }
 0x822   :  { %v9373_v1 = vpop.eup %9372 }
 0x823   :  { %v1208_v3 = vmul.f32 %v9373_v1, %v9369_v56  ;;  %v1440_v27 = vpop.permute.xlu0 %1439 }
 0x825   :  { %8348 = vmatmul.mubr.msk.f32.vlgmr.msra.gmra.mrb[14].mxu1 %vm379_vm2, %v1208_v3 }
 0x826   :  { %v9375_v4 = vpop.eup %9374  ;;  %8356 = vmatpush3.xpose.msk.msra.mxu1 %vm379_vm2, %v1442_v2  ;;  %8357 = vmatprep.mubr.msk.f32.mxu1 %vm9688_vm1, %v9687_v14 }
 0x827   :  { %v1207_v26 = vmul.f32 %v9375_v4, %v9371_v58  ;;  %8365 = vmatprep.subr.mxu1 %v9687_v14 }
 0x829   :  { %8343 = vmatmul.mubr.msk.f32.vlgmr.msra.gmra.mrb[10].mxu0 %vm379_vm2, %v1207_v26  ;;  %8358 = vmatmul.mubr.msk.f32.vlgmr.msra.gmra.mrb[16].mxu1 %vm379_vm2, %v1440_v27 }
 0x82a   :  { %8351 = vmatpush3.xpose.msk.msra.mxu0 %vm379_vm2, %v1364_v60  ;;  %8352 = vmatprep.mubr.msk.f32.mxu0 %vm9688_vm1, %v9687_v14 }
 0x82b   :  { %8360 = vmatprep.subr.mxu0 %v9687_v14  ;;  %8367 = vmatprep.mubr.msk.f32.mxu1 %vm9688_vm1, %v9687_v14 }
 0x82d   :  { %8353 = vmatmul.mubr.msk.f32.vlgmr.msra.gmra.mrb[12].mxu0 %vm379_vm2, %v1362_v7 }
 0x82e   :  { %8362 = vmatprep.mubr.msk.f32.mxu0 %vm9688_vm1, %v9687_v14 }
 0x8f8   :  { %v1357_v8 = vpop.f32.mrb[14].mxu1 }
 0x8f9   :  { %v8349_v9 = vpop.f32.mrb[15].mxu1 }
 0x8fc   :  { %v1281_v10 = vpop.f32.mrb[10].mxu0  ;;  %v1513_v13 = vpop.f32.mrb[16].mxu1 }
 0x8fd   :  { %v8344_v15 = vpop.f32.mrb[11].mxu0  ;;  %v8359_v16 = vpop.f32.mrb[17].mxu1  ;;  %v1520_v17 = vsel %vm379_vm2, %v1513_v13, -inf }
 0x8fe   :  { %1521 = vmax.xlane.f32.xlu0 %v1520_v17 }
 0x900   :  { %v1435_v18 = vpop.f32.mrb[12].mxu0 }
 0x901   :  { %v8354_v19 = vpop.f32.mrb[13].mxu0  ;;  %v1517_v20 = vsel %vm379_vm2, %v1435_v18, -inf }
 0x902   :  { %1518 = vmax.xlane.f32.xlu1 %v1517_v20  ;;  %v1861_v19 = vld [vmem:[%s11079_s8 + $0x10] sm:$0xff]  ;;  %v1862_v20 = vld [vmem:[%s11079_s8 + $0x18] sm:$0xff] }
 0x98b   :  { %v1522_v21 = vpop.xlane.xlu0 %1521 }
 0x98c   :  { %v1524_v22 = vsub.f32 %v1513_v13, %v1522_v21  ;;  %v9187_v21 = vpack.i.bf16 %v1862_v20, %v1861_v19 }
 0x98e   :  { %v1527_v23 = vmul.f32 1.442695, %v1524_v22  ;;  %v1859_v22 = vld [vmem:[%s11079_s8] sm:$0xff] }
 0x98f   :  { %v1519_v24 = vpop.xlane.xlu1 %1518 }
 0x990   :  { %9376 = vpow2.f32 %v1527_v23  ;;  %v1523_v25 = vsub.f32 %v1435_v18, %v1519_v24  ;;  %v1860_v23 = vld [vmem:[%s11079_s8 + $0x8] sm:$0xff] }
 0x991   :  { %v9182_v24 = vpack.i.bf16 %v1860_v23, %v1859_v22 }
 0x992   :  { %v1525_v28 = vmul.f32 1.442695, %v1523_v25  ;;  %v10181_v25 = vld [vmem:[#allocation5] sm:$0xff] }
 0x994   :  { %9378 = vpow2.f32 %v1525_v28  ;;  %v168_v28 = vld [vmem:[#allocation8] sm:$0xff] }
 0x99a   :  { %v9377_v29 = vpop.eup %9376 }
 0x99b   :  { %v1532_v30 = vsel %vm379_vm2, %v9377_v29, 0.0 }
 0x99c   :  { %1533 = vadd.xlane.f32.xlu1 %v1532_v30  ;;  %v8902_v30 = vpack.c.bf16 %v1860_v23, %v1859_v22 }
 0x99e   :  { %v9379_v31 = vpop.eup %9378 }
 0x99f   :  { %v1529_v32 = vsel %vm379_vm2, %v9379_v31, 0.0 }
 0x9a0   :  { %1530 = vadd.xlane.f32.xlu0 %v1529_v32  ;;  %v10193_v32 = vld [vmem:[%s11018_s9] ss:$0 sm:$0xff] }
 0x9ad   :  { %1615 = vrot.lane.b32.xlu1 %v10006_v46, %s11057_s24 }
 0x9b1   :  { %1693 = vrot.lane.b32.xlu1 %v10074_v38, %s11055_s1 }
 0x9b5   :  { %1701 = vrot.lane.b32.xlu1 %v1281_v10, %s11053_s2 }
 0x9b6   :  { %1539 = vrot.lane.b32.xlu0 %v10004_v45, %s11057_s24  ;;  %v183_v45 = vld [vmem:[%s11077_s27] sm:$0xff] }
 0x9ba   :  { %1695 = vrot.lane.b32.xlu0 %v10072_v36, %s11055_s1  ;;  %v184_v36 = vld [vmem:[%s11077_s27 + $0x8] sm:$0xff] }
 0x9bb   :  { %v8894_v41 = vpack.c.bf16 %v184_v36, %v183_v45 }
 0x9be   :  { %1703 = vrot.lane.b32.xlu0 %v1357_v8, %s11053_s2 }
 0xa29   :  { %v1534_v33 = vpop.xlane.xlu1 %1533 }
 0xa2a   :  { %9380 = vrcp.f32 %v1534_v33 }
 0xa2d   :  { %v1616_v34 = vpop.permute.xlu1 %1615  ;;  %v1531_v35 = vpop.xlane.xlu0 %1530 }
 0xa2e   :  { %9382 = vrcp.f32 %v1531_v35  ;;  %8366 = vmatpush3.msra.mxu1 %v1616_v34 }
 0xa2f   :  { %8903 = vmatprep.subr.bf16.mxu1 %v8902_v30 }
 0xa31   :  { %v1540_v46 = vpop.permute.xlu0 %1539  ;;  %v1694_v52 = vpop.permute.xlu1 %1693 }
 0xa32   :  { %8361 = vmatpush3.msra.mxu0 %v1540_v46  ;;  %v1715_v55 = vsel %vm379_vm2, %v10036_v63, %v1694_v52  ;;  %v7799_v63 = vld [vmem:[%s11078_s25] ss:$0 sm:$0xff] }
 0xa33   :  { %8895 = vmatprep.subr.bf16.mxu0 %v8894_v41 }
 0xa34   :  { %v9381_v37 = vpop.eup %9380 }
 0xa35   :  { %v1538_v38 = vmul.f32 %v9381_v37, %v9377_v29  ;;  %v1696_v51 = vpop.permute.xlu0 %1695  ;;  %v1702_v54 = vpop.permute.xlu1 %1701  ;;  %v10184_v29 = vadd.f32 %v168_v28, %v10181_v25 }
 0xa36   :  { %v1718_v57 = vsel %vm1717_vm3, %v1715_v55, %v1702_v54  ;;  %v1716_v58 = vsel %vm379_vm2, %v10034_v61, %v1696_v51  ;;  %v167_v55 = vld [vmem:[#allocation5 + $0x18] sm:$0xff] }
 0xa37   :  { %8368 = vmatmul.mubr.msk.f32.vlgmr.msra.gmra.mrb[18].mxu1 %vm379_vm2, %v1538_v38 }
 0xa38   :  { %v9383_v39 = vpop.eup %9382  ;;  %8905 = vmatpush3.bf16.msra.mxu1 %v8902_v30 }
 0xa39   :  { %v1537_v40 = vmul.f32 %v9383_v39, %v9379_v31  ;;  %v1704_v53 = vpop.permute.xlu0 %1703  ;;  %v8906_v31 = vpack.c.bf16 %v1862_v20, %v1861_v19 }
 0xa3a   :  { %v1719_v60 = vsel %vm1717_vm3, %v1716_v58, %v1704_v53 }
 0xa3b   :  { %8363 = vmatmul.mubr.msk.f32.vlgmr.msra.gmra.mrb[14].mxu0 %vm379_vm2, %v1537_v40  ;;  %8907 = vmatprep.subr.bf16.mxu1 %v8906_v31 }
 0xa3c   :  { %8897 = vmatpush3.bf16.msra.mxu0 %v8894_v41  ;;  %8909 = vmatpush3.bf16.msra.mxu1 %v8906_v31 }
 0xa3d   :  { %8899 = vmatprep.subr.bf16.mxu0 %v8898_v44 }
 0xa40   :  { %8901 = vmatpush3.bf16.msra.mxu0 %v8898_v44 }
 0xb0a   :  { %v1687_v47 = vpop.f32.mrb[18].mxu1 }
 0xb0b   :  { %1711 = vrot.lane.b32.xlu0 %v1687_v47, %s11051_s22  ;;  %v8369_v48 = vpop.f32.mrb[19].mxu1  ;;  %v165_v47 = vld [vmem:[#allocation5 + $0x8] sm:$0xff] }
 0xb0c   :  { %v169_v48 = vld [vmem:[#allocation8 + $0x8] sm:$0xff] }
 0xb0d   :  { %v10197_v51 = vadd.f32 %v169_v48, %v165_v47 }
 0xb0e   :  { %v1611_v49 = vpop.f32.mrb[14].mxu0 }
 0xb0f   :  { %1709 = vrot.lane.b32.xlu1 %v1611_v49, %s11051_s22  ;;  %v8364_v50 = vpop.f32.mrb[15].mxu0  ;;  %v166_v49 = vld [vmem:[#allocation5 + $0x10] sm:$0xff]  ;;  %s11088_s22 = smov 16  }
 0xb10   :  { %v170_v50 = vld [vmem:[#allocation8 + $0x10] sm:$0xff] }
 0xb11   :  { %v10199_v54 = vadd.f32 %v170_v50, %v166_v49 }
 0xb7d   :  { %v1712_v56 = vpop.permute.xlu0 %1711 }
 0xb7e   :  { %v1722_v0 = vsel %vm1720_vm4, %v1719_v60, %v1712_v56  ;;  %v171_v56 = vld [vmem:[#allocation8 + $0x18] sm:$0xff] }
 0xb81   :  { %v1710_v59 = vpop.permute.xlu1 %1709 }
 0xb82   :  { %v1721_v62 = vsel %vm1720_vm4, %v1718_v57, %v1710_v59  ;;  %v7802_v57 = vld [vmem:[%s11025_s16] ss:$0 sm:$0xff] }
 0xb83   :  { %8378 = vmatprep.mubr.msk.f32.mxu0 %vm194_vm0, %v1721_v62 }
 0xb84   :  { %8379 = vmatmul.mubr.msk.f32.vlgmr.msra.gmra.mrb[16].mxu0 %vm194_vm0, %v1722_v0  ;;  %v7803_v0 = vld [vmem:[%s11026_s17] ss:$0 sm:$0xff] }
 0xb85   :  { %8400 = vmatprep.mubr.msk.f32.mxu0 %vm194_vm0, %v10184_v29 }
 0xc57   :  { %v8380_v1 = vpop.f32.mrb[16].mxu0 }
 0xc58   :  { %v1807_v2 = vadd.f32 %v8380_v1, %v7799_v63  ;;  %v1801_v3 = vpop.f32.mrb[17].mxu0 }
 0xc59   :  { %v1802_v4 = vadd.f32 %v7799_v63, %v1801_v3  ;;  %v10211_v3 = vadd.f32 %v171_v56, %v167_v55 }
 0xc5a   :  { %v1811_v61 = vadd.f32 %v1807_v2, %v9956_v11 }
 0xc5b   :  { %v1810_v26 = vadd.f32 %v1802_v4, %v9948_v5 }
 0xc5c   :  { %v1817_v27 = vsel %vm194_vm0, %v1811_v61, 0.0 }
 0xc5d   :  { %1818 = vadd.xlane.f32.xlu0 %v1817_v27  ;;  %v1814_v7 = vsel %vm194_vm0, %v1810_v26, 0.0 }
 0xc5e   :  { %1815 = vadd.xlane.f32.xlu1 %v1814_v7 }
 0xcea   :  { %v1819_v8 = vpop.xlane.xlu0 %1818 }
 0xceb   :  { %v1822_v9 = vmul.f32 0.03125, %v1819_v8  ;;  %v1816_v10 = vpop.xlane.xlu1 %1815 }
 0xcec   :  { %v1821_v13 = vmul.f32 0.03125, %v1816_v10 }
 0xced   :  { %v10157_v15 = vsub.f32 %v1811_v61, %v1822_v9 }
 0xcee   :  { %v10159_v16 = vsub.f32 %v1810_v26, %v1821_v13 }
 0xcef   :  { %v1826_v17 = vmul.f32 %v10157_v15, %v10157_v15 }
 0xcf0   :  { %v1825_v5 = vmul.f32 %v10159_v16, %v10159_v16 }
 0xcf1   :  { %v1830_v11 = vsel %vm194_vm0, %v1826_v17, 0.0 }
 0xcf2   :  { %1831 = vadd.xlane.f32.xlu1 %v1830_v11  ;;  %v1827_v18 = vsel %vm194_vm0, %v1825_v5, 0.0 }
 0xcf3   :  { %1828 = vadd.xlane.f32.xlu0 %v1827_v18 }
 0xd03   :  { %9188 = vrot.lane.b32.xlu1 %v9187_v21, %s9689_s5 }
 0xd07   :  { %9193 = vrot.lane.b32.xlu1 %v9182_v24, %s9686_s30 }
 0xd09   :  { %9183 = vrot.lane.b32.xlu0 %v9182_v24, %s9689_s5 }
 0xd0b   :  { %1972 = vrot.lane.b32.xlu1 %v10193_v32, %s9689_s5 }
 0xd0d   :  { %9198 = vrot.lane.b32.xlu0 %v9187_v21, %s9686_s30 }
 0xd7f   :  { %v1832_v33 = vpop.xlane.xlu1 %1831 }
 0xd80   :  { %v1834_v34 = vmul.f32 0.03125, %v1832_v33  ;;  %v1829_v35 = vpop.xlane.xlu0 %1828 }
 0xd81   :  { %v1833_v46 = vmul.f32 0.03125, %v1829_v35 }
 0xd82   :  { %v1836_v37 = vadd.f32 1e-05, %v1834_v34 }
 0xd83   :  { %v1835_v38 = vadd.f32 1e-05, %v1833_v46  ;;  %v9189_v39 = vpop.permute.xlu1 %9188 }
 0xd84   :  { %9384 = vrsqrt.f32 %v1836_v37  ;;  %v9184_v40 = vpop.permute.xlu0 %9183  ;;  %v9191_v45 = vunpack.i.h.bf16 %v9189_v39  ;;  %v9190_v36 = vunpack.i.l.bf16 %v9189_v39 }
 0xd85   :  { %9386 = vrsqrt.f32 %v1835_v38  ;;  %v9186_v41 = vunpack.i.h.bf16 %v9184_v40  ;;  %v9185_v42 = vunpack.i.l.bf16 %v9184_v40 }
 0xd86   :  { %v8914_v44 = vpack.c.bf16 %v9191_v45, %v9190_v36 }
 0xd87   :  { %v8910_v43 = vpack.c.bf16 %v9186_v41, %v9185_v42  ;;  %v9194_v52 = vpop.permute.xlu1 %9193 }
 0xd88   :  { %v9196_v58 = vunpack.i.h.bf16 %v9194_v52  ;;  %v9195_v59 = vunpack.i.l.bf16 %v9194_v52  ;;  %v9199_v1 = vpop.permute.xlu0 %9198 }
 0xd89   :  { %8911 = vmatprep.subr.bf16.mxu0 %v8910_v43  ;;  %v9201_v27 = vunpack.i.h.bf16 %v9199_v1  ;;  %v9200_v7 = vunpack.i.l.bf16 %v9199_v1 }
 0xd8a   :  { %8913 = vmatpush3.bf16.msra.mxu0 %v8910_v43  ;;  %v8918_v2 = vpack.c.bf16 %v9196_v58, %v9195_v59 }
 0xd8b   :  { %8915 = vmatprep.subr.bf16.mxu0 %v8914_v44  ;;  %v8922_v13 = vpack.c.bf16 %v9201_v27, %v9200_v7 }
 0xd8c   :  { %8919 = vmatprep.subr.bf16.mxu1 %v8918_v2 }
 0xd8e   :  { %v9385_v53 = vpop.eup %9384  ;;  %8917 = vmatpush3.bf16.msra.mxu0 %v8914_v44 }
 0xd8f   :  { %v9387_v60 = vpop.eup %9386  ;;  %v1840_v62 = vmul.f32 %v9385_v53, %v10157_v15 }
 0xd90   :  { %v1839_v63 = vmul.f32 %v9387_v60, %v10159_v16 }
 0xd91   :  { %8401 = vmatmul.mubr.msk.f32.vlgmr.msra.gmra.mrb[18].mxu0 %vm194_vm0, %v10197_v51  ;;  %v1848_v4 = vmul.f32 %v7802_v57, %v1840_v62 }
 0xd92   :  { %8403 = vmatprep.mubr.msk.f32.mxu0 %vm194_vm0, %v10199_v54  ;;  %v1847_v61 = vmul.f32 %v7802_v57, %v1839_v63 }
 0xd93   :  { %v10215_v26 = vadd.f32 %v7803_v0, %v1848_v4 }
 0xd94   :  { %v10217_v8 = vadd.f32 %v7803_v0, %v1847_v61 }
 0xd95   :  { %8404 = vmatmul.mubr.msk.f32.gmra.mrb[20].mxu0 %vm194_vm0, %v10211_v3  ;;  %v1858_v10 = vadd.f32 %v10215_v26, %v9958_v12  ;;  %v1973_v12 = vpop.permute.xlu1 %1972 }
 0xd96   :  { %v1857_v9 = vadd.f32 %v10217_v8, %v9950_v6  ;;  %8424 = vmatprep.mubr.msk.f32.mxu0 %vm9688_vm1, %v9687_v14  ;;  %v9698_v6 = vmov 0.0|0.0  }
 0xd97   :  { %8926 = vmatprep.subr.bf16.mxu0 %v9698_v6 }
 0xd98   :  { %8389 = vmatprep.mubr.msk.f32.mxu1 %vm194_vm0, %v1857_v9 }
 0xd99   :  { %8390 = vmatmul.mubr.msk.f32.vlgmr.msra.gmra.mrb[20].mxu1 %vm194_vm0, %v1858_v10 }
 0xd9a   :  { %8921 = vmatpush3.bf16.msra.mxu1 %v8918_v2  ;;  %8414 = vmatprep.mubr.msk.f32.mxu1 %vm194_vm0, %v10181_v25 }
 0xd9b   :  { %8923 = vmatprep.subr.bf16.mxu1 %v8922_v13 }
 0xd9e   :  { %8925 = vmatpush3.bf16.msra.mxu1 %v8922_v13 }
 0xd9f   :  { %8930 = vmatprep.subr.bf16.mxu1 %v9698_v6 }
 0xda1   :  { %8415 = vmatmul.mubr.msk.f32.vlgmr.msra.gmra.mrb[22].mxu1 %vm194_vm0, %v165_v47 }
 0xda2   :  { %8417 = vmatprep.mubr.msk.f32.mxu1 %vm194_vm0, %v166_v49 }
 0xda5   :  { %8418 = vmatmul.mubr.msk.f32.gmra.mrb[24].mxu1 %vm194_vm0, %v167_v55 }
 0xda6   :  { %8431 = vmatprep.mubr.msk.f32.mxu1 %vm9688_vm1, %v9687_v14 }
 0xe64   :  { %v8402_v15 = vpop.f32.mrb[18].mxu0 }
 0xe65   :  { %v2059_v16 = vadd.f32 %v8402_v15, %v1973_v12  ;;  %v2053_v17 = vpop.f32.mrb[19].mxu0 }
 0xe66   :  { %v2054_v5 = vadd.f32 %v2053_v17, %v1973_v12 }
 0xe68   :  { %v8927_v18 = vpack.c.bf16 %v2059_v16, %v2054_v5  ;;  %v8405_v19 = vpop.f32.mrb[20].mxu0  ;;  %v10244_v20 = vpack.i.bf16 %v2059_v16, %v2054_v5 }
 0xe69   :  { %v2069_v21 = vadd.f32 %v8405_v19, %v1973_v12  ;;  %v2063_v22 = vpop.f32.mrb[21].mxu0 }
 0xe6a   :  { %v2064_v23 = vadd.f32 %v2063_v22, %v1973_v12  ;;  %8929 = vmatpush3.bf16.xpose.msk.msra.mxu0 %vm10240_vm5, %v8927_v18 }
 0xe6b   :  { %8934 = vmatprep.subr.bf16.mxu0 %v9698_v6 }
 0xe6c   :  { %v8931_v24 = vpack.c.bf16 %v2069_v21, %v2064_v23  ;;  %v8391_v25 = vpop.f32.mrb[20].mxu1  ;;  %v10249_v28 = vpack.i.bf16 %v2069_v21, %v2064_v23 }
 0xe6d   :  { %v1947_v30 = vpop.f32.mrb[21].mxu1  ;;  %v10262_v33 = vadd.f32 %v8391_v25, %v10193_v32 }
 0xe6e   :  { %v10252_v31 = vadd.f32 %v10193_v32, %v1947_v30  ;;  %8933 = vmatpush3.bf16.xpose.msk.msra.mxu1 %vm10240_vm5, %v8931_v24 }
 0xe6f   :  { %8937 = vmatprep.subr.bf16.mxu1 %v9698_v6 }
 0xe71   :  { %8425 = vmatmul.mubr.msk.f32.vlgmr.msra.gmra.mrb[22].mxu0 %vm379_vm2, %v10252_v31 }
 0xe72   :  { %8438 = vmatprep.mubr.msk.f32.mxu0 %vm9688_vm1, %v9687_v14 }
 0xe74   :  { %v8416_v34 = vpop.f32.mrb[22].mxu1 }
 0xe75   :  { %8432 = vmatmul.mubr.msk.f32.vlgmr.msra.gmra.mrb[26].mxu1 %vm379_vm2, %v10262_v33  ;;  %v2165_v35 = vpop.f32.mrb[23].mxu1 }
 0xe76   :  { %8445 = vmatprep.mubr.msk.f32.mxu1 %vm9688_vm1, %v9687_v14 }
 0xe78   :  { %v8419_v46 = vpop.f32.mrb[24].mxu1 }
 0xe79   :  { %v2175_v37 = vpop.f32.mrb[25].mxu1 }
 0xf44   :  { %v2259_v38 = vpop.f32.mrb[22].mxu0 }
 0xf45   :  { %v8426_v39 = vpop.f32.mrb[23].mxu0  ;;  %v2342_v40 = vsel %vm1717_vm3, %v2259_v38, -inf }
 0xf46   :  { %2343 = vmax.xlane.f32.xlu0 %v2342_v40 }
 0xf48   :  { %v2338_v45 = vpop.f32.mrb[26].mxu1 }
 0xf49   :  { %v8433_v36 = vpop.f32.mrb[27].mxu1  ;;  %v2345_v41 = vsel %vm1717_vm3, %v2338_v45, -inf }
 0xf4a   :  { %2346 = vmax.xlane.f32.xlu1 %v2345_v41 }
 0xf5b   :  { %2084 = vrot.lane.b32.xlu1 %v10193_v32, %s9686_s30 }
 0xf5f   :  { %9208 = vrot.lane.b32.xlu1 %v10249_v28, %s9691_s6 }
 0xf63   :  { %2510 = vrot.lane.b32.xlu1 %v10252_v31, %s9691_s6 }
 0xfd3   :  { %v2344_v42 = vpop.xlane.xlu0 %2343 }
 0xfd4   :  { %v2348_v43 = vsub.f32 %v2259_v38, %v2344_v42 }
 0xfd6   :  { %v2350_v48 = vmul.f32 1.442695, %v2348_v43 }
 0xfd7   :  { %v2347_v44 = vpop.xlane.xlu1 %2346 }
 0xfd8   :  { %v2349_v47 = vsub.f32 %v2338_v45, %v2347_v44 }
 0xfda   :  { %v2352_v49 = vmul.f32 1.442695, %v2349_v47 }
 0xfdb   :  { %v2085_v50 = vpop.permute.xlu1 %2084 }
 0xfdc   :  { %9388 = vpow2.f32 %v2352_v49  ;;  %v2166_v52 = vadd.f32 %v2165_v35, %v2085_v50  ;;  %v2171_v53 = vadd.f32 %v8416_v34, %v2085_v50  ;;  %v2176_v55 = vadd.f32 %v2175_v37, %v2085_v50 }
 0xfdd   :  { %9390 = vpow2.f32 %v2350_v48  ;;  %v2181_v56 = vadd.f32 %v8419_v46, %v2085_v50 }
 0xfde   :  { %v8935_v32 = vpack.c.bf16 %v2171_v53, %v2166_v52  ;;  %v10276_v57 = vpack.i.bf16 %v2171_v53, %v2166_v52 }
 0xfdf   :  { %v8938_v58 = vpack.c.bf16 %v2181_v56, %v2176_v55  ;;  %v10278_v59 = vpack.i.bf16 %v2181_v56, %v2176_v55  ;;  %v9209_v4 = vpop.permute.xlu1 %9208 }
 0xfe0   :  { %8936 = vmatpush3.bf16.msra.mxu0 %v8935_v32  ;;  %v9211_v61 = vunpack.i.h.bf16 %v9209_v4  ;;  %v9210_v27 = vunpack.i.l.bf16 %v9209_v4 }
 0xfe1   :  { %8939 = vmatpush3.bf16.msra.mxu1 %v8938_v58  ;;  %8940 = vmatprep.subr.bf16.mxu0 %v9698_v6 }
 0xfe2   :  { %8944 = vmatprep.subr.bf16.mxu1 %v9698_v6  ;;  %v8945_v13 = vpack.c.bf16 %v9211_v61, %v9210_v27 }
 0xfe3   :  { %v2511_v19 = vpop.permute.xlu1 %2510 }
 0xfe6   :  { %v9389_v60 = vpop.eup %9388 }
 0xfe7   :  { %v9391_v62 = vpop.eup %9390  ;;  %v2357_v0 = vsel %vm1717_vm3, %v9389_v60, 0.0 }
 0xfe8   :  { %2358 = vadd.xlane.f32.xlu0 %v2357_v0  ;;  %v2354_v63 = vsel %vm1717_vm3, %v9391_v62, 0.0 }
 0xfec   :  { %2355 = vadd.xlane.f32.xlu0 %v2354_v63 }
0x1002   :  { %9203 = vrot.lane.b32.xlu0 %v10244_v20, %s9691_s6 }
0x1006   :  { %2592 = vrot.lane.b32.xlu0 %v10262_v33, %s9691_s6 }
0x1075   :  { %v2359_v1 = vpop.xlane.xlu0 %2358 }
0x1076   :  { %9392 = vrcp.f32 %v2359_v1 }
0x1079   :  { %v2356_v2 = vpop.xlane.xlu0 %2355 }
0x107a   :  { %9394 = vrcp.f32 %v2356_v2 }
0x107d   :  { %v9204_v7 = vpop.permute.xlu0 %9203 }
0x107e   :  { %v9206_v12 = vunpack.i.h.bf16 %v9204_v7  ;;  %v9205_v15 = vunpack.i.l.bf16 %v9204_v7 }
0x1080   :  { %v9393_v9 = vpop.eup %9392  ;;  %v8941_v5 = vpack.c.bf16 %v9206_v12, %v9205_v15 }
0x1081   :  { %v2363_v10 = vmul.f32 %v9393_v9, %v9389_v60  ;;  %v2593_v18 = vpop.permute.xlu0 %2592 }
0x1083   :  { %8446 = vmatmul.mubr.msk.f32.vlgmr.msra.gmra.mrb[28].mxu1 %vm1717_vm3, %v2363_v10 }
0x1084   :  { %v9395_v16 = vpop.eup %9394  ;;  %8947 = vmatpush3.bf16.xpose.msk.msra.mxu1 %vm10240_vm5, %v8945_v13  ;;  %8459 = vmatprep.mubr.msk.f32.mxu1 %vm9688_vm1, %v9687_v14 }
0x1085   :  { %v2362_v17 = vmul.f32 %v9395_v16, %v9391_v62  ;;  %8951 = vmatprep.subr.bf16.mxu1 %v9698_v6 }
0x1087   :  { %8439 = vmatmul.mubr.msk.f32.vlgmr.msra.gmra.mrb[24].mxu0 %vm1717_vm3, %v2362_v17 }
0x1088   :  { %8943 = vmatpush3.bf16.xpose.msk.msra.mxu0 %vm10240_vm5, %v8941_v5  ;;  %8452 = vmatprep.mubr.msk.f32.mxu0 %vm9688_vm1, %v9687_v14 }
0x1089   :  { %8948 = vmatprep.subr.bf16.mxu0 %v9698_v6 }
0x108b   :  { %8460 = vmatmul.mubr.msk.f32.vlgmr.msra.gmra.mrb[30].mxu1 %vm379_vm2, %v2593_v18 }
0x108c   :  { %8473 = vmatprep.mubr.msk.f32.mxu1 %vm9688_vm1, %v9687_v14 }
0x108f   :  { %8453 = vmatmul.mubr.msk.f32.vlgmr.msra.gmra.mrb[26].mxu0 %vm379_vm2, %v2511_v19 }
0x1090   :  { %8466 = vmatprep.mubr.msk.f32.mxu0 %vm9688_vm1, %v9687_v14 }
0x1156   :  { %v10306_v21 = vpop.f32.mrb[28].mxu1 }
0x1157   :  { %v8447_v22 = vpop.f32.mrb[29].mxu1 }
0x115a   :  { %v10308_v23 = vpop.f32.mrb[24].mxu0 }
0x115b   :  { %v8440_v24 = vpop.f32.mrb[25].mxu0 }
0x115e   :  { %v2670_v25 = vpop.f32.mrb[30].mxu1 }
0x115f   :  { %v8461_v30 = vpop.f32.mrb[31].mxu1  ;;  %v2677_v34 = vsel %vm1717_vm3, %v2670_v25, -inf }
0x1160   :  { %2678 = vmax.xlane.f32.xlu0 %v2677_v34 }
0x1162   :  { %v2588_v35 = vpop.f32.mrb[26].mxu0 }
0x1163   :  { %v8454_v46 = vpop.f32.mrb[27].mxu0  ;;  %v2674_v37 = vsel %vm1717_vm3, %v2588_v35, -inf }
0x1164   :  { %2675 = vmax.xlane.f32.xlu1 %v2674_v37 }
0x1175   :  { %9218 = vrot.lane.b32.xlu1 %v10278_v59, %s9691_s6 }
0x1176   :  { %9213 = vrot.lane.b32.xlu0 %v10276_v57, %s9691_s6 }
0x1179   :  { %9223 = vrot.lane.b32.xlu1 %v10244_v20, %s9693_s28 }
0x11ed   :  { %v2679_v38 = vpop.xlane.xlu0 %2678 }
0x11ee   :  { %v2681_v39 = vsub.f32 %v2670_v25, %v2679_v38 }
0x11f0   :  { %v2684_v40 = vmul.f32 1.442695, %v2681_v39 }
0x11f1   :  { %v9214_v45 = vpop.permute.xlu0 %9213  ;;  %v2676_v36 = vpop.xlane.xlu1 %2675 }
0x11f2   :  { %9396 = vpow2.f32 %v2684_v40  ;;  %v9216_v41 = vunpack.i.h.bf16 %v9214_v45  ;;  %v9215_v42 = vunpack.i.l.bf16 %v9214_v45  ;;  %v2680_v43 = vsub.f32 %v2588_v35, %v2676_v36 }
0x11f4   :  { %v8949_v44 = vpack.c.bf16 %v9216_v41, %v9215_v42  ;;  %v2682_v47 = vmul.f32 1.442695, %v2680_v43 }
0x11f5   :  { %v9219_v48 = vpop.permute.xlu1 %9218 }
0x11f6   :  { %9398 = vpow2.f32 %v2682_v47  ;;  %v9221_v49 = vunpack.i.h.bf16 %v9219_v48  ;;  %v9220_v50 = vunpack.i.l.bf16 %v9219_v48  ;;  %8950 = vmatpush3.bf16.msra.mxu0 %v8949_v44 }
0x11f7   :  { %8954 = vmatprep.subr.bf16.mxu0 %v9698_v6 }
0x11f8   :  { %v8952_v52 = vpack.c.bf16 %v9221_v49, %v9220_v50 }
0x11f9   :  { %v9224_v58 = vpop.permute.xlu1 %9223 }
0x11fa   :  { %8953 = vmatpush3.bf16.msra.mxu1 %v8952_v52  ;;  %v9226_v27 = vunpack.i.h.bf16 %v9224_v58  ;;  %v9225_v7 = vunpack.i.l.bf16 %v9224_v58 }
0x11fb   :  { %8958 = vmatprep.subr.bf16.mxu1 %v9698_v6 }
0x11fc   :  { %v9397_v53 = vpop.eup %9396  ;;  %v8955_v13 = vpack.c.bf16 %v9226_v27, %v9225_v7 }
0x11fd   :  { %v2689_v55 = vsel %vm1717_vm3, %v9397_v53, 0.0 }
0x11fe   :  { %2690 = vadd.xlane.f32.xlu1 %v2689_v55 }
0x1200   :  { %v9399_v56 = vpop.eup %9398 }
0x1201   :  { %v2686_v32 = vsel %vm1717_vm3, %v9399_v56, 0.0 }
0x1202   :  { %2687 = vadd.xlane.f32.xlu0 %v2686_v32 }
0x120f   :  { %2858 = vrot.lane.b32.xlu1 %v10252_v31, %s9693_s28 }
0x1218   :  { %9228 = vrot.lane.b32.xlu0 %v10249_v28, %s9693_s28 }
0x121c   :  { %2940 = vrot.lane.b32.xlu0 %v10262_v33, %s9693_s28 }
0x128b   :  { %v2691_v60 = vpop.xlane.xlu1 %2690 }
0x128c   :  { %9400 = vrcp.f32 %v2691_v60 }
0x128f   :  { %v2688_v62 = vpop.xlane.xlu0 %2687  ;;  %v2859_v15 = vpop.permute.xlu1 %2858 }
0x1290   :  { %9402 = vrcp.f32 %v2688_v62 }
0x1293   :  { %v9229_v0 = vpop.permute.xlu0 %9228 }
0x1294   :  { %v9231_v63 = vunpack.i.h.bf16 %v9229_v0  ;;  %v9230_v1 = vunpack.i.l.bf16 %v9229_v0 }
0x1296   :  { %v9401_v2 = vpop.eup %9400  ;;  %v8959_v4 = vpack.c.bf16 %v9231_v63, %v9230_v1 }
0x1297   :  { %v2695_v61 = vmul.f32 %v9401_v2, %v9397_v53  ;;  %v2941_v12 = vpop.permute.xlu0 %2940 }
0x1299   :  { %8474 = vmatmul.mubr.msk.f32.vlgmr.msra.gmra.mrb[32].mxu1 %vm1717_vm3, %v2695_v61 }
0x129a   :  { %v9403_v9 = vpop.eup %9402  ;;  %8961 = vmatpush3.bf16.xpose.msk.msra.mxu1 %vm10240_vm5, %v8959_v4  ;;  %8487 = vmatprep.mubr.msk.f32.mxu1 %vm9688_vm1, %v9687_v14 }
0x129b   :  { %v2694_v10 = vmul.f32 %v9403_v9, %v9399_v56  ;;  %8965 = vmatprep.subr.bf16.mxu1 %v9698_v6 }
0x129d   :  { %8467 = vmatmul.mubr.msk.f32.vlgmr.msra.gmra.mrb[28].mxu0 %vm1717_vm3, %v2694_v10 }
0x129e   :  { %8957 = vmatpush3.bf16.xpose.msk.msra.mxu0 %vm10240_vm5, %v8955_v13  ;;  %8480 = vmatprep.mubr.msk.f32.mxu0 %vm9688_vm1, %v9687_v14 }
0x129f   :  { %8962 = vmatprep.subr.bf16.mxu0 %v9698_v6 }
0x12a1   :  { %8488 = vmatmul.mubr.msk.f32.vlgmr.msra.gmra.mrb[34].mxu1 %vm379_vm2, %v2941_v12 }
0x12a2   :  { %8501 = vmatprep.mubr.msk.f32.mxu1 %vm9688_vm1, %v9687_v14 }
0x12a5   :  { %8481 = vmatmul.mubr.msk.f32.vlgmr.msra.gmra.mrb[30].mxu0 %vm379_vm2, %v2859_v15 }
0x12a6   :  { %8494 = vmatprep.mubr.msk.f32.mxu0 %vm9688_vm1, %v9687_v14 }
0x136c   :  { %v10346_v16 = vpop.f32.mrb[32].mxu1 }
0x136d   :  { %v8475_v17 = vpop.f32.mrb[33].mxu1 }
0x1370   :  { %v10348_v5 = vpop.f32.mrb[28].mxu0 }
0x1371   :  { %v8468_v18 = vpop.f32.mrb[29].mxu0 }
0x1374   :  { %v3018_v19 = vpop.f32.mrb[34].mxu1 }
0x1375   :  { %v8489_v22 = vpop.f32.mrb[35].mxu1  ;;  %v3025_v24 = vsel %vm1717_vm3, %v3018_v19, -inf }
0x1376   :  { %3026 = vmax.xlane.f32.xlu0 %v3025_v24 }
0x1378   :  { %v2936_v25 = vpop.f32.mrb[30].mxu0 }
0x1379   :  { %v8482_v30 = vpop.f32.mrb[31].mxu0  ;;  %v3022_v34 = vsel %vm1717_vm3, %v2936_v25, -inf }
0x137a   :  { %3023 = vmax.xlane.f32.xlu1 %v3022_v34 }
0x138b   :  { %9238 = vrot.lane.b32.xlu1 %v10278_v59, %s9693_s28 }
0x138c   :  { %9233 = vrot.lane.b32.xlu0 %v10276_v57, %s9693_s28 }
0x138f   :  { %9243 = vrot.lane.b32.xlu1 %v10244_v20, %s11057_s24 }
0x1403   :  { %v3027_v35 = vpop.xlane.xlu0 %3026 }
0x1404   :  { %v3029_v46 = vsub.f32 %v3018_v19, %v3027_v35 }
0x1406   :  { %v3032_v37 = vmul.f32 1.442695, %v3029_v46 }
0x1407   :  { %v9234_v38 = vpop.permute.xlu0 %9233  ;;  %v3024_v39 = vpop.xlane.xlu1 %3023 }
0x1408   :  { %9404 = vpow2.f32 %v3032_v37  ;;  %v9236_v40 = vunpack.i.h.bf16 %v9234_v38  ;;  %v9235_v45 = vunpack.i.l.bf16 %v9234_v38  ;;  %v3028_v36 = vsub.f32 %v2936_v25, %v3024_v39 }
0x140a   :  { %v8963_v41 = vpack.c.bf16 %v9236_v40, %v9235_v45  ;;  %v3030_v42 = vmul.f32 1.442695, %v3028_v36 }
0x140b   :  { %v9239_v43 = vpop.permute.xlu1 %9238 }
0x140c   :  { %9406 = vpow2.f32 %v3030_v42  ;;  %v9241_v44 = vunpack.i.h.bf16 %v9239_v43  ;;  %v9240_v47 = vunpack.i.l.bf16 %v9239_v43  ;;  %8964 = vmatpush3.bf16.msra.mxu0 %v8963_v41 }
0x140d   :  { %8968 = vmatprep.subr.bf16.mxu0 %v9698_v6 }
0x140e   :  { %v8966_v48 = vpack.c.bf16 %v9241_v44, %v9240_v47 }
0x140f   :  { %v9244_v53 = vpop.permute.xlu1 %9243 }
0x1410   :  { %8967 = vmatpush3.bf16.msra.mxu1 %v8966_v48  ;;  %v9246_v1 = vunpack.i.h.bf16 %v9244_v53  ;;  %v9245_v2 = vunpack.i.l.bf16 %v9244_v53  ;;  %v1866_v53 = vld [vmem:[#allocation10 + $0x10] sm:$0xff] }
0x1411   :  { %8972 = vmatprep.subr.bf16.mxu1 %v9698_v6 }
0x1412   :  { %v9405_v20 = vpop.eup %9404 }
0x1413   :  { %v3037_v49 = vsel %vm1717_vm3, %v9405_v20, 0.0 }
0x1414   :  { %3038 = vadd.xlane.f32.xlu1 %v3037_v49  ;;  %v1864_v49 = vld [vmem:[#allocation10] sm:$0xff] }
0x1416   :  { %v9407_v50 = vpop.eup %9406 }
0x1417   :  { %v3034_v52 = vsel %vm1717_vm3, %v9407_v50, 0.0 }
0x1418   :  { %3035 = vadd.xlane.f32.xlu0 %v3034_v52 }
0x1425   :  { %3202 = vrot.lane.b32.xlu1 %v10252_v31, %s11057_s24 }
0x142e   :  { %9248 = vrot.lane.b32.xlu0 %v10249_v28, %s11057_s24 }
0x1432   :  { %3284 = vrot.lane.b32.xlu0 %v10262_v33, %s11057_s24  ;;  %v8969_v33 = vpack.c.bf16 %v9246_v1, %v9245_v2 }
0x14a1   :  { %v3039_v55 = vpop.xlane.xlu1 %3038 }
0x14a2   :  { %9408 = vrcp.f32 %v3039_v55  ;;  %v1867_v55 = vld [vmem:[#allocation10 + $0x18] sm:$0xff] }
0x14a5   :  { %v3036_v56 = vpop.xlane.xlu0 %3035  ;;  %v3203_v61 = vpop.permute.xlu1 %3202 }
0x14a6   :  { %9410 = vrcp.f32 %v3036_v56  ;;  %v8986_v56 = vpack.c.bf16 %v1867_v55, %v1866_v53 }
0x14a9   :  { %v9249_v32 = vpop.permute.xlu0 %9248 }
0x14aa   :  { %v9251_v58 = vunpack.i.h.bf16 %v9249_v32  ;;  %v9250_v60 = vunpack.i.l.bf16 %v9249_v32 }
0x14ac   :  { %v9409_v62 = vpop.eup %9408  ;;  %v8973_v0 = vpack.c.bf16 %v9251_v58, %v9250_v60 }
0x14ad   :  { %v3043_v63 = vmul.f32 %v9409_v62, %v9405_v20  ;;  %v3285_v4 = vpop.permute.xlu0 %3284 }
0x14af   :  { %8502 = vmatmul.mubr.msk.f32.vlgmr.msra.gmra.mrb[36].mxu1 %vm1717_vm3, %v3043_v63 }
0x14b0   :  { %v9411_v31 = vpop.eup %9410  ;;  %8975 = vmatpush3.bf16.xpose.msk.msra.mxu1 %vm10240_vm5, %v8973_v0  ;;  %8515 = vmatprep.mubr.msk.f32.mxu1 %vm9688_vm1, %v9687_v14 }
0x14b1   :  { %v3042_v28 = vmul.f32 %v9411_v31, %v9407_v50  ;;  %8979 = vmatprep.subr.bf16.mxu1 %v9698_v6  ;;  %v1865_v50 = vld [vmem:[#allocation10 + $0x8] sm:$0xff] }
0x14b2   :  { %v8982_v52 = vpack.c.bf16 %v1865_v50, %v1864_v49 }
0x14b3   :  { %8495 = vmatmul.mubr.msk.f32.vlgmr.msra.gmra.mrb[32].mxu0 %vm1717_vm3, %v3042_v28 }
0x14b4   :  { %8971 = vmatpush3.bf16.xpose.msk.msra.mxu0 %vm10240_vm5, %v8969_v33  ;;  %8508 = vmatprep.mubr.msk.f32.mxu0 %vm9688_vm1, %v9687_v14 }
0x14b5   :  { %8976 = vmatprep.subr.bf16.mxu0 %v9698_v6 }
0x14b7   :  { %8516 = vmatmul.mubr.msk.f32.vlgmr.msra.gmra.mrb[38].mxu1 %vm379_vm2, %v3285_v4 }
0x14b8   :  { %8529 = vmatprep.mubr.msk.f32.mxu1 %vm9688_vm1, %v9687_v14 }
0x14bb   :  { %8509 = vmatmul.mubr.msk.f32.vlgmr.msra.gmra.mrb[34].mxu0 %vm379_vm2, %v3203_v61 }
0x14bc   :  { %8522 = vmatprep.mubr.msk.f32.mxu0 %vm9688_vm1, %v9687_v14 }
0x1582   :  { %v3198_v27 = vpop.f32.mrb[36].mxu1 }
0x1583   :  { %v8503_v7 = vpop.f32.mrb[37].mxu1 }
0x1586   :  { %v3119_v9 = vpop.f32.mrb[32].mxu0 }
0x1587   :  { %v8496_v10 = vpop.f32.mrb[33].mxu0 }
0x158a   :  { %v3362_v13 = vpop.f32.mrb[38].mxu1 }
0x158b   :  { %v8517_v12 = vpop.f32.mrb[39].mxu1  ;;  %v3369_v15 = vsel %vm1717_vm3, %v3362_v13, -inf }
0x158c   :  { %3370 = vmax.xlane.f32.xlu0 %v3369_v15 }
0x158e   :  { %v3280_v17 = vpop.f32.mrb[34].mxu0 }
0x158f   :  { %v8510_v18 = vpop.f32.mrb[35].mxu0  ;;  %v3366_v19 = vsel %vm1717_vm3, %v3280_v17, -inf }
0x1590   :  { %3367 = vmax.xlane.f32.xlu1 %v3366_v19 }
0x1619   :  { %v3371_v22 = vpop.xlane.xlu0 %3370 }
0x161a   :  { %v3373_v24 = vsub.f32 %v3362_v13, %v3371_v22 }
0x161c   :  { %v3376_v25 = vmul.f32 1.442695, %v3373_v24 }
0x161d   :  { %v3368_v30 = vpop.xlane.xlu1 %3367 }
0x161e   :  { %9412 = vpow2.f32 %v3376_v25  ;;  %v3372_v34 = vsub.f32 %v3280_v17, %v3368_v30 }
0x1620   :  { %v3374_v35 = vmul.f32 1.442695, %v3372_v34 }
0x1622   :  { %9414 = vpow2.f32 %v3374_v35 }
0x1628   :  { %v9413_v46 = vpop.eup %9412 }
0x1629   :  { %v3381_v37 = vsel %vm1717_vm3, %v9413_v46, 0.0 }
0x162a   :  { %3382 = vadd.xlane.f32.xlu1 %v3381_v37 }
0x162c   :  { %v9415_v38 = vpop.eup %9414 }
0x162d   :  { %v3378_v39 = vsel %vm1717_vm3, %v9415_v38, 0.0 }
0x162e   :  { %3379 = vadd.xlane.f32.xlu0 %v3378_v39  ;;  %v3710_v39 = vld [vmem:[#allocation11 + $0x8] sm:$0xff] }
0x163b   :  { %9258 = vrot.lane.b32.xlu1 %v10278_v59, %s11057_s24 }
0x163f   :  { %3548 = vrot.lane.b32.xlu1 %v10348_v5, %s11055_s1 }
0x1643   :  { %3556 = vrot.lane.b32.xlu1 %v3119_v9, %s11053_s2 }
0x1644   :  { %9253 = vrot.lane.b32.xlu0 %v10276_v57, %s11057_s24 }
0x1648   :  { %3550 = vrot.lane.b32.xlu0 %v10346_v16, %s11055_s1 }
0x164c   :  { %3558 = vrot.lane.b32.xlu0 %v3198_v27, %s11053_s2 }
0x16b7   :  { %v3383_v40 = vpop.xlane.xlu1 %3382 }
0x16b8   :  { %9416 = vrcp.f32 %v3383_v40  ;;  %v3711_v40 = vld [vmem:[#allocation11 + $0x10] sm:$0xff] }
0x16bb   :  { %v3380_v45 = vpop.xlane.xlu0 %3379  ;;  %v9259_v36 = vpop.permute.xlu1 %9258 }
0x16bc   :  { %9418 = vrcp.f32 %v3380_v45  ;;  %v9261_v41 = vunpack.i.h.bf16 %v9259_v36  ;;  %v9260_v59 = vunpack.i.l.bf16 %v9259_v36  ;;  %v3712_v36 = vld [vmem:[#allocation11 + $0x18] sm:$0xff] }
0x16be   :  { %v8980_v42 = vpack.c.bf16 %v9261_v41, %v9260_v59  ;;  %v8994_v41 = vpack.c.bf16 %v3712_v36, %v3711_v40  ;;  %v3803_v59 = vld [vmem:[%s11023_s14] sm:$0xff]  ;;  %v7863_v36 = vld [vmem:[%s11075_s3 + $0x38] sm:$0xff] }
0x16bf   :  { %v9254_v43 = vpop.permute.xlu0 %9253  ;;  %v3549_v63 = vpop.permute.xlu1 %3548 }
0x16c0   :  { %v9256_v5 = vunpack.i.h.bf16 %v9254_v43  ;;  %v9255_v44 = vunpack.i.l.bf16 %v9254_v43  ;;  %8981 = vmatpush3.bf16.msra.mxu1 %v8980_v42  ;;  %v3570_v31 = vsel %vm379_vm2, %v10308_v23, %v3549_v63  ;;  %v7847_v23 = vld [vmem:[%s11020_s11] ss:$0 sm:$0xff]  ;;  %v3804_v42 = vld [vmem:[%s11023_s14 + $0x8] sm:$0xff]  ;;  %v3805_v43 = vld [vmem:[%s11023_s14 + $0x10] sm:$0xff] }
0x16c2   :  { %v9417_v47 = vpop.eup %9416  ;;  %v8977_v48 = vpack.c.bf16 %v9256_v5, %v9255_v44  ;;  %v8998_v5 = vpack.c.bf16 %v3804_v42, %v3803_v59  ;;  %v3806_v44 = vld [vmem:[%s11023_s14 + $0x18] sm:$0xff]  ;;  %v7860_v59 = vld [vmem:[%s11075_s3 + $0x20] sm:$0xff]  ;;  %v7861_v42 = vld [vmem:[%s11075_s3 + $0x28] sm:$0xff] }
0x16c3   :  { %v3387_v57 = vmul.f32 %v9417_v47, %v9413_v46  ;;  %v3551_v0 = vpop.permute.xlu0 %3550  ;;  %v3557_v2 = vpop.permute.xlu1 %3556  ;;  %v9002_v47 = vpack.c.bf16 %v3806_v44, %v3805_v43  ;;  %v9262_v43 = vpack.i.bf16 %v7861_v42, %v7860_v59 }
0x16c4   :  { %8978 = vmatpush3.bf16.msra.mxu0 %v8977_v48  ;;  %v3571_v33 = vsel %vm379_vm2, %v10306_v21, %v3551_v0  ;;  %v3572_v4 = vsel %vm1717_vm3, %v3570_v31, %v3557_v2  ;;  %v3807_v48 = vld [vmem:[%s11023_s14 + $0x20] sm:$0xff] }
0x16c5   :  { %8530 = vmatmul.mubr.msk.f32.vlgmr.msra.gmra.mrb[40].mxu1 %vm1717_vm3, %v3387_v57  ;;  %8983 = vmatprep.subr.bf16.mxu0 %v8982_v52  ;;  %v3808_v57 = vld [vmem:[%s11023_s14 + $0x28] sm:$0xff]  ;;  %v7851_v0 = vld [vmem:[%s11028_s19] ss:$0 sm:$0xff] }
0x16c6   :  { %v9419_v16 = vpop.eup %9418 }
0x16c7   :  { %v3386_v20 = vmul.f32 %v9419_v16, %v9415_v38  ;;  %v3559_v1 = vpop.permute.xlu0 %3558  ;;  %v9006_v16 = vpack.c.bf16 %v3808_v57, %v3807_v48 }
0x16c8   :  { %v3573_v27 = vsel %vm1717_vm3, %v3571_v33, %v3559_v1  ;;  %v3810_v33 = vld [vmem:[%s11023_s14 + $0x38] sm:$0xff] }
0x16c9   :  { %8523 = vmatmul.mubr.msk.f32.vlgmr.msra.gmra.mrb[36].mxu0 %vm1717_vm3, %v3386_v20 }
0x16ca   :  { %8985 = vmatpush3.bf16.msra.mxu0 %v8982_v52 }
0x16cb   :  { %8987 = vmatprep.subr.bf16.mxu0 %v8986_v56 }
0x16ce   :  { %8989 = vmatpush3.bf16.msra.mxu0 %v8986_v56 }
0x16cf   :  { %8999 = vmatprep.subr.bf16.mxu0 %v8998_v5 }
0x1798   :  { %v3542_v32 = vpop.f32.mrb[40].mxu1 }
0x1799   :  { %3566 = vrot.lane.b32.xlu0 %v3542_v32, %s11082_s4  ;;  %v8531_v58 = vpop.f32.mrb[41].mxu1  ;;  %v7850_v32 = vld [vmem:[%s11027_s18] ss:$0 sm:$0xff] }
0x179c   :  { %v3463_v60 = vpop.f32.mrb[36].mxu0 }
0x179d   :  { %3564 = vrot.lane.b32.xlu1 %v3463_v60, %s11082_s4  ;;  %v8524_v62 = vpop.f32.mrb[37].mxu0 }
0x180b   :  { %v3567_v28 = vpop.permute.xlu0 %3566 }
0x180c   :  { %v3575_v9 = vsel %vm1720_vm4, %v3573_v27, %v3567_v28  ;;  %v3809_v28 = vld [vmem:[%s11023_s14 + $0x30] sm:$0xff] }
0x180f   :  { %v3565_v61 = vpop.permute.xlu1 %3564 }
0x1810   :  { %v3574_v7 = vsel %vm1720_vm4, %v3572_v4, %v3565_v61  ;;  %v9010_v4 = vpack.c.bf16 %v3810_v33, %v3809_v28  ;;  %v7852_v61 = vld [vmem:[%s11022_s13] ss:$0 sm:$0xff] }
0x1811   :  { %8540 = vmatprep.mubr.msk.f32.mxu0 %vm194_vm0, %v3574_v7 }
0x1812   :  { %8541 = vmatmul.mubr.msk.f32.vlgmr.msra.gmra.mrb[38].mxu0 %vm194_vm0, %v3575_v9 }
0x1813   :  { %9001 = vmatpush3.bf16.msra.mxu0 %v8998_v5  ;;  %v9014_v5 = vpack.c.bf16 %v7861_v42, %v7860_v59 }
0x1814   :  { %9003 = vmatprep.subr.bf16.mxu0 %v9002_v47 }
0x1817   :  { %9005 = vmatpush3.bf16.msra.mxu0 %v9002_v47 }
0x1818   :  { %9007 = vmatprep.subr.bf16.mxu0 %v9006_v16 }
0x181b   :  { %9009 = vmatpush3.bf16.msra.mxu0 %v9006_v16 }
0x181c   :  { %9011 = vmatprep.subr.bf16.mxu0 %v9010_v4 }
0x181f   :  { %9013 = vmatpush3.bf16.msra.mxu0 %v9010_v4 }
0x1820   :  { %8595 = vmatprep.subr.mxu0 %v9687_v14 }
0x18e5   :  { %v8542_v10 = vpop.f32.mrb[38].mxu0 }
0x18e6   :  { %v3660_v13 = vadd.f32 %v8542_v10, %v7847_v23  ;;  %v3654_v21 = vpop.f32.mrb[39].mxu0 }
0x18e7   :  { %v3655_v12 = vadd.f32 %v7847_v23, %v3654_v21  ;;  %v7855_v21 = vld [vmem:[%s11024_s15] ss:$0 sm:$0xff] }
0x18e8   :  { %v3664_v15 = vadd.f32 %v3660_v13, %v10215_v26 }
0x18e9   :  { %v3663_v17 = vadd.f32 %v3655_v12, %v10217_v8  ;;  %v3709_v8 = vld [vmem:[#allocation11] sm:$0xff] }
0x18ea   :  { %v3670_v18 = vsel %vm194_vm0, %v3664_v15, 0.0  ;;  %v8990_v45 = vpack.c.bf16 %v3710_v39, %v3709_v8 }
0x18eb   :  { %3671 = vadd.xlane.f32.xlu0 %v3670_v18  ;;  %v3667_v19 = vsel %vm194_vm0, %v3663_v17, 0.0 }
0x18ec   :  { %3668 = vadd.xlane.f32.xlu1 %v3667_v19  ;;  %8991 = vmatprep.subr.bf16.mxu1 %v8990_v45 }
0x18ed   :  { %8993 = vmatpush3.bf16.msra.mxu1 %v8990_v45  ;;  %v7862_v45 = vld [vmem:[%s11075_s3 + $0x30] sm:$0xff] }
0x18ee   :  { %8995 = vmatprep.subr.bf16.mxu1 %v8994_v41  ;;  %v9018_v44 = vpack.c.bf16 %v7863_v36, %v7862_v45 }
0x18f1   :  { %8997 = vmatpush3.bf16.msra.mxu1 %v8994_v41  ;;  %v9267_v41 = vpack.i.bf16 %v7863_v36, %v7862_v45 }
0x18f2   :  { %9015 = vmatprep.subr.bf16.mxu1 %v9014_v5 }
0x1978   :  { %v3672_v22 = vpop.xlane.xlu0 %3671 }
0x1979   :  { %v3674_v24 = vmul.f32 0.03125, %v3672_v22  ;;  %v3669_v25 = vpop.xlane.xlu1 %3668 }
0x197a   :  { %v3673_v30 = vmul.f32 0.03125, %v3669_v25 }
0x197b   :  { %v3676_v34 = vsub.f32 %v3664_v15, %v3674_v24 }
0x197c   :  { %v3675_v35 = vsub.f32 %v3663_v17, %v3673_v30 }
0x197d   :  { %v3678_v46 = vmul.f32 %v3676_v34, %v3676_v34 }
0x197e   :  { %v3677_v37 = vmul.f32 %v3675_v35, %v3675_v35 }
0x197f   :  { %v3682_v38 = vsel %vm194_vm0, %v3678_v46, 0.0 }
0x1980   :  { %3683 = vadd.xlane.f32.xlu1 %v3682_v38  ;;  %v3679_v26 = vsel %vm194_vm0, %v3677_v37, 0.0 }
0x1981   :  { %3680 = vadd.xlane.f32.xlu0 %v3679_v26 }
0x1a0d   :  { %v3684_v20 = vpop.xlane.xlu1 %3683 }
0x1a0e   :  { %v3686_v49 = vmul.f32 0.03125, %v3684_v20  ;;  %v3681_v50 = vpop.xlane.xlu0 %3680 }
0x1a0f   :  { %v3685_v52 = vmul.f32 0.03125, %v3681_v50 }
0x1a10   :  { %v3688_v53 = vadd.f32 1e-05, %v3686_v49 }
0x1a11   :  { %v3687_v55 = vadd.f32 1e-05, %v3685_v52 }
0x1a12   :  { %9420 = vrsqrt.f32 %v3688_v53 }
0x1a13   :  { %9422 = vrsqrt.f32 %v3687_v55 }
0x1a1c   :  { %v9421_v56 = vpop.eup %9420 }
0x1a1d   :  { %v9423_v58 = vpop.eup %9422  ;;  %v3692_v60 = vmul.f32 %v9421_v56, %v3676_v34 }
0x1a1e   :  { %v3691_v62 = vmul.f32 %v9423_v58, %v3675_v35 }
0x1a1f   :  { %v3700_v63 = vmul.f32 %v7850_v32, %v3692_v60 }
0x1a20   :  { %v3699_v1 = vmul.f32 %v7850_v32, %v3691_v62  ;;  %v7858_v32 = vld [vmem:[%s11029_s20] ss:$0 sm:$0xff] }
0x1a21   :  { %v3708_v31 = vadd.f32 %v7851_v0, %v3700_v63  ;;  %v7859_v63 = vld [vmem:[%s11030_s21] ss:$0 sm:$0xff] }
0x1a22   :  { %v3707_v2 = vadd.f32 %v7851_v0, %v3699_v1 }
0x1a24   :  { %8551 = vmatprep.mubr.msk.f32.mxu1 %vm194_vm0, %v3707_v2 }
0x1a25   :  { %8552 = vmatmul.mubr.msk.f32.vlgmr.msra.gmra.mrb[42].mxu1 %vm194_vm0, %v3708_v31 }
0x1a26   :  { %9017 = vmatpush3.bf16.msra.mxu1 %v9014_v5 }
0x1a27   :  { %9019 = vmatprep.subr.bf16.mxu1 %v9018_v44 }
0x1a2a   :  { %9021 = vmatpush3.bf16.msra.mxu1 %v9018_v44 }
0x1af8   :  { %v8553_v27 = vpop.f32.mrb[42].mxu1 }
0x1af9   :  { %v3798_v7 = vadd.f32 %v8553_v27, %v7852_v61  ;;  %v3792_v9 = vpop.f32.mrb[43].mxu1 }
0x1afa   :  { %v3793_v23 = vadd.f32 %v7852_v61, %v3792_v9  ;;  %v10494_v61 = vld [vmem:[#allocation7] sm:$0xff] }
0x1afb   :  { %v3802_v13 = vmax.f32 %v3798_v7, 0.0  ;;  %v10498_v7 = vld [vmem:[#allocation7 + $0x8] sm:$0xff] }
0x1afc   :  { %v3801_v10 = vmax.f32 %v3793_v23, 0.0 }
0x1afe   :  { %8570 = vmatprep.mubr.msk.f32.mxu0 %vm3818_vm6, %v3801_v10  ;;  %v7870_v10 = vld [vmem:[%s11076_s29 + $0x1] ss:$0 sm:$0xff]  ;;  %s11083_s29 = smov 88  }
0x1aff   :  { %8571 = vmatmul.mubr.msk.f32.vlgmr.msra.gmra.mrb[40].mxu0 %vm3818_vm6, %v3802_v13 }
0x1b00   :  { %8597 = vmatprep.mubr.msk.f32.mxu0 %vm9688_vm1, %v9687_v14 }
0x1bd2   :  { %v8572_v12 = vpop.f32.mrb[40].mxu0 }
0x1bd3   :  { %v3897_v15 = vadd.f32 %v8572_v12, %v7855_v21  ;;  %v3891_v17 = vpop.f32.mrb[41].mxu0 }
0x1bd4   :  { %v3892_v18 = vadd.f32 %v7855_v21, %v3891_v17 }
0x1bd5   :  { %v3901_v19 = vadd.f32 %v3897_v15, %v3708_v31 }
0x1bd6   :  { %v3900_v22 = vadd.f32 %v3892_v18, %v3707_v2 }
0x1bd7   :  { %v3907_v24 = vsel %vm194_vm0, %v3901_v19, 0.0 }
0x1bd8   :  { %3908 = vadd.xlane.f32.xlu1 %v3907_v24  ;;  %v3904_v25 = vsel %vm194_vm0, %v3900_v22, 0.0 }
0x1bd9   :  { %3905 = vadd.xlane.f32.xlu0 %v3904_v25 }
0x1c65   :  { %v3909_v30 = vpop.xlane.xlu1 %3908 }
0x1c66   :  { %v3911_v34 = vmul.f32 0.03125, %v3909_v30  ;;  %v3906_v35 = vpop.xlane.xlu0 %3905 }
0x1c67   :  { %v3910_v46 = vmul.f32 0.03125, %v3906_v35 }
0x1c68   :  { %v3913_v37 = vsub.f32 %v3901_v19, %v3911_v34 }
0x1c69   :  { %v3912_v38 = vsub.f32 %v3900_v22, %v3910_v46 }
0x1c6a   :  { %v3915_v26 = vmul.f32 %v3913_v37, %v3913_v37 }
0x1c6b   :  { %v3914_v8 = vmul.f32 %v3912_v38, %v3912_v38 }
0x1c6c   :  { %v3919_v39 = vsel %vm194_vm0, %v3915_v26, 0.0 }
0x1c6d   :  { %3920 = vadd.xlane.f32.xlu1 %v3919_v39  ;;  %v3916_v40 = vsel %vm194_vm0, %v3914_v8, 0.0 }
0x1c6e   :  { %3917 = vadd.xlane.f32.xlu0 %v3916_v40 }
0x1c7e   :  { %9268 = vrot.lane.b32.xlu1 %v9267_v41, %s9686_s30 }
0x1c84   :  { %9263 = vrot.lane.b32.xlu0 %v9262_v43, %s9686_s30 }
0x1cfa   :  { %v3921_v47 = vpop.xlane.xlu1 %3920 }
0x1cfb   :  { %v3923_v48 = vmul.f32 0.03125, %v3921_v47  ;;  %v3918_v57 = vpop.xlane.xlu0 %3917 }
0x1cfc   :  { %v3922_v16 = vmul.f32 0.03125, %v3918_v57 }
0x1cfd   :  { %v3925_v20 = vadd.f32 1e-05, %v3923_v48 }
0x1cfe   :  { %v3924_v49 = vadd.f32 1e-05, %v3922_v16  ;;  %v9269_v0 = vpop.permute.xlu1 %9268 }
0x1cff   :  { %9424 = vrsqrt.f32 %v3925_v20  ;;  %v9264_v50 = vpop.permute.xlu0 %9263  ;;  %v9271_v31 = vunpack.i.h.bf16 %v9269_v0  ;;  %v9270_v28 = vunpack.i.l.bf16 %v9269_v0 }
0x1d00   :  { %9426 = vrsqrt.f32 %v3924_v49  ;;  %v9266_v52 = vunpack.i.h.bf16 %v9264_v50  ;;  %v9265_v53 = vunpack.i.l.bf16 %v9264_v50 }
0x1d01   :  { %v9026_v23 = vpack.c.bf16 %v9271_v31, %v9270_v28 }
0x1d02   :  { %v9022_v55 = vpack.c.bf16 %v9266_v52, %v9265_v53 }
0x1d04   :  { %9023 = vmatprep.subr.bf16.mxu1 %v9022_v55 }
0x1d09   :  { %v9425_v56 = vpop.eup %9424 }
0x1d0a   :  { %v9427_v58 = vpop.eup %9426  ;;  %v3929_v60 = vmul.f32 %v9425_v56, %v3913_v37 }
0x1d0b   :  { %v3928_v62 = vmul.f32 %v9427_v58, %v3912_v38 }
0x1d0c   :  { %v3937_v1 = vmul.f32 %v7858_v32, %v3929_v60 }
0x1d0d   :  { %v3936_v2 = vmul.f32 %v7858_v32, %v3928_v62 }
0x1d0e   :  { %v10490_v33 = vadd.f32 %v7859_v63, %v3937_v1 }
0x1d0f   :  { %v10492_v4 = vadd.f32 %v7859_v63, %v3936_v2 }
0x1d10   :  { %v3947_v9 = vadd.f32 %v10498_v7, %v10490_v33 }
0x1d11   :  { %v3946_v27 = vadd.f32 %v10494_v61, %v10492_v4 }
0x1d13   :  { %8581 = vmatprep.mubr.msk.f32.mxu1 %vm194_vm0, %v3946_v27 }
0x1d14   :  { %8582 = vmatmul.mubr.msk.f32.vlgmr.msra.gmra.mrb[44].mxu1 %vm194_vm0, %v3947_v9 }
0x1d15   :  { %9025 = vmatpush3.bf16.msra.mxu1 %v9022_v55  ;;  %8592 = vmatprep.mubr.msk.f32.mxu1 %vm194_vm0, %v10492_v4 }
0x1d16   :  { %9027 = vmatprep.subr.bf16.mxu1 %v9026_v23 }
0x1d19   :  { %9029 = vmatpush3.bf16.msra.mxu1 %v9026_v23 }
0x1d1a   :  { %8600 = vmatprep.subr.mxu1 %v9687_v14 }
0x1d1c   :  { %8593 = vmatmul.mubr.msk.f32.vlgmr.msra.gmra.mrb[46].mxu1 %vm194_vm0, %v10490_v33 }
0x1d1d   :  { %8602 = vmatprep.mubr.msk.f32.mxu1 %vm9688_vm1, %v9687_v14 }
0x1de7   :  { %v8583_v13 = vpop.f32.mrb[44].mxu1 }
0x1de8   :  { %v10514_v21 = vadd.f32 %v8583_v13, %v7870_v10  ;;  %v4040_v12 = vpop.f32.mrb[45].mxu1 }
0x1de9   :  { %v10516_v15 = vadd.f32 %v7870_v10, %v4040_v12 }
0x1dea   :  { %4227 = vrot.lane.b32.xlu0 %v10514_v21, %s9689_s5 }
0x1deb   :  { %4150 = vrot.lane.b32.xlu1 %v10516_v15, %s9689_s5 }
0x1def   :  { %v8594_v17 = vpop.f32.mrb[46].mxu1 }
0x1df0   :  { %v4140_v18 = vpop.f32.mrb[47].mxu1 }
0x1e5c   :  { %v4228_v19 = vpop.permute.xlu0 %4227 }
0x1e5d   :  { %v4151_v22 = vpop.permute.xlu1 %4150  ;;  %8601 = vmatpush3.xpose.msk.msra.mxu1 %vm379_vm2, %v4228_v19 }
0x1e5e   :  { %8596 = vmatpush3.xpose.msk.msra.mxu0 %vm379_vm2, %v4151_v22  ;;  %8610 = vmatprep.subr.mxu1 %v9687_v14 }
0x1e5f   :  { %8605 = vmatprep.subr.mxu0 %v9687_v14 }
0x1e60   :  { %8603 = vmatmul.mubr.msk.f32.vlgmr.msra.gmra.mrb[48].mxu1 %vm379_vm2, %v10514_v21 }
0x1e61   :  { %8598 = vmatmul.mubr.msk.f32.vlgmr.msra.gmra.mrb[42].mxu0 %vm379_vm2, %v10516_v15  ;;  %8612 = vmatprep.mubr.msk.f32.mxu1 %vm9688_vm1, %v9687_v14 }
0x1e62   :  { %8607 = vmatprep.mubr.msk.f32.mxu0 %vm9688_vm1, %v9687_v14 }
0x1f33   :  { %v4299_v24 = vpop.f32.mrb[48].mxu1 }
0x1f34   :  { %v4222_v25 = vpop.f32.mrb[42].mxu0  ;;  %v8604_v30 = vpop.f32.mrb[49].mxu1  ;;  %v4306_v34 = vsel %vm379_vm2, %v4299_v24, -inf }
0x1f35   :  { %v8599_v35 = vpop.f32.mrb[43].mxu0  ;;  %4307 = vmax.xlane.f32.xlu0 %v4306_v34  ;;  %v4303_v46 = vsel %vm379_vm2, %v4222_v25, -inf }
0x1f36   :  { %4304 = vmax.xlane.f32.xlu1 %v4303_v46 }
0x1f47   :  { %4473 = vrot.lane.b32.xlu1 %v10516_v15, %s11083_s29 }
0x1f4b   :  { %4551 = vrot.lane.b32.xlu1 %v10514_v21, %s11083_s29  ;;  %4065 = vrot.lane.b32.xlu0 %v7870_v10, %s9686_s30 }
0x1fc2   :  { %v4308_v37 = vpop.xlane.xlu0 %4307 }
0x1fc3   :  { %v4310_v38 = vsub.f32 %v4299_v24, %v4308_v37  ;;  %v4305_v26 = vpop.xlane.xlu1 %4304 }
0x1fc4   :  { %v4309_v8 = vsub.f32 %v4222_v25, %v4305_v26 }
0x1fc5   :  { %v4313_v39 = vmul.f32 1.442695, %v4310_v38 }
0x1fc6   :  { %v4311_v40 = vmul.f32 1.442695, %v4309_v8  ;;  %v4066_v45 = vpop.permute.xlu0 %4065 }
0x1fc7   :  { %9428 = vpow2.f32 %v4313_v39  ;;  %v10541_v36 = vadd.f32 %v4140_v18, %v4066_v45  ;;  %v10543_v41 = vadd.f32 %v8594_v17, %v4066_v45  ;;  %v4474_v44 = vpop.permute.xlu1 %4473 }
0x1fc8   :  { %9430 = vpow2.f32 %v4311_v40 }
0x1fc9   :  { %8606 = vmatpush3.msra.mxu0 %v10541_v36  ;;  %8611 = vmatpush3.msra.mxu1 %v10543_v41 }
0x1fca   :  { %8620 = vmatprep.subr.mxu1 %v9687_v14  ;;  %8615 = vmatprep.subr.mxu0 %v9687_v14 }
0x1fcb   :  { %v4552_v47 = vpop.permute.xlu1 %4551 }
0x1fd1   :  { %v9429_v59 = vpop.eup %9428 }
0x1fd2   :  { %v9431_v42 = vpop.eup %9430  ;;  %v4318_v43 = vsel %vm379_vm2, %v9429_v59, 0.0 }
0x1fd3   :  { %4319 = vadd.xlane.f32.xlu1 %v4318_v43  ;;  %v4315_v5 = vsel %vm379_vm2, %v9431_v42, 0.0 }
0x1fd4   :  { %4316 = vadd.xlane.f32.xlu0 %v4315_v5 }
0x1fe4   :  { %4549 = vrot.lane.b32.xlu1 %v10514_v21, %s9691_s6 }
0x1fea   :  { %4471 = vrot.lane.b32.xlu0 %v10516_v15, %s9691_s6 }
0x2060   :  { %v4320_v48 = vpop.xlane.xlu1 %4319 }
0x2061   :  { %9432 = vrcp.f32 %v4320_v48  ;;  %v4317_v57 = vpop.xlane.xlu0 %4316 }
0x2062   :  { %9434 = vrcp.f32 %v4317_v57 }
0x2064   :  { %v4550_v52 = vpop.permute.xlu1 %4549 }
0x2065   :  { %v4472_v53 = vpop.permute.xlu0 %4471 }
0x206b   :  { %v9433_v16 = vpop.eup %9432 }
0x206c   :  { %v9435_v20 = vpop.eup %9434  ;;  %v4324_v49 = vmul.f32 %v9433_v16, %v9429_v59 }
0x206d   :  { %v4323_v50 = vmul.f32 %v9435_v20, %v9431_v42 }
0x206e   :  { %8613 = vmatmul.mubr.msk.f32.vlgmr.msra.gmra.mrb[50].mxu1 %vm379_vm2, %v4324_v49 }
0x206f   :  { %8621 = vmatpush3.xpose.msk.msra.mxu1 %vm379_vm2, %v4552_v47  ;;  %8608 = vmatmul.mubr.msk.f32.vlgmr.msra.gmra.mrb[44].mxu0 %vm379_vm2, %v4323_v50 }
0x2070   :  { %8616 = vmatpush3.xpose.msk.msra.mxu0 %vm379_vm2, %v4474_v44  ;;  %8622 = vmatprep.mubr.msk.f32.mxu1 %vm9688_vm1, %v9687_v14 }
0x2071   :  { %8617 = vmatprep.mubr.msk.f32.mxu0 %vm9688_vm1, %v9687_v14  ;;  %8625 = vmatprep.subr.mxu0 %v9687_v14 }
0x2072   :  { %8623 = vmatmul.mubr.msk.f32.vlgmr.msra.gmra.mrb[52].mxu1 %vm379_vm2, %v4550_v52  ;;  %8630 = vmatprep.subr.mxu1 %v9687_v14 }
0x2073   :  { %8618 = vmatmul.mubr.msk.f32.vlgmr.msra.gmra.mrb[46].mxu0 %vm379_vm2, %v4472_v53  ;;  %8632 = vmatprep.mubr.msk.f32.mxu1 %vm9688_vm1, %v9687_v14 }
0x2074   :  { %8627 = vmatprep.mubr.msk.f32.mxu0 %vm9688_vm1, %v9687_v14 }
0x2141   :  { %v10571_v55 = vpop.f32.mrb[50].mxu1 }
0x2142   :  { %v10573_v56 = vpop.f32.mrb[44].mxu0  ;;  %v8614_v32 = vpop.f32.mrb[51].mxu1 }
0x2143   :  { %v8609_v58 = vpop.f32.mrb[45].mxu0 }
0x2145   :  { %v4623_v60 = vpop.f32.mrb[52].mxu1 }
0x2146   :  { %v4545_v62 = vpop.f32.mrb[46].mxu0  ;;  %v8624_v0 = vpop.f32.mrb[53].mxu1  ;;  %v4630_v63 = vsel %vm379_vm2, %v4623_v60, -inf }
0x2147   :  { %v8619_v1 = vpop.f32.mrb[47].mxu0  ;;  %4631 = vmax.xlane.f32.xlu1 %v4630_v63  ;;  %v4627_v2 = vsel %vm379_vm2, %v4545_v62, -inf }
0x2148   :  { %4628 = vmax.xlane.f32.xlu0 %v4627_v2 }
0x2158   :  { %4650 = vrot.lane.b32.xlu1 %v10541_v36, %s9691_s6 }
0x215c   :  { %4805 = vrot.lane.b32.xlu1 %v10516_v15, %s11084_s0 }
0x215e   :  { %4727 = vrot.lane.b32.xlu0 %v10543_v41, %s9691_s6 }
0x2160   :  { %4883 = vrot.lane.b32.xlu1 %v10514_v21, %s11084_s0 }
0x2164   :  { %4881 = vrot.lane.b32.xlu1 %v10514_v21, %s9693_s28 }
0x21d4   :  { %v4632_v31 = vpop.xlane.xlu1 %4631 }
0x21d5   :  { %v4634_v28 = vsub.f32 %v4623_v60, %v4632_v31  ;;  %v4629_v27 = vpop.xlane.xlu0 %4628 }
0x21d6   :  { %v4633_v9 = vsub.f32 %v4545_v62, %v4629_v27 }
0x21d7   :  { %v4637_v23 = vmul.f32 1.442695, %v4634_v28 }
0x21d8   :  { %v4635_v10 = vmul.f32 1.442695, %v4633_v9  ;;  %v4651_v13 = vpop.permute.xlu1 %4650 }
0x21d9   :  { %9436 = vpow2.f32 %v4637_v23  ;;  %v4728_v12 = vpop.permute.xlu0 %4727  ;;  %8626 = vmatpush3.msra.mxu0 %v4651_v13 }
0x21da   :  { %8631 = vmatpush3.msra.mxu1 %v4728_v12  ;;  %8635 = vmatprep.subr.mxu0 %v9687_v14  ;;  %9438 = vpow2.f32 %v4635_v10 }
0x21db   :  { %8640 = vmatprep.subr.mxu1 %v9687_v14 }
0x21dc   :  { %v4806_v30 = vpop.permute.xlu1 %4805 }
0x21e0   :  { %v4884_v35 = vpop.permute.xlu1 %4883 }
0x21e3   :  { %v9437_v17 = vpop.eup %9436 }
0x21e4   :  { %v4642_v18 = vsel %vm379_vm2, %v9437_v17, 0.0  ;;  %v9439_v19 = vpop.eup %9438  ;;  %v4882_v26 = vpop.permute.xlu1 %4881 }
0x21e5   :  { %4643 = vadd.xlane.f32.xlu0 %v4642_v18  ;;  %v4639_v22 = vsel %vm379_vm2, %v9439_v19, 0.0 }
0x21e9   :  { %4640 = vadd.xlane.f32.xlu0 %v4639_v22 }
0x21ff   :  { %4803 = vrot.lane.b32.xlu0 %v10516_v15, %s9693_s28 }
0x2272   :  { %v4644_v24 = vpop.xlane.xlu0 %4643 }
0x2273   :  { %9440 = vrcp.f32 %v4644_v24 }
0x2276   :  { %v4641_v25 = vpop.xlane.xlu0 %4640 }
0x2277   :  { %9442 = vrcp.f32 %v4641_v25 }
0x227a   :  { %v4804_v8 = vpop.permute.xlu0 %4803 }
0x227d   :  { %v9441_v34 = vpop.eup %9440 }
0x227e   :  { %v4648_v46 = vmul.f32 %v9441_v34, %v9437_v17 }
0x2280   :  { %8633 = vmatmul.mubr.msk.f32.vlgmr.msra.gmra.mrb[54].mxu1 %vm379_vm2, %v4648_v46 }
0x2281   :  { %v9443_v37 = vpop.eup %9442  ;;  %8641 = vmatpush3.xpose.msk.msra.mxu1 %vm379_vm2, %v4884_v35  ;;  %8642 = vmatprep.mubr.msk.f32.mxu1 %vm9688_vm1, %v9687_v14 }
0x2282   :  { %v4647_v38 = vmul.f32 %v9443_v37, %v9439_v19  ;;  %8650 = vmatprep.subr.mxu1 %v9687_v14 }
0x2284   :  { %8628 = vmatmul.mubr.msk.f32.vlgmr.msra.gmra.mrb[48].mxu0 %vm379_vm2, %v4647_v38  ;;  %8643 = vmatmul.mubr.msk.f32.vlgmr.msra.gmra.mrb[56].mxu1 %vm379_vm2, %v4882_v26 }
0x2285   :  { %8636 = vmatpush3.xpose.msk.msra.mxu0 %vm379_vm2, %v4806_v30  ;;  %8637 = vmatprep.mubr.msk.f32.mxu0 %vm9688_vm1, %v9687_v14 }
0x2286   :  { %8645 = vmatprep.subr.mxu0 %v9687_v14  ;;  %8652 = vmatprep.mubr.msk.f32.mxu1 %vm9688_vm1, %v9687_v14 }
0x2288   :  { %8638 = vmatmul.mubr.msk.f32.vlgmr.msra.gmra.mrb[50].mxu0 %vm379_vm2, %v4804_v8 }
0x2289   :  { %8647 = vmatprep.mubr.msk.f32.mxu0 %vm9688_vm1, %v9687_v14 }
0x2353   :  { %v10609_v39 = vpop.f32.mrb[54].mxu1 }
0x2354   :  { %v8634_v40 = vpop.f32.mrb[55].mxu1 }
0x2357   :  { %v10611_v45 = vpop.f32.mrb[48].mxu0  ;;  %v4955_v59 = vpop.f32.mrb[56].mxu1 }
0x2358   :  { %v8629_v42 = vpop.f32.mrb[49].mxu0  ;;  %v8644_v43 = vpop.f32.mrb[57].mxu1  ;;  %v4962_v5 = vsel %vm379_vm2, %v4955_v59, -inf }
0x2359   :  { %4963 = vmax.xlane.f32.xlu1 %v4962_v5 }
0x235b   :  { %v4877_v44 = vpop.f32.mrb[50].mxu0 }
0x235c   :  { %v8639_v47 = vpop.f32.mrb[51].mxu0  ;;  %v4959_v48 = vsel %vm379_vm2, %v4877_v44, -inf }
0x235d   :  { %4960 = vmax.xlane.f32.xlu0 %v4959_v48 }
0x236a   :  { %4981 = vrot.lane.b32.xlu1 %v10541_v36, %s9693_s28 }
0x236e   :  { %5135 = vrot.lane.b32.xlu1 %v10516_v15, %s11085_s7 }
0x2372   :  { %5213 = vrot.lane.b32.xlu1 %v10514_v21, %s11085_s7 }
0x2373   :  { %5057 = vrot.lane.b32.xlu0 %v10543_v41, %s9693_s28 }
0x2376   :  { %5211 = vrot.lane.b32.xlu1 %v10514_v21, %s11086_s23 }
0x23e6   :  { %v4964_v57 = vpop.xlane.xlu1 %4963 }
0x23e7   :  { %v4966_v16 = vsub.f32 %v4955_v59, %v4964_v57  ;;  %v7866_v57 = vld [vmem:[%s11077_s27 + $0x28] sm:$0xff] }
0x23e9   :  { %v4969_v20 = vmul.f32 1.442695, %v4966_v16 }
0x23ea   :  { %v4961_v49 = vpop.xlane.xlu0 %4960  ;;  %v4982_v50 = vpop.permute.xlu1 %4981 }
0x23eb   :  { %9444 = vpow2.f32 %v4969_v20  ;;  %v4965_v52 = vsub.f32 %v4877_v44, %v4961_v49  ;;  %8646 = vmatpush3.msra.mxu0 %v4982_v50  ;;  %v7867_v20 = vld [vmem:[%s11077_s27 + $0x30] sm:$0xff]  ;;  %v7868_v49 = vld [vmem:[%s11077_s27 + $0x38] sm:$0xff] }
0x23ec   :  { %8655 = vmatprep.subr.mxu0 %v9687_v14  ;;  %v9034_v50 = vpack.c.bf16 %v7868_v49, %v7867_v20 }
0x23ed   :  { %v4967_v53 = vmul.f32 1.442695, %v4965_v52 }
0x23ee   :  { %v5058_v32 = vpop.permute.xlu0 %5057  ;;  %v5136_v1 = vpop.permute.xlu1 %5135 }
0x23ef   :  { %9446 = vpow2.f32 %v4967_v53  ;;  %8651 = vmatpush3.msra.mxu1 %v5058_v32 }
0x23f0   :  { %8660 = vmatprep.subr.mxu1 %v9687_v14 }
0x23f2   :  { %v5214_v31 = vpop.permute.xlu1 %5213 }
0x23f5   :  { %v9445_v58 = vpop.eup %9444 }
0x23f6   :  { %v4974_v60 = vsel %vm379_vm2, %v9445_v58, 0.0 }
0x23f7   :  { %4975 = vadd.xlane.f32.xlu0 %v4974_v60 }
0x23f9   :  { %v9447_v21 = vpop.eup %9446 }
0x23fa   :  { %v4971_v62 = vsel %vm379_vm2, %v9447_v21, 0.0 }
0x23fb   :  { %4972 = vadd.xlane.f32.xlu0 %v4971_v62 }
0x2411   :  { %5133 = vrot.lane.b32.xlu0 %v10516_v15, %s11086_s23  ;;  %v5212_v15 = vpop.permute.xlu1 %5211 }
0x2484   :  { %v4976_v0 = vpop.xlane.xlu0 %4975 }
0x2485   :  { %9448 = vrcp.f32 %v4976_v0 }
0x2488   :  { %v4973_v63 = vpop.xlane.xlu0 %4972 }
0x2489   :  { %9450 = vrcp.f32 %v4973_v63 }
0x248c   :  { %v5134_v23 = vpop.permute.xlu0 %5133 }
0x248f   :  { %v9449_v2 = vpop.eup %9448 }
0x2490   :  { %v4980_v28 = vmul.f32 %v9449_v2, %v9445_v58 }
0x2492   :  { %8653 = vmatmul.mubr.msk.f32.vlgmr.msra.gmra.mrb[58].mxu1 %vm379_vm2, %v4980_v28 }
0x2493   :  { %v9451_v27 = vpop.eup %9450  ;;  %8661 = vmatpush3.xpose.msk.msra.mxu1 %vm379_vm2, %v5214_v31  ;;  %8662 = vmatprep.mubr.msk.f32.mxu1 %vm9688_vm1, %v9687_v14 }
0x2494   :  { %v4979_v9 = vmul.f32 %v9451_v27, %v9447_v21  ;;  %8670 = vmatprep.subr.mxu1 %v9687_v14 }
0x2496   :  { %8648 = vmatmul.mubr.msk.f32.vlgmr.msra.gmra.mrb[52].mxu0 %vm379_vm2, %v4979_v9  ;;  %8663 = vmatmul.mubr.msk.f32.vlgmr.msra.gmra.mrb[60].mxu1 %vm379_vm2, %v5212_v15 }
0x2497   :  { %8656 = vmatpush3.xpose.msk.msra.mxu0 %vm379_vm2, %v5136_v1  ;;  %8657 = vmatprep.mubr.msk.f32.mxu0 %vm9688_vm1, %v9687_v14 }
0x2498   :  { %8665 = vmatprep.subr.mxu0 %v9687_v14  ;;  %8672 = vmatprep.mubr.msk.f32.mxu1 %vm9688_vm1, %v9687_v14 }
0x249a   :  { %8658 = vmatmul.mubr.msk.f32.vlgmr.msra.gmra.mrb[54].mxu0 %vm379_vm2, %v5134_v23 }
0x249b   :  { %8667 = vmatprep.mubr.msk.f32.mxu0 %vm9688_vm1, %v9687_v14 }
0x2565   :  { %v5129_v10 = vpop.f32.mrb[58].mxu1 }
0x2566   :  { %v8654_v13 = vpop.f32.mrb[59].mxu1 }
0x2569   :  { %v5053_v12 = vpop.f32.mrb[52].mxu0  ;;  %v5285_v17 = vpop.f32.mrb[60].mxu1 }
0x256a   :  { %v8649_v18 = vpop.f32.mrb[53].mxu0  ;;  %v8664_v19 = vpop.f32.mrb[61].mxu1  ;;  %v5292_v22 = vsel %vm379_vm2, %v5285_v17, -inf }
0x256b   :  { %5293 = vmax.xlane.f32.xlu1 %v5292_v22  ;;  %v7907_v22 = vld [vmem:[%s11079_s8 + $0x28] sm:$0xff] }
0x256d   :  { %v5207_v24 = vpop.f32.mrb[54].mxu0 }
0x256e   :  { %v8659_v25 = vpop.f32.mrb[55].mxu0  ;;  %v5289_v30 = vsel %vm379_vm2, %v5207_v24, -inf }
0x256f   :  { %5290 = vmax.xlane.f32.xlu0 %v5289_v30 }
0x257c   :  { %5311 = vrot.lane.b32.xlu1 %v10541_v36, %s11086_s23 }
0x2580   :  { %5465 = vrot.lane.b32.xlu1 %v10611_v45, %s11087_s10 }
0x2584   :  { %5467 = vrot.lane.b32.xlu1 %v10609_v39, %s11087_s10 }
0x2588   :  { %5475 = vrot.lane.b32.xlu1 %v5129_v10, %s11088_s22 }
0x25f8   :  { %v5294_v34 = vpop.xlane.xlu1 %5293 }
0x25f9   :  { %v5296_v35 = vsub.f32 %v5285_v17, %v5294_v34 }
0x25fb   :  { %v5299_v46 = vmul.f32 1.442695, %v5296_v35 }
0x25fc   :  { %v5291_v37 = vpop.xlane.xlu0 %5290  ;;  %v5312_v38 = vpop.permute.xlu1 %5311 }
0x25fd   :  { %9452 = vpow2.f32 %v5299_v46  ;;  %v5295_v26 = vsub.f32 %v5207_v24, %v5291_v37  ;;  %8666 = vmatpush3.msra.mxu0 %v5312_v38 }
0x25ff   :  { %v5297_v8 = vmul.f32 1.442695, %v5295_v26 }
0x2600   :  { %v5466_v60 = vpop.permute.xlu1 %5465 }
0x2601   :  { %9454 = vpow2.f32 %v5297_v8  ;;  %v5487_v63 = vsel %vm379_vm2, %v10573_v56, %v5466_v60  ;;  %v7904_v60 = vld [vmem:[%s11025_s16 + $0x1] ss:$0 sm:$0xff] }
0x2604   :  { %v5468_v21 = vpop.permute.xlu1 %5467 }
0x2605   :  { %v5488_v2 = vsel %vm379_vm2, %v10571_v55, %v5468_v21  ;;  %v7899_v55 = vld [vmem:[%s11078_s25 + $0x1] ss:$0 sm:$0xff] }
0x2607   :  { %v9453_v40 = vpop.eup %9452 }
0x2608   :  { %v5304_v36 = vsel %vm379_vm2, %v9453_v40, 0.0  ;;  %v5476_v62 = vpop.permute.xlu1 %5475 }
0x2609   :  { %5305 = vadd.xlane.f32.xlu0 %v5304_v36  ;;  %v5490_v27 = vsel %vm1717_vm3, %v5488_v2, %v5476_v62  ;;  %v7909_v36 = vld [vmem:[%s11079_s8 + $0x38] sm:$0xff] }
0x260b   :  { %v9455_v45 = vpop.eup %9454 }
0x260c   :  { %v5301_v59 = vsel %vm379_vm2, %v9455_v45, 0.0 }
0x260d   :  { %5302 = vadd.xlane.f32.xlu0 %v5301_v59 }
0x2623   :  { %5387 = vrot.lane.b32.xlu0 %v10543_v41, %s11086_s23  ;;  %v7865_v41 = vld [vmem:[%s11077_s27 + $0x20] sm:$0xff] }
0x2624   :  { %v9030_v16 = vpack.c.bf16 %v7866_v57, %v7865_v41 }
0x2626   :  { %9031 = vmatprep.subr.bf16.mxu0 %v9030_v16 }
0x2627   :  { %5473 = vrot.lane.b32.xlu0 %v5053_v12, %s11088_s22 }
0x2696   :  { %v5306_v39 = vpop.xlane.xlu0 %5305 }
0x2697   :  { %9456 = vrcp.f32 %v5306_v39 }
0x269a   :  { %v5303_v42 = vpop.xlane.xlu0 %5302 }
0x269b   :  { %9458 = vrcp.f32 %v5303_v42 }
0x269e   :  { %v5388_v43 = vpop.permute.xlu0 %5387 }
0x269f   :  { %8671 = vmatpush3.msra.mxu1 %v5388_v43 }
0x26a1   :  { %v9457_v5 = vpop.eup %9456 }
0x26a2   :  { %v5310_v44 = vmul.f32 %v9457_v5, %v9453_v40  ;;  %v5474_v0 = vpop.permute.xlu0 %5473  ;;  %v7908_v40 = vld [vmem:[%s11079_s8 + $0x30] sm:$0xff] }
0x26a3   :  { %v5489_v31 = vsel %vm1717_vm3, %v5487_v63, %v5474_v0  ;;  %v9277_v42 = vpack.i.bf16 %v7909_v36, %v7908_v40  ;;  %v9042_v5 = vpack.c.bf16 %v7909_v36, %v7908_v40 }
0x26a4   :  { %8673 = vmatmul.mubr.msk.f32.vlgmr.msra.gmra.mrb[62].mxu1 %vm379_vm2, %v5310_v44  ;;  %v10715_v44 = vld [vmem:[%s11018_s9 + $0x1] ss:$0 sm:$0xff] }
0x26a5   :  { %v9459_v47 = vpop.eup %9458 }
0x26a6   :  { %v5309_v48 = vmul.f32 %v9459_v47, %v9455_v45 }
0x26a8   :  { %8668 = vmatmul.mubr.msk.f32.vlgmr.msra.gmra.mrb[56].mxu0 %vm379_vm2, %v5309_v48 }
0x26a9   :  { %9033 = vmatpush3.bf16.msra.mxu0 %v9030_v16 }
0x26aa   :  { %9035 = vmatprep.subr.bf16.mxu0 %v9034_v50 }
0x26ad   :  { %9037 = vmatpush3.bf16.msra.mxu0 %v9034_v50 }
0x2777   :  { %v5459_v52 = vpop.f32.mrb[62].mxu1 }
0x2778   :  { %5483 = vrot.lane.b32.xlu1 %v5459_v52, %s11082_s4  ;;  %v8674_v53 = vpop.f32.mrb[63].mxu1 }
0x277b   :  { %v5383_v32 = vpop.f32.mrb[56].mxu0 }
0x277c   :  { %5481 = vrot.lane.b32.xlu0 %v5383_v32, %s11082_s4  ;;  %v8669_v58 = vpop.f32.mrb[57].mxu0 }
0x27ea   :  { %v5484_v1 = vpop.permute.xlu1 %5483 }
0x27eb   :  { %v5492_v15 = vsel %vm1720_vm4, %v5490_v27, %v5484_v1 }
0x27ee   :  { %v5482_v28 = vpop.permute.xlu0 %5481 }
0x27ef   :  { %v5491_v9 = vsel %vm1720_vm4, %v5489_v31, %v5482_v28  ;;  %v7905_v31 = vld [vmem:[%s11026_s17 + $0x1] ss:$0 sm:$0xff] }
0x27f0   :  { %8683 = vmatprep.mubr.msk.f32.mxu0 %vm194_vm0, %v5491_v9 }
0x27f1   :  { %8684 = vmatmul.mubr.msk.f32.vlgmr.msra.gmra.mrb[58].mxu0 %vm194_vm0, %v5492_v15 }
0x27f2   :  { %8705 = vmatprep.mubr.msk.f32.mxu0 %vm194_vm0, %v10184_v29  ;;  %v7906_v29 = vld [vmem:[%s11079_s8 + $0x20] sm:$0xff] }
0x27f3   :  { %v9272_v24 = vpack.i.bf16 %v7907_v22, %v7906_v29  ;;  %v9038_v43 = vpack.c.bf16 %v7907_v22, %v7906_v29 }
0x27f5   :  { %9039 = vmatprep.subr.bf16.mxu1 %v9038_v43 }
0x27f6   :  { %9041 = vmatpush3.bf16.msra.mxu1 %v9038_v43 }
0x27f7   :  { %9043 = vmatprep.subr.bf16.mxu1 %v9042_v5 }
0x27fa   :  { %9045 = vmatpush3.bf16.msra.mxu1 %v9042_v5 }
0x28c4   :  { %v8685_v56 = vpop.f32.mrb[58].mxu0 }
0x28c5   :  { %v5577_v23 = vadd.f32 %v8685_v56, %v7899_v55  ;;  %v5571_v10 = vpop.f32.mrb[59].mxu0 }
0x28c6   :  { %v5572_v13 = vadd.f32 %v7899_v55, %v5571_v10 }
0x28c7   :  { %v5581_v12 = vadd.f32 %v5577_v23, %v10490_v33 }
0x28c8   :  { %v5580_v17 = vadd.f32 %v5572_v13, %v10492_v4  ;;  %v9511_v13 = vld [vmem:[#allocation5 + $0x8] sm:$0xff] }
0x28c9   :  { %v5589_v18 = vsel %vm194_vm0, %v5581_v12, 0.0 }
0x28ca   :  { %5590 = vadd.xlane.f32.xlu1 %v5589_v18  ;;  %v5586_v19 = vsel %vm194_vm0, %v5580_v17, 0.0 }
0x28cb   :  { %5587 = vadd.xlane.f32.xlu0 %v5586_v19 }
0x28db   :  { %9273 = vrot.lane.b32.xlu1 %v9272_v24, %s9689_s5 }
0x28df   :  { %9283 = vrot.lane.b32.xlu1 %v9272_v24, %s9686_s30 }
0x28e3   :  { %9288 = vrot.lane.b32.xlu1 %v9277_v42, %s9686_s30 }
0x2957   :  { %v5591_v33 = vpop.xlane.xlu1 %5590 }
0x2958   :  { %v5593_v25 = vmul.f32 0.03125, %v5591_v33  ;;  %v5588_v4 = vpop.xlane.xlu0 %5587 }
0x2959   :  { %v5592_v30 = vmul.f32 0.03125, %v5588_v4 }
0x295a   :  { %v5595_v34 = vsub.f32 %v5581_v12, %v5593_v25 }
0x295b   :  { %v5594_v35 = vsub.f32 %v5580_v17, %v5592_v30  ;;  %v9274_v8 = vpop.permute.xlu1 %9273 }
0x295c   :  { %v5597_v46 = vmul.f32 %v5595_v34, %v5595_v34  ;;  %v9276_v45 = vunpack.i.h.bf16 %v9274_v8  ;;  %v9275_v59 = vunpack.i.l.bf16 %v9274_v8 }
0x295d   :  { %v5596_v38 = vmul.f32 %v5594_v35, %v5594_v35 }
0x295e   :  { %v5601_v37 = vsel %vm194_vm0, %v5597_v46, 0.0  ;;  %v9046_v39 = vpack.c.bf16 %v9276_v45, %v9275_v59 }
0x295f   :  { %5602 = vadd.xlane.f32.xlu0 %v5601_v37  ;;  %v5598_v26 = vsel %vm194_vm0, %v5596_v38, 0.0  ;;  %v9284_v21 = vpop.permute.xlu1 %9283 }
0x2960   :  { %9047 = vmatprep.subr.bf16.mxu0 %v9046_v39  ;;  %v9286_v62 = vunpack.i.h.bf16 %v9284_v21  ;;  %v9285_v0 = vunpack.i.l.bf16 %v9284_v21 }
0x2961   :  { %9049 = vmatpush3.bf16.msra.mxu0 %v9046_v39 }
0x2962   :  { %v9054_v28 = vpack.c.bf16 %v9286_v62, %v9285_v0 }
0x2963   :  { %5599 = vadd.xlane.f32.xlu0 %v5598_v26  ;;  %v9289_v27 = vpop.permute.xlu1 %9288 }
0x2964   :  { %9055 = vmatprep.subr.bf16.mxu1 %v9054_v28  ;;  %v9290_v15 = vunpack.i.l.bf16 %v9289_v27 }
0x2979   :  { %9278 = vrot.lane.b32.xlu0 %v9277_v42, %s9689_s5 }
0x297d   :  { %5747 = vrot.lane.b32.xlu0 %v10715_v44, %s9689_s5 }
0x29ec   :  { %v5603_v47 = vpop.xlane.xlu0 %5602 }
0x29ed   :  { %v5605_v48 = vmul.f32 0.03125, %v5603_v47 }
0x29ef   :  { %v5607_v41 = vadd.f32 1e-05, %v5605_v48 }
0x29f0   :  { %v5600_v57 = vpop.xlane.xlu0 %5599 }
0x29f1   :  { %9460 = vrsqrt.f32 %v5607_v41  ;;  %v5604_v16 = vmul.f32 0.03125, %v5600_v57 }
0x29f3   :  { %v5606_v20 = vadd.f32 1e-05, %v5604_v16 }
0x29f4   :  { %v9279_v49 = vpop.permute.xlu0 %9278 }
0x29f5   :  { %9462 = vrsqrt.f32 %v5606_v20  ;;  %v9281_v50 = vunpack.i.h.bf16 %v9279_v49  ;;  %v9280_v52 = vunpack.i.l.bf16 %v9279_v49 }
0x29f7   :  { %v9050_v53 = vpack.c.bf16 %v9281_v50, %v9280_v52 }
0x29f8   :  { %v5748_v12 = vpop.permute.xlu0 %5747 }
0x29f9   :  { %9051 = vmatprep.subr.bf16.mxu0 %v9050_v53 }
0x29fa   :  { %9053 = vmatpush3.bf16.msra.mxu0 %v9050_v53 }
0x29fb   :  { %v9461_v32 = vpop.eup %9460  ;;  %9062 = vmatprep.subr.bf16.mxu0 %v9698_v6 }
0x29fc   :  { %v5611_v58 = vmul.f32 %v9461_v32, %v5595_v34 }
0x29fd   :  { %8706 = vmatmul.mubr.msk.f32.vlgmr.msra.gmra.mrb[60].mxu0 %vm194_vm0, %v10197_v51 }
0x29fe   :  { %8708 = vmatprep.mubr.msk.f32.mxu0 %vm194_vm0, %v10199_v54  ;;  %v5619_v1 = vmul.f32 %v7904_v60, %v5611_v58  ;;  %v9291_v54 = vunpack.i.h.bf16 %v9289_v27 }
0x29ff   :  { %v9463_v63 = vpop.eup %9462 }
0x2a00   :  { %v5610_v2 = vmul.f32 %v9463_v63, %v5594_v35  ;;  %v10736_v51 = vadd.f32 %v7905_v31, %v5619_v1  ;;  %v9058_v10 = vpack.c.bf16 %v9291_v54, %v9290_v15 }
0x2a01   :  { %8709 = vmatmul.mubr.msk.f32.gmra.mrb[62].mxu0 %vm194_vm0, %v10211_v3  ;;  %v9510_v3 = vld [vmem:[#allocation5] sm:$0xff] }
0x2a02   :  { %v5618_v9 = vmul.f32 %v7904_v60, %v5610_v2  ;;  %8729 = vmatprep.mubr.msk.f32.mxu0 %vm9688_vm1, %v9687_v14  ;;  %v5629_v23 = vadd.f32 %v10498_v7, %v10736_v51  ;;  %v9513_v7 = vld [vmem:[#allocation5 + $0x18] sm:$0xff] }
0x2a04   :  { %v10738_v55 = vadd.f32 %v7905_v31, %v5618_v9 }
0x2a06   :  { %v5628_v56 = vadd.f32 %v10494_v61, %v10738_v55  ;;  %v9512_v61 = vld [vmem:[#allocation5 + $0x10] sm:$0xff] }
0x2a08   :  { %8694 = vmatprep.mubr.msk.f32.mxu1 %vm194_vm0, %v5628_v56 }
0x2a09   :  { %8695 = vmatmul.mubr.msk.f32.vlgmr.msra.gmra.mrb[64].mxu1 %vm194_vm0, %v5629_v23 }
0x2a0a   :  { %9057 = vmatpush3.bf16.msra.mxu1 %v9054_v28  ;;  %8719 = vmatprep.mubr.msk.f32.mxu1 %vm194_vm0, %v9510_v3 }
0x2a0b   :  { %9059 = vmatprep.subr.bf16.mxu1 %v9058_v10 }
0x2a0e   :  { %9061 = vmatpush3.bf16.msra.mxu1 %v9058_v10 }
0x2a0f   :  { %9066 = vmatprep.subr.bf16.mxu1 %v9698_v6 }
0x2a11   :  { %8720 = vmatmul.mubr.msk.f32.vlgmr.msra.gmra.mrb[66].mxu1 %vm194_vm0, %v9511_v13 }
0x2a12   :  { %8722 = vmatprep.mubr.msk.f32.mxu1 %vm194_vm0, %v9512_v61 }
0x2a15   :  { %8723 = vmatmul.mubr.msk.f32.gmra.mrb[68].mxu1 %vm194_vm0, %v9513_v7 }
0x2a16   :  { %8736 = vmatprep.mubr.msk.f32.mxu1 %vm9688_vm1, %v9687_v14 }
0x2ad0   :  { %v8707_v17 = vpop.f32.mrb[60].mxu0 }
0x2ad1   :  { %v5822_v18 = vadd.f32 %v8707_v17, %v5748_v12  ;;  %v5816_v19 = vpop.f32.mrb[61].mxu0 }
0x2ad2   :  { %v5817_v29 = vadd.f32 %v5816_v19, %v5748_v12 }
0x2ad4   :  { %v9063_v22 = vpack.c.bf16 %v5822_v18, %v5817_v29  ;;  %v8710_v24 = vpop.f32.mrb[62].mxu0  ;;  %v10753_v33 = vpack.i.bf16 %v5822_v18, %v5817_v29 }
0x2ad5   :  { %v5832_v25 = vadd.f32 %v8710_v24, %v5748_v12  ;;  %v5826_v4 = vpop.f32.mrb[63].mxu0 }
0x2ad6   :  { %v5827_v30 = vadd.f32 %v5826_v4, %v5748_v12  ;;  %9065 = vmatpush3.bf16.xpose.msk.msra.mxu0 %vm10240_vm5, %v9063_v22 }
0x2ad7   :  { %9070 = vmatprep.subr.bf16.mxu0 %v9698_v6 }
0x2ad8   :  { %v9067_v34 = vpack.c.bf16 %v5832_v25, %v5827_v30  ;;  %v10758_v35 = vpack.i.bf16 %v5832_v25, %v5827_v30 }
0x2ada   :  { %9069 = vmatpush3.bf16.xpose.msk.msra.mxu1 %vm10240_vm5, %v9067_v34 }
0x2adb   :  { %9073 = vmatprep.subr.bf16.mxu1 %v9698_v6 }
0x2adc   :  { %v8696_v46 = vpop.f32.mrb[64].mxu1 }
0x2add   :  { %v5722_v37 = vpop.f32.mrb[65].mxu1  ;;  %v10767_v26 = vadd.f32 %v8696_v46, %v10715_v44 }
0x2ade   :  { %v10764_v38 = vadd.f32 %v10715_v44, %v5722_v37 }
0x2ae0   :  { %8730 = vmatmul.mubr.msk.f32.vlgmr.msra.gmra.mrb[64].mxu0 %vm379_vm2, %v10764_v38 }
0x2ae1   :  { %8737 = vmatmul.mubr.msk.f32.vlgmr.msra.gmra.mrb[70].mxu1 %vm379_vm2, %v10767_v26  ;;  %8743 = vmatprep.mubr.msk.f32.mxu0 %vm9688_vm1, %v9687_v14 }
0x2ae2   :  { %8750 = vmatprep.mubr.msk.f32.mxu1 %vm9688_vm1, %v9687_v14 }
0x2ae4   :  { %v8721_v8 = vpop.f32.mrb[66].mxu1 }
0x2ae5   :  { %v5916_v40 = vpop.f32.mrb[67].mxu1 }
0x2ae8   :  { %v8724_v36 = vpop.f32.mrb[68].mxu1 }
0x2ae9   :  { %v5926_v45 = vpop.f32.mrb[69].mxu1 }
0x2bb3   :  { %v6010_v59 = vpop.f32.mrb[64].mxu0 }
0x2bb4   :  { %v8731_v39 = vpop.f32.mrb[65].mxu0  ;;  %v6089_v42 = vpop.f32.mrb[70].mxu1  ;;  %v6093_v43 = vsel %vm1717_vm3, %v6010_v59, -inf }
0x2bb5   :  { %v8738_v5 = vpop.f32.mrb[71].mxu1  ;;  %6094 = vmax.xlane.f32.xlu1 %v6093_v43  ;;  %v6096_v47 = vsel %vm1717_vm3, %v6089_v42, -inf }
0x2bb6   :  { %6097 = vmax.xlane.f32.xlu0 %v6096_v47 }
0x2c42   :  { %v6095_v48 = vpop.xlane.xlu1 %6094 }
0x2c43   :  { %v6099_v41 = vsub.f32 %v6010_v59, %v6095_v48  ;;  %v6098_v57 = vpop.xlane.xlu0 %6097 }
0x2c44   :  { %v6100_v16 = vsub.f32 %v6089_v42, %v6098_v57 }
0x2c45   :  { %v6101_v20 = vmul.f32 1.442695, %v6099_v41 }
0x2c46   :  { %v6103_v49 = vmul.f32 1.442695, %v6100_v16 }
0x2c47   :  { %9464 = vpow2.f32 %v6101_v20 }
0x2c48   :  { %9466 = vpow2.f32 %v6103_v49 }
0x2c51   :  { %v9465_v50 = vpop.eup %9464 }
0x2c52   :  { %v9467_v52 = vpop.eup %9466  ;;  %v6105_v53 = vsel %vm1717_vm3, %v9465_v50, 0.0 }
0x2c53   :  { %6106 = vadd.xlane.f32.xlu0 %v6105_v53  ;;  %v6108_v32 = vsel %vm1717_vm3, %v9467_v52, 0.0 }
0x2c54   :  { %6109 = vadd.xlane.f32.xlu1 %v6108_v32 }
0x2c65   :  { %9293 = vrot.lane.b32.xlu1 %v10753_v33, %s9691_s6 }
0x2c69   :  { %9298 = vrot.lane.b32.xlu1 %v10758_v35, %s9691_s6  ;;  %5847 = vrot.lane.b32.xlu0 %v10715_v44, %s9686_s30 }
0x2c6d   :  { %6343 = vrot.lane.b32.xlu1 %v10767_v26, %s9691_s6  ;;  %6261 = vrot.lane.b32.xlu0 %v10764_v38, %s9691_s6 }
0x2ce0   :  { %v6107_v58 = vpop.xlane.xlu0 %6106 }
0x2ce1   :  { %9468 = vrcp.f32 %v6107_v58  ;;  %v6110_v60 = vpop.xlane.xlu1 %6109 }
0x2ce2   :  { %9470 = vrcp.f32 %v6110_v60 }
0x2ce4   :  { %v5848_v21 = vpop.permute.xlu0 %5847 }
0x2ce5   :  { %v5917_v62 = vadd.f32 %v5916_v40, %v5848_v21  ;;  %v5922_v0 = vadd.f32 %v8721_v8, %v5848_v21  ;;  %v5927_v63 = vadd.f32 %v5926_v45, %v5848_v21  ;;  %v5932_v1 = vadd.f32 %v8724_v36, %v5848_v21  ;;  %v9294_v2 = vpop.permute.xlu1 %9293 }
0x2ce6   :  { %v9296_v15 = vunpack.i.h.bf16 %v9294_v2  ;;  %v9295_v10 = vunpack.i.l.bf16 %v9294_v2 }
0x2ce7   :  { %v9071_v31 = vpack.c.bf16 %v5922_v0, %v5917_v62  ;;  %v9074_v28 = vpack.c.bf16 %v5932_v1, %v5927_v63  ;;  %v10791_v27 = vpack.i.bf16 %v5922_v0, %v5917_v62  ;;  %v10793_v44 = vpack.i.bf16 %v5932_v1, %v5927_v63 }
0x2ce8   :  { %v9077_v7 = vpack.c.bf16 %v9296_v15, %v9295_v10  ;;  %v6262_v17 = vpop.permute.xlu0 %6261 }
0x2ce9   :  { %9072 = vmatpush3.bf16.msra.mxu0 %v9071_v31  ;;  %9075 = vmatpush3.bf16.msra.mxu1 %v9074_v28  ;;  %v9299_v9 = vpop.permute.xlu1 %9298 }
0x2cea   :  { %9076 = vmatprep.subr.bf16.mxu0 %v9698_v6  ;;  %9080 = vmatprep.subr.bf16.mxu1 %v9698_v6  ;;  %v9301_v3 = vunpack.i.h.bf16 %v9299_v9  ;;  %v9300_v13 = vunpack.i.l.bf16 %v9299_v9 }
0x2ceb   :  { %v9469_v54 = vpop.eup %9468 }
0x2cec   :  { %v9471_v56 = vpop.eup %9470  ;;  %v6113_v23 = vmul.f32 %v9469_v54, %v9465_v50  ;;  %v9081_v12 = vpack.c.bf16 %v9301_v3, %v9300_v13 }
0x2ced   :  { %v6114_v61 = vmul.f32 %v9471_v56, %v9467_v52  ;;  %v6344_v18 = vpop.permute.xlu1 %6343 }
0x2cee   :  { %8744 = vmatmul.mubr.msk.f32.vlgmr.msra.gmra.mrb[66].mxu0 %vm1717_vm3, %v6113_v23 }
0x2cef   :  { %8751 = vmatmul.mubr.msk.f32.vlgmr.msra.gmra.mrb[72].mxu1 %vm1717_vm3, %v6114_v61  ;;  %8757 = vmatprep.mubr.msk.f32.mxu0 %vm9688_vm1, %v9687_v14 }
0x2cf0   :  { %8764 = vmatprep.mubr.msk.f32.mxu1 %vm9688_vm1, %v9687_v14 }
0x2cf2   :  { %9079 = vmatpush3.bf16.xpose.msk.msra.mxu0 %vm10240_vm5, %v9077_v7  ;;  %9083 = vmatpush3.bf16.xpose.msk.msra.mxu1 %vm10240_vm5, %v9081_v12 }
0x2cf3   :  { %9084 = vmatprep.subr.bf16.mxu0 %v9698_v6  ;;  %9087 = vmatprep.subr.bf16.mxu1 %v9698_v6 }
0x2cf9   :  { %8758 = vmatmul.mubr.msk.f32.vlgmr.msra.gmra.mrb[68].mxu0 %vm379_vm2, %v6262_v17  ;;  %8765 = vmatmul.mubr.msk.f32.vlgmr.msra.gmra.mrb[74].mxu1 %vm379_vm2, %v6344_v18 }
0x2cfa   :  { %8778 = vmatprep.mubr.msk.f32.mxu1 %vm9688_vm1, %v9687_v14  ;;  %8771 = vmatprep.mubr.msk.f32.mxu0 %vm9688_vm1, %v9687_v14 }
0x2dc1   :  { %v10815_v19 = vpop.f32.mrb[66].mxu0 }
0x2dc2   :  { %v8745_v29 = vpop.f32.mrb[67].mxu0  ;;  %v10817_v22 = vpop.f32.mrb[72].mxu1 }
0x2dc3   :  { %v8752_v24 = vpop.f32.mrb[73].mxu1 }
0x2dcc   :  { %v6339_v25 = vpop.f32.mrb[68].mxu0  ;;  %v6421_v4 = vpop.f32.mrb[74].mxu1 }
0x2dcd   :  { %v8759_v30 = vpop.f32.mrb[69].mxu0  ;;  %v8766_v34 = vpop.f32.mrb[75].mxu1  ;;  %v6428_v46 = vsel %vm1717_vm3, %v6421_v4, -inf  ;;  %v6425_v37 = vsel %vm1717_vm3, %v6339_v25, -inf }
0x2dce   :  { %6429 = vmax.xlane.f32.xlu1 %v6428_v46  ;;  %6426 = vmax.xlane.f32.xlu0 %v6425_v37 }
0x2ddf   :  { %9303 = vrot.lane.b32.xlu1 %v10791_v27, %s9691_s6 }
0x2de3   :  { %9313 = vrot.lane.b32.xlu1 %v10753_v33, %s9693_s28 }
0x2de7   :  { %9318 = vrot.lane.b32.xlu1 %v10758_v35, %s9693_s28 }
0x2deb   :  { %6691 = vrot.lane.b32.xlu1 %v10767_v26, %s9693_s28 }
0x2e5b   :  { %v6430_v8 = vpop.xlane.xlu1 %6429  ;;  %v6427_v40 = vpop.xlane.xlu0 %6426 }
0x2e5c   :  { %v6432_v36 = vsub.f32 %v6421_v4, %v6430_v8  ;;  %v6431_v45 = vsub.f32 %v6339_v25, %v6427_v40 }
0x2e5e   :  { %v6435_v59 = vmul.f32 1.442695, %v6432_v36  ;;  %v6433_v39 = vmul.f32 1.442695, %v6431_v45 }
0x2e5f   :  { %v9304_v42 = vpop.permute.xlu1 %9303 }
0x2e60   :  { %9472 = vpow2.f32 %v6435_v59  ;;  %v9306_v43 = vunpack.i.h.bf16 %v9304_v42  ;;  %v9305_v5 = vunpack.i.l.bf16 %v9304_v42 }
0x2e61   :  { %9474 = vpow2.f32 %v6433_v39 }
0x2e62   :  { %v9085_v47 = vpack.c.bf16 %v9306_v43, %v9305_v5 }
0x2e63   :  { %v9314_v50 = vpop.permute.xlu1 %9313 }
0x2e64   :  { %9086 = vmatpush3.bf16.msra.mxu0 %v9085_v47  ;;  %v9316_v21 = vunpack.i.h.bf16 %v9314_v50  ;;  %v9315_v62 = vunpack.i.l.bf16 %v9314_v50 }
0x2e65   :  { %9090 = vmatprep.subr.bf16.mxu0 %v9698_v6 }
0x2e66   :  { %v9091_v9 = vpack.c.bf16 %v9316_v21, %v9315_v62 }
0x2e67   :  { %v9319_v0 = vpop.permute.xlu1 %9318 }
0x2e68   :  { %v9321_v2 = vunpack.i.h.bf16 %v9319_v0  ;;  %v9320_v31 = vunpack.i.l.bf16 %v9319_v0 }
0x2e6a   :  { %v9473_v48 = vpop.eup %9472  ;;  %v9095_v54 = vpack.c.bf16 %v9321_v2, %v9320_v31 }
0x2e6b   :  { %v6440_v41 = vsel %vm1717_vm3, %v9473_v48, 0.0  ;;  %v9475_v57 = vpop.eup %9474  ;;  %v6692_v56 = vpop.permute.xlu1 %6691 }
0x2e6c   :  { %6441 = vadd.xlane.f32.xlu0 %v6440_v41  ;;  %v6437_v16 = vsel %vm1717_vm3, %v9475_v57, 0.0 }
0x2e70   :  { %6438 = vadd.xlane.f32.xlu0 %v6437_v16 }
0x2e86   :  { %9308 = vrot.lane.b32.xlu0 %v10793_v44, %s9691_s6 }
0x2e8a   :  { %6609 = vrot.lane.b32.xlu0 %v10764_v38, %s9693_s28 }
0x2ef9   :  { %v6442_v20 = vpop.xlane.xlu0 %6441 }
0x2efa   :  { %9476 = vrcp.f32 %v6442_v20 }
0x2efd   :  { %v6439_v49 = vpop.xlane.xlu0 %6438 }
0x2efe   :  { %9478 = vrcp.f32 %v6439_v49 }
0x2f01   :  { %v9309_v52 = vpop.permute.xlu0 %9308 }
0x2f02   :  { %v9311_v53 = vunpack.i.h.bf16 %v9309_v52  ;;  %v9310_v32 = vunpack.i.l.bf16 %v9309_v52 }
0x2f04   :  { %v9477_v58 = vpop.eup %9476  ;;  %v9088_v60 = vpack.c.bf16 %v9311_v53, %v9310_v32 }
0x2f05   :  { %v6446_v63 = vmul.f32 %v9477_v58, %v9473_v48  ;;  %v6610_v15 = vpop.permute.xlu0 %6609 }
0x2f06   :  { %9089 = vmatpush3.bf16.msra.mxu1 %v9088_v60 }
0x2f07   :  { %9094 = vmatprep.subr.bf16.mxu1 %v9698_v6 }
0x2f08   :  { %v9479_v1 = vpop.eup %9478 }
0x2f09   :  { %v6445_v28 = vmul.f32 %v9479_v1, %v9475_v57  ;;  %8779 = vmatmul.mubr.msk.f32.vlgmr.msra.gmra.mrb[76].mxu1 %vm1717_vm3, %v6446_v63 }
0x2f0a   :  { %8792 = vmatprep.mubr.msk.f32.mxu1 %vm9688_vm1, %v9687_v14 }
0x2f0b   :  { %8772 = vmatmul.mubr.msk.f32.vlgmr.msra.gmra.mrb[70].mxu0 %vm1717_vm3, %v6445_v28 }
0x2f0c   :  { %9093 = vmatpush3.bf16.xpose.msk.msra.mxu0 %vm10240_vm5, %v9091_v9  ;;  %8785 = vmatprep.mubr.msk.f32.mxu0 %vm9688_vm1, %v9687_v14 }
0x2f0d   :  { %9098 = vmatprep.subr.bf16.mxu0 %v9698_v6 }
0x2f0f   :  { %9097 = vmatpush3.bf16.xpose.msk.msra.mxu1 %vm10240_vm5, %v9095_v54 }
0x2f10   :  { %9101 = vmatprep.subr.bf16.mxu1 %v9698_v6 }
0x2f13   :  { %8786 = vmatmul.mubr.msk.f32.vlgmr.msra.gmra.mrb[72].mxu0 %vm379_vm2, %v6610_v15 }
0x2f14   :  { %8799 = vmatprep.mubr.msk.f32.mxu0 %vm9688_vm1, %v9687_v14 }
0x2f16   :  { %8793 = vmatmul.mubr.msk.f32.vlgmr.msra.gmra.mrb[78].mxu1 %vm379_vm2, %v6692_v56 }
0x2f17   :  { %8806 = vmatprep.mubr.msk.f32.mxu1 %vm9688_vm1, %v9687_v14 }
0x2fdc   :  { %v10855_v23 = vpop.f32.mrb[76].mxu1 }
0x2fdd   :  { %v8780_v10 = vpop.f32.mrb[77].mxu1 }
0x2fde   :  { %v10857_v3 = vpop.f32.mrb[70].mxu0 }
0x2fdf   :  { %v8773_v13 = vpop.f32.mrb[71].mxu0 }
0x2fe6   :  { %v6687_v61 = vpop.f32.mrb[72].mxu0 }
0x2fe7   :  { %v8787_v7 = vpop.f32.mrb[73].mxu0  ;;  %v6773_v12 = vsel %vm1717_vm3, %v6687_v61, -inf }
0x2fe8   :  { %6774 = vmax.xlane.f32.xlu0 %v6773_v12 }
0x2fe9   :  { %v6769_v17 = vpop.f32.mrb[78].mxu1 }
0x2fea   :  { %v8794_v18 = vpop.f32.mrb[79].mxu1  ;;  %v6776_v29 = vsel %vm1717_vm3, %v6769_v17, -inf }
0x2feb   :  { %6777 = vmax.xlane.f32.xlu1 %v6776_v29 }
0x2ffc   :  { %9323 = vrot.lane.b32.xlu1 %v10791_v27, %s9693_s28 }
0x3000   :  { %9333 = vrot.lane.b32.xlu1 %v10753_v33, %s11086_s23 }
0x3004   :  { %9338 = vrot.lane.b32.xlu1 %v10758_v35, %s11086_s23 }
0x3008   :  { %7035 = vrot.lane.b32.xlu1 %v10767_v26, %s11086_s23 }
0x3075   :  { %v6775_v24 = vpop.xlane.xlu0 %6774 }
0x3076   :  { %v6779_v25 = vsub.f32 %v6687_v61, %v6775_v24 }
0x3078   :  { %v6778_v4 = vpop.xlane.xlu1 %6777  ;;  %v6781_v34 = vmul.f32 1.442695, %v6779_v25 }
0x3079   :  { %v6780_v30 = vsub.f32 %v6769_v17, %v6778_v4 }
0x307b   :  { %v6783_v46 = vmul.f32 1.442695, %v6780_v30 }
0x307c   :  { %v9324_v37 = vpop.permute.xlu1 %9323 }
0x307d   :  { %9480 = vpow2.f32 %v6783_v46  ;;  %v9326_v8 = vunpack.i.h.bf16 %v9324_v37  ;;  %v9325_v40 = vunpack.i.l.bf16 %v9324_v37 }
0x307e   :  { %9482 = vpow2.f32 %v6781_v34 }
0x307f   :  { %v9099_v36 = vpack.c.bf16 %v9326_v8, %v9325_v40 }
0x3080   :  { %v9334_v42 = vpop.permute.xlu1 %9333 }
0x3081   :  { %9100 = vmatpush3.bf16.msra.mxu0 %v9099_v36  ;;  %v9336_v57 = vunpack.i.h.bf16 %v9334_v42  ;;  %v9335_v16 = vunpack.i.l.bf16 %v9334_v42  ;;  %v5639_v36 = vld [vmem:[#allocation10 + $0x28] sm:$0xff] }
0x3082   :  { %9104 = vmatprep.subr.bf16.mxu0 %v9698_v6 }
0x3083   :  { %v9105_v32 = vpack.c.bf16 %v9336_v57, %v9335_v16 }
0x3084   :  { %v9339_v20 = vpop.permute.xlu1 %9338 }
0x3085   :  { %v9341_v52 = vunpack.i.h.bf16 %v9339_v20 }
0x3087   :  { %v9481_v33 = vpop.eup %9480 }
0x3088   :  { %v6788_v35 = vsel %vm1717_vm3, %v9481_v33, 0.0  ;;  %v9483_v45 = vpop.eup %9482  ;;  %v7036_v21 = vpop.permute.xlu1 %7035 }
0x3089   :  { %6789 = vadd.xlane.f32.xlu0 %v6788_v35  ;;  %v6785_v26 = vsel %vm1717_vm3, %v9483_v45, 0.0  ;;  %v5640_v35 = vld [vmem:[#allocation10 + $0x30] sm:$0xff] }
0x308d   :  { %6786 = vadd.xlane.f32.xlu0 %v6785_v26 }
0x30a3   :  { %9328 = vrot.lane.b32.xlu0 %v10793_v44, %s9693_s28  ;;  %s11090_s28 = sld [smem:[#allocation29_spill]] }
0x30a7   :  { %6953 = vrot.lane.b32.xlu0 %v10764_v38, %s11086_s23  ;;  %v9340_v38 = vunpack.i.l.bf16 %v9339_v20 }
0x30a9   :  { %v9109_v58 = vpack.c.bf16 %v9341_v52, %v9340_v38 }
0x3116   :  { %v6790_v59 = vpop.xlane.xlu0 %6789 }
0x3117   :  { %9484 = vrcp.f32 %v6790_v59 }
0x311a   :  { %v6787_v39 = vpop.xlane.xlu0 %6786 }
0x311b   :  { %9486 = vrcp.f32 %v6787_v39 }
0x311e   :  { %v9329_v43 = vpop.permute.xlu0 %9328 }
0x311f   :  { %v9331_v5 = vunpack.i.h.bf16 %v9329_v43  ;;  %v9330_v47 = vunpack.i.l.bf16 %v9329_v43 }
0x3121   :  { %v9485_v48 = vpop.eup %9484  ;;  %v9102_v41 = vpack.c.bf16 %v9331_v5, %v9330_v47 }
0x3122   :  { %v6794_v49 = vmul.f32 %v9485_v48, %v9481_v33  ;;  %v6954_v60 = vpop.permute.xlu0 %6953 }
0x3123   :  { %9103 = vmatpush3.bf16.msra.mxu1 %v9102_v41 }
0x3124   :  { %9108 = vmatprep.subr.bf16.mxu1 %v9698_v6 }
0x3125   :  { %v9487_v50 = vpop.eup %9486 }
0x3126   :  { %v6793_v53 = vmul.f32 %v9487_v50, %v9483_v45  ;;  %8807 = vmatmul.mubr.msk.f32.vlgmr.msra.gmra.mrb[80].mxu1 %vm1717_vm3, %v6794_v49  ;;  %v5641_v45 = vld [vmem:[#allocation10 + $0x38] sm:$0xff] }
0x3127   :  { %8820 = vmatprep.mubr.msk.f32.mxu1 %vm9688_vm1, %v9687_v14  ;;  %v9122_v26 = vpack.c.bf16 %v5641_v45, %v5640_v35 }
0x3128   :  { %8800 = vmatmul.mubr.msk.f32.vlgmr.msra.gmra.mrb[74].mxu0 %vm1717_vm3, %v6793_v53 }
0x3129   :  { %9107 = vmatpush3.bf16.xpose.msk.msra.mxu0 %vm10240_vm5, %v9105_v32  ;;  %8813 = vmatprep.mubr.msk.f32.mxu0 %vm9688_vm1, %v9687_v14 }
0x312a   :  { %9112 = vmatprep.subr.bf16.mxu0 %v9698_v6 }
0x312c   :  { %9111 = vmatpush3.bf16.xpose.msk.msra.mxu1 %vm10240_vm5, %v9109_v58 }
0x312d   :  { %9115 = vmatprep.subr.bf16.mxu1 %v9698_v6 }
0x3130   :  { %8814 = vmatmul.mubr.msk.f32.vlgmr.msra.gmra.mrb[76].mxu0 %vm379_vm2, %v6954_v60 }
0x3131   :  { %8827 = vmatprep.mubr.msk.f32.mxu0 %vm9688_vm1, %v9687_v14 }
0x3133   :  { %8821 = vmatmul.mubr.msk.f32.vlgmr.msra.gmra.mrb[82].mxu1 %vm379_vm2, %v7036_v21 }
0x3134   :  { %8834 = vmatprep.mubr.msk.f32.mxu1 %vm9688_vm1, %v9687_v14 }
0x31f9   :  { %v6949_v62 = vpop.f32.mrb[80].mxu1 }
0x31fa   :  { %v8808_v0 = vpop.f32.mrb[81].mxu1 }
0x31fb   :  { %v6870_v63 = vpop.f32.mrb[74].mxu0 }
0x31fc   :  { %v8801_v1 = vpop.f32.mrb[75].mxu0 }
0x3203   :  { %v7031_v11 = vpop.f32.mrb[76].mxu0 }
0x3204   :  { %v8815_v2 = vpop.f32.mrb[77].mxu0  ;;  %v7117_v6 = vsel %vm1717_vm3, %v7031_v11, -inf }
0x3205   :  { %7118 = vmax.xlane.f32.xlu0 %v7117_v6 }
0x3206   :  { %v7113_v31 = vpop.f32.mrb[82].mxu1 }
0x3207   :  { %v8822_v28 = vpop.f32.mrb[83].mxu1  ;;  %v7120_v9 = vsel %vm1717_vm3, %v7113_v31, -inf }
0x3208   :  { %7121 = vmax.xlane.f32.xlu1 %v7120_v9 }
0x3219   :  { %9343 = vrot.lane.b32.xlu1 %v10791_v27, %s11086_s23 }
0x321d   :  { %7299 = vrot.lane.b32.xlu1 %v10857_v3, %s11087_s10 }
0x3221   :  { %7301 = vrot.lane.b32.xlu1 %v10855_v23, %s11087_s10 }
0x3225   :  { %7309 = vrot.lane.b32.xlu1 %v6949_v62, %s11088_s22 }
0x3292   :  { %v7119_v14 = vpop.xlane.xlu0 %7118 }
0x3293   :  { %v7123_v54 = vsub.f32 %v7031_v11, %v7119_v14 }
0x3295   :  { %v7122_v15 = vpop.xlane.xlu1 %7121  ;;  %v7125_v10 = vmul.f32 1.442695, %v7123_v54 }
0x3296   :  { %v7124_v56 = vsub.f32 %v7113_v31, %v7122_v15  ;;  %v7464_v15 = vld [vmem:[#allocation11 + $0x28] sm:$0xff] }
0x3298   :  { %v7127_v13 = vmul.f32 1.442695, %v7124_v56 }
0x3299   :  { %v9344_v61 = vpop.permute.xlu1 %9343 }
0x329a   :  { %9488 = vpow2.f32 %v7127_v13  ;;  %v9346_v7 = vunpack.i.h.bf16 %v9344_v61  ;;  %v9345_v12 = vunpack.i.l.bf16 %v9344_v61  ;;  %v7466_v13 = vld [vmem:[#allocation11 + $0x38] sm:$0xff] }
0x329b   :  { %9490 = vpow2.f32 %v7125_v10  ;;  %v7465_v10 = vld [vmem:[#allocation11 + $0x30] sm:$0xff] }
0x329c   :  { %v9113_v27 = vpack.c.bf16 %v9346_v7, %v9345_v12  ;;  %v9130_v61 = vpack.c.bf16 %v7466_v13, %v7465_v10  ;;  %v7966_v7 = vld [vmem:[%s11023_s14 + $0x40] sm:$0xff]  ;;  %v7967_v12 = vld [vmem:[%s11023_s14 + $0x48] sm:$0xff] }
0x329d   :  { %v7300_v5 = vpop.permute.xlu1 %7299  ;;  %v7980_v10 = vld [vmem:[%s11029_s20 + $0x1] ss:$0 sm:$0xff] }
0x329e   :  { %9114 = vmatpush3.bf16.msra.mxu0 %v9113_v27  ;;  %v7321_v57 = vsel %vm379_vm2, %v10815_v19, %v7300_v5  ;;  %v7955_v19 = vld [vmem:[%s11020_s11 + $0x1] ss:$0 sm:$0xff]  ;;  %v7968_v27 = vld [vmem:[%s11023_s14 + $0x50] sm:$0xff]  ;;  %s11089_s11 = sld [smem:[#allocation28_spill]] }
0x32a1   :  { %v7302_v47 = vpop.permute.xlu1 %7301 }
0x32a2   :  { %v7322_v20 = vsel %vm379_vm2, %v10817_v22, %v7302_v47  ;;  %v7963_v47 = vld [vmem:[%s11022_s13 + $0x1] ss:$0 sm:$0xff] }
0x32a4   :  { %v9489_v17 = vpop.eup %9488 }
0x32a5   :  { %v7132_v3 = vsel %vm1717_vm3, %v9489_v17, 0.0  ;;  %v9491_v18 = vpop.eup %9490  ;;  %v7310_v48 = vpop.permute.xlu1 %7309 }
0x32a6   :  { %7133 = vadd.xlane.f32.xlu0 %v7132_v3  ;;  %v7129_v23 = vsel %vm1717_vm3, %v9491_v18, 0.0  ;;  %v7324_v52 = vsel %vm1717_vm3, %v7322_v20, %v7310_v48  ;;  %v7969_v3 = vld [vmem:[%s11023_s14 + $0x58] sm:$0xff] }
0x32aa   :  { %7130 = vadd.xlane.f32.xlu0 %v7129_v23  ;;  %v7970_v23 = vld [vmem:[%s11023_s14 + $0x60] sm:$0xff] }
0x32c0   :  { %9348 = vrot.lane.b32.xlu0 %v10793_v44, %s11086_s23  ;;  %v5638_v44 = vld [vmem:[#allocation10 + $0x20] sm:$0xff] }
0x32c1   :  { %v9118_v33 = vpack.c.bf16 %v5639_v36, %v5638_v44  ;;  %v7961_v36 = vld [vmem:[%s11028_s19 + $0x1] ss:$0 sm:$0xff] }
0x32c3   :  { %9119 = vmatprep.subr.bf16.mxu0 %v9118_v33 }
0x32c4   :  { %7307 = vrot.lane.b32.xlu0 %v6870_v63, %s11088_s22 }
0x3333   :  { %v7134_v29 = vpop.xlane.xlu0 %7133 }
0x3334   :  { %9492 = vrcp.f32 %v7134_v29  ;;  %v7971_v29 = vld [vmem:[%s11023_s14 + $0x68] sm:$0xff] }
0x3337   :  { %v7131_v24 = vpop.xlane.xlu0 %7130 }
0x3338   :  { %9494 = vrcp.f32 %v7131_v24  ;;  %v9142_v24 = vpack.c.bf16 %v7971_v29, %v7970_v23 }
0x333b   :  { %v9349_v25 = vpop.permute.xlu0 %9348 }
0x333c   :  { %v9351_v4 = vunpack.i.h.bf16 %v9349_v25  ;;  %v9350_v30 = vunpack.i.l.bf16 %v9349_v25 }
0x333e   :  { %v9493_v34 = vpop.eup %9492  ;;  %v9116_v46 = vpack.c.bf16 %v9351_v4, %v9350_v30 }
0x333f   :  { %v7138_v37 = vmul.f32 %v9493_v34, %v9489_v17  ;;  %v7308_v41 = vpop.permute.xlu0 %7307  ;;  %v9134_v17 = vpack.c.bf16 %v7967_v12, %v7966_v7  ;;  %v7981_v7 = vld [vmem:[%s11030_s21 + $0x1] ss:$0 sm:$0xff] }
0x3340   :  { %9117 = vmatpush3.bf16.msra.mxu1 %v9116_v46  ;;  %v7323_v49 = vsel %vm1717_vm3, %v7321_v57, %v7308_v41 }
0x3342   :  { %v9495_v8 = vpop.eup %9494 }
0x3343   :  { %v7137_v40 = vmul.f32 %v9495_v8, %v9491_v18  ;;  %8835 = vmatmul.mubr.msk.f32.vlgmr.msra.gmra.mrb[84].mxu1 %vm1717_vm3, %v7138_v37  ;;  %v9138_v18 = vpack.c.bf16 %v7969_v3, %v7968_v27 }
0x3345   :  { %8828 = vmatmul.mubr.msk.f32.vlgmr.msra.gmra.mrb[78].mxu0 %vm1717_vm3, %v7137_v40  ;;  %v7960_v40 = vld [vmem:[%s11027_s18 + $0x1] ss:$0 sm:$0xff] }
0x3346   :  { %9121 = vmatpush3.bf16.msra.mxu0 %v9118_v33 }
0x3347   :  { %9123 = vmatprep.subr.bf16.mxu0 %v9122_v26 }
0x334a   :  { %9125 = vmatpush3.bf16.msra.mxu0 %v9122_v26 }
0x334b   :  { %9135 = vmatprep.subr.bf16.mxu0 %v9134_v17 }
0x3416   :  { %v7293_v59 = vpop.f32.mrb[84].mxu1 }
0x3417   :  { %7317 = vrot.lane.b32.xlu1 %v7293_v59, %s11082_s4  ;;  %v8836_v39 = vpop.f32.mrb[85].mxu1 }
0x3418   :  { %v7214_v42 = vpop.f32.mrb[78].mxu0 }
0x3419   :  { %7315 = vrot.lane.b32.xlu0 %v7214_v42, %s11082_s4  ;;  %v8829_v43 = vpop.f32.mrb[79].mxu0  ;;  %v7972_v42 = vld [vmem:[%s11023_s14 + $0x70] sm:$0xff]  ;;  %s9699_s4 = smov [#allocation13]  }
0x341a   :  { %v7973_v43 = vld [vmem:[%s11023_s14 + $0x78] sm:$0xff]  ;;  %s7755_s23 = sshll.u32 %s9699_s4, 4  ;;  %s7756_s23 = int_to_ptr.vmem [resolvable:$true] %s7755_s23 }
0x341b   :  { %v9146_v5 = vpack.c.bf16 %v7973_v43, %v7972_v42  ;;  %v7982_v42 = vld [vmem:[%s11089_s11] ss:$0 sm:$0xff]  ;;  %s9646_s22 = scalar_lea.vmem %s7756_s23, 256  ;;  %p9651_p7 = scmp.lt.s32.totalorder %s7756_s23, %s7756_s23 }
0x341c   :  { %p9647_p6 = scmp.ne.s32.totalorder %s7756_s23, %s9646_s22  ;;  %p9652_p8 = scmp.lt.s32.totalorder %s9646_s22, %s9646_s22 }
0x341e   :  { %p9653_p9 = por %p9652_p8, %p9651_p7 }
0x3420   :  { %p9654_p10 = pnand %p9653_p9, %p9647_p6 }
0x3489   :  { %v7318_v16 = vpop.permute.xlu1 %7317 }
0x348a   :  { %v7326_v53 = vsel %vm1720_vm4, %v7324_v52, %v7318_v16 }
0x348b   :  { %v7316_v50 = vpop.permute.xlu0 %7315 }
0x348c   :  { %v7325_v38 = vsel %vm1720_vm4, %v7323_v49, %v7316_v50  ;;  %v7975_v50 = vld [vmem:[%s11024_s15 + $0x1] ss:$0 sm:$0xff] }
0x348d   :  { %8845 = vmatprep.mubr.msk.f32.mxu0 %vm194_vm0, %v7325_v38 }
0x348e   :  { %8846 = vmatmul.mubr.msk.f32.vlgmr.msra.gmra.mrb[80].mxu0 %vm194_vm0, %v7326_v53 }
0x348f   :  { %9137 = vmatpush3.bf16.msra.mxu0 %v9134_v17 }
0x3490   :  { %9139 = vmatprep.subr.bf16.mxu0 %v9138_v18 }
0x3493   :  { %9141 = vmatpush3.bf16.msra.mxu0 %v9138_v18 }
0x3494   :  { %9143 = vmatprep.subr.bf16.mxu0 %v9142_v24 }
0x3497   :  { %9145 = vmatpush3.bf16.msra.mxu0 %v9142_v24 }
0x3498   :  { %9147 = vmatprep.subr.bf16.mxu0 %v9146_v5 }
0x349b   :  { %9149 = vmatpush3.bf16.msra.mxu0 %v9146_v5 }
0x3561   :  { %v8847_v32 = vpop.f32.mrb[80].mxu0 }
0x3562   :  { %v7411_v58 = vadd.f32 %v8847_v32, %v7955_v19  ;;  %v7405_v22 = vpop.f32.mrb[81].mxu0 }
0x3563   :  { %v7406_v60 = vadd.f32 %v7955_v19, %v7405_v22 }
0x3564   :  { %v7415_v21 = vadd.f32 %v7411_v58, %v10736_v51 }
0x3565   :  { %v7414_v62 = vadd.f32 %v7406_v60, %v10738_v55  ;;  %v7463_v55 = vld [vmem:[#allocation11 + $0x20] sm:$0xff] }
0x3566   :  { %v7423_v0 = vsel %vm194_vm0, %v7415_v21, 0.0  ;;  %v9126_v56 = vpack.c.bf16 %v7464_v15, %v7463_v55 }
0x3567   :  { %7424 = vadd.xlane.f32.xlu1 %v7423_v0  ;;  %v7420_v63 = vsel %vm194_vm0, %v7414_v62, 0.0 }
0x3568   :  { %7421 = vadd.xlane.f32.xlu0 %v7420_v63  ;;  %9127 = vmatprep.subr.bf16.mxu1 %v9126_v56 }
0x3569   :  { %9129 = vmatpush3.bf16.msra.mxu1 %v9126_v56 }
0x356a   :  { %9131 = vmatprep.subr.bf16.mxu1 %v9130_v61 }
0x356d   :  { %9133 = vmatpush3.bf16.msra.mxu1 %v9130_v61 }
0x35f4   :  { %v7425_v1 = vpop.xlane.xlu1 %7424 }
0x35f5   :  { %v7427_v11 = vmul.f32 0.03125, %v7425_v1  ;;  %v7422_v2 = vpop.xlane.xlu0 %7421 }
0x35f6   :  { %v7426_v6 = vmul.f32 0.03125, %v7422_v2 }
0x35f7   :  { %v7429_v31 = vsub.f32 %v7415_v21, %v7427_v11 }
0x35f8   :  { %v7428_v28 = vsub.f32 %v7414_v62, %v7426_v6 }
0x35f9   :  { %v7431_v54 = vmul.f32 %v7429_v31, %v7429_v31 }
0x35fa   :  { %v7430_v9 = vmul.f32 %v7428_v28, %v7428_v28 }
0x35fb   :  { %v7435_v51 = vsel %vm194_vm0, %v7431_v54, 0.0 }
0x35fc   :  { %v7432_v14 = vsel %vm194_vm0, %v7430_v9, 0.0 }
0x35fd   :  { %7433 = vadd.xlane.f32.xlu0 %v7432_v14 }
0x3601   :  { %7436 = vadd.xlane.f32.xlu0 %v7435_v51 }
0x368a   :  { %v7434_v25 = vpop.xlane.xlu0 %7433 }
0x368b   :  { %v7438_v4 = vmul.f32 0.03125, %v7434_v25 }
0x368d   :  { %v7440_v30 = vadd.f32 1e-05, %v7438_v4 }
0x368e   :  { %v7437_v34 = vpop.xlane.xlu0 %7436 }
0x368f   :  { %9496 = vrsqrt.f32 %v7440_v30  ;;  %v7439_v46 = vmul.f32 0.03125, %v7437_v34 }
0x3691   :  { %v7441_v37 = vadd.f32 1e-05, %v7439_v46 }
0x3693   :  { %9498 = vrsqrt.f32 %v7441_v37 }
0x3699   :  { %v9497_v8 = vpop.eup %9496 }
0x369a   :  { %v7444_v44 = vmul.f32 %v9497_v8, %v7428_v28 }
0x369c   :  { %v7452_v33 = vmul.f32 %v7960_v40, %v7444_v44 }
0x369d   :  { %v9499_v35 = vpop.eup %9498 }
0x369e   :  { %v7445_v45 = vmul.f32 %v9499_v35, %v7429_v31  ;;  %v7460_v26 = vadd.f32 %v7961_v36, %v7452_v33 }
0x36a0   :  { %v7453_v59 = vmul.f32 %v7960_v40, %v7445_v45  ;;  %8856 = vmatprep.mubr.msk.f32.mxu1 %vm194_vm0, %v7460_v26 }
0x36a2   :  { %v7461_v39 = vadd.f32 %v7961_v36, %v7453_v59 }
0x36a4   :  { %8857 = vmatmul.mubr.msk.f32.vlgmr.msra.gmra.mrb[86].mxu1 %vm194_vm0, %v7461_v39 }
0x3777   :  { %v8858_v48 = vpop.f32.mrb[86].mxu1 }
0x3778   :  { %v7553_v41 = vadd.f32 %v8858_v48, %v7963_v47  ;;  %v7547_v57 = vpop.f32.mrb[87].mxu1  ;;  %v7983_v48 = vld [vmem:[%s11090_s28] ss:$0 sm:$0xff] }
0x3779   :  { %v7548_v16 = vadd.f32 %v7963_v47, %v7547_v57 }
0x377a   :  { %v7557_v49 = vmax.f32 %v7553_v41, 0.0 }
0x377b   :  { %v7556_v20 = vmax.f32 %v7548_v16, 0.0 }
0x377d   :  { %8875 = vmatprep.mubr.msk.f32.mxu0 %vm3818_vm6, %v7556_v20 }
0x377e   :  { %8876 = vmatmul.mubr.msk.f32.vlgmr.msra.gmra.mrb[82].mxu0 %vm3818_vm6, %v7557_v49 }
0x3851   :  { %v8877_v52 = vpop.f32.mrb[82].mxu0 }
0x3852   :  { %v7653_v38 = vadd.f32 %v8877_v52, %v7975_v50  ;;  %v7647_v53 = vpop.f32.mrb[83].mxu0 }
0x3853   :  { %v7648_v19 = vadd.f32 %v7975_v50, %v7647_v53 }
0x3854   :  { %v7657_v32 = vadd.f32 %v7653_v38, %v7461_v39 }
0x3855   :  { %v7656_v58 = vadd.f32 %v7648_v19, %v7460_v26 }
0x3856   :  { %v7665_v22 = vsel %vm194_vm0, %v7657_v32, 0.0 }
0x3857   :  { %7666 = vadd.xlane.f32.xlu0 %v7665_v22  ;;  %v7662_v60 = vsel %vm194_vm0, %v7656_v58, 0.0 }
0x3858   :  { %7663 = vadd.xlane.f32.xlu1 %v7662_v60 }
0x38e4   :  { %v7667_v21 = vpop.xlane.xlu0 %7666 }
0x38e5   :  { %v7669_v62 = vmul.f32 0.03125, %v7667_v21  ;;  %v7664_v0 = vpop.xlane.xlu1 %7663 }
0x38e6   :  { %v7668_v63 = vmul.f32 0.03125, %v7664_v0 }
0x38e7   :  { %v7671_v1 = vsub.f32 %v7657_v32, %v7669_v62 }
0x38e8   :  { %v7670_v11 = vsub.f32 %v7656_v58, %v7668_v63 }
0x38e9   :  { %v7673_v2 = vmul.f32 %v7671_v1, %v7671_v1 }
0x38ea   :  { %v7672_v6 = vmul.f32 %v7670_v11, %v7670_v11 }
0x38eb   :  { %v7677_v31 = vsel %vm194_vm0, %v7673_v2, 0.0 }
0x38ec   :  { %7678 = vadd.xlane.f32.xlu0 %v7677_v31  ;;  %v7674_v28 = vsel %vm194_vm0, %v7672_v6, 0.0 }
0x38ed   :  { %7675 = vadd.xlane.f32.xlu1 %v7674_v28 }
0x3979   :  { %v7679_v9 = vpop.xlane.xlu0 %7678 }
0x397a   :  { %v7681_v14 = vmul.f32 0.03125, %v7679_v9  ;;  %v7676_v54 = vpop.xlane.xlu1 %7675 }
0x397b   :  { %v7680_v51 = vmul.f32 0.03125, %v7676_v54 }
0x397c   :  { %v7683_v55 = vadd.f32 1e-05, %v7681_v14 }
0x397d   :  { %v7682_v15 = vadd.f32 1e-05, %v7680_v51 }
0x397e   :  { %9500 = vrsqrt.f32 %v7683_v55 }
0x397f   :  { %9502 = vrsqrt.f32 %v7682_v15 }
0x3988   :  { %v9501_v56 = vpop.eup %9500 }
0x3989   :  { %v9503_v13 = vpop.eup %9502  ;;  %v7687_v61 = vmul.f32 %v9501_v56, %v7671_v1 }
0x398a   :  { %v7686_v12 = vmul.f32 %v9503_v13, %v7670_v11 }
0x398b   :  { %v7695_v27 = vmul.f32 %v7980_v10, %v7687_v61 }
0x398c   :  { %v7694_v17 = vmul.f32 %v7980_v10, %v7686_v12 }
0x398d   :  { %v7703_v3 = vadd.f32 %v7981_v7, %v7695_v27 }
0x398e   :  { %v7702_v18 = vadd.f32 %v7981_v7, %v7694_v17 }
0x398f   :  { %v7709_v23 = vsel %vm194_vm0, %v7703_v3, 0.0 }
0x3990   :  { %7710 = vadd.xlane.f32.xlu0 %v7709_v23  ;;  %v7706_v29 = vsel %vm194_vm0, %v7702_v18, 0.0 }
0x3991   :  { %7707 = vadd.xlane.f32.xlu1 %v7706_v29 }
0x3a1d   :  { %v7711_v24 = vpop.xlane.xlu0 %7710 }
0x3a1e   :  { %v7713_v25 = vmul.f32 0.03125, %v7711_v24  ;;  %v7708_v4 = vpop.xlane.xlu1 %7707 }
0x3a1f   :  { %v7712_v30 = vmul.f32 0.03125, %v7708_v4 }
0x3a20   :  { %v7715_v34 = vsub.f32 %v7703_v3, %v7713_v25 }
0x3a21   :  { %v7714_v46 = vsub.f32 %v7702_v18, %v7712_v30 }
0x3a22   :  { %v7717_v37 = vmul.f32 %v7715_v34, %v7715_v34 }
0x3a23   :  { %v7716_v8 = vmul.f32 %v7714_v46, %v7714_v46 }
0x3a24   :  { %v7721_v40 = vsel %vm194_vm0, %v7717_v37, 0.0 }
0x3a25   :  { %7722 = vadd.xlane.f32.xlu0 %v7721_v40  ;;  %v7718_v44 = vsel %vm194_vm0, %v7716_v8, 0.0 }
0x3a26   :  { %7719 = vadd.xlane.f32.xlu1 %v7718_v44 }
0x3ab2   :  { %v7723_v36 = vpop.xlane.xlu0 %7722 }
0x3ab3   :  { %v7725_v33 = vmul.f32 0.03125, %v7723_v36  ;;  %v7720_v35 = vpop.xlane.xlu1 %7719 }
0x3ab4   :  { %v7724_v45 = vmul.f32 0.03125, %v7720_v35 }
0x3ab5   :  { %v7727_v26 = vadd.f32 1e-05, %v7725_v33 }
0x3ab6   :  { %v7726_v59 = vadd.f32 1e-05, %v7724_v45 }
0x3ab7   :  { %9504 = vrsqrt.f32 %v7727_v26 }
0x3ab8   :  { %9506 = vrsqrt.f32 %v7726_v59 }
0x3ac1   :  { %v9505_v39 = vpop.eup %9504 }
0x3ac2   :  { %v9507_v43 = vpop.eup %9506  ;;  %v7731_v5 = vmul.f32 %v9505_v39, %v7715_v34 }
0x3ac3   :  { %v7730_v47 = vmul.f32 %v9507_v43, %v7714_v46 }
0x3ac4   :  { %v7739_v41 = vmul.f32 %v7982_v42, %v7731_v5 }
0x3ac5   :  { %v7738_v57 = vmul.f32 %v7982_v42, %v7730_v47 }
0x3ac6   :  { %v7747_v16 = vadd.f32 %v7983_v48, %v7739_v41 }
0x3ac7   :  { %v7746_v20 = vadd.f32 %v7983_v48, %v7738_v57 }
0x3ac8   :  { %7749 = vst.msk [vmem:[#allocation13 + $0x8] sm:$0xff] %vm194_vm0, %v7747_v16 }
0x3ac9   :  { %7748 = vst.msk [vmem:[#allocation13] sm:$0xff] %vm194_vm0, %v7746_v20 }
0x3aca   :  { %9657 = shalt.err (!%p9654_p10)
}
0x3acb   :  { %s11091_s24 = sld [smem:[#allocation30_spill]] }
0x3ad1   :  { %s9658_s25 = scalar_lea.hbm %s11091_s24, 256 }
0x3ad2   :  { %p9659_p11 = scmp.ne.s32.totalorder %s11091_s24, %s9658_s25  ;;  %p9662_p12 = scmp.lt.u32.totalorder %s9658_s25, %s11091_s24 }
0x3ad4   :  { %p9664_p13 = pnand %p9662_p12, %p9659_p11 }
0x3ad6   :  { %9667 = shalt.err (!%p9664_p13)
}
0x3ad7   :  { %s11092_s0 = smov 128  }
0x3ad8   :  { %7761 = dma.vmem_to_hbm [thread:$0]  %s7756_s23, 256, %s11091_s24, [#allocation4], %s11092_s0, %s11092_s0, %s11087_s10  }
0x3ad9   :  { %9676 = dma.done.wait [#allocation4], 256  }
0x3ada   :  { %9677 = vsyncadd [#allocation4], 4294967040 }
0x3adb   :  { %7765 = vsyncpa [#allocation3], 1 }
0x3adc   :  { %7766 = vsyncpa [#allocation6], 1 }
0x3add   :  { %7767 = vsyncpa [#allocation9], 1 }
0x3ade   :  { %7768 = vsyncpa [#allocation12], 1 }
0x3adf   :  { %7769 = vsyncpa [#allocation4], 1 }

</bundles_post_ra>
